<compile_context>
chip_gen: v5e
topology: v5e:2x2
jax: 0.10.0
libtpu: 0.0.40
codegen_flags: <defaults>
</compile_context>

<pallas_src>
import functools

import jax
import jax.numpy as jnp
from jax.experimental import pallas as pl
from jax.experimental.pallas import tpu as pltpu

M_SENSORS = 100
BRANCH_LAYERS = [M_SENSORS, 50, 50, 50, 50, 50]
TRUNK_LAYERS = [2, 50, 50, 50, 50, 50]


# ---------------------------------------------------------------------------
# Parameter construction (deterministic, PyTorch-Linear-style uniform init)
# Weights stored as (in, out), biases as (1, out):  y = x @ W + b.
# ---------------------------------------------------------------------------
def _mlp_layer_dims(layers):
    dims = [(layers[i], layers[i + 1]) for i in range(len(layers) - 1)]
    dims.append((layers[-2], layers[-1]))  # extra final Linear in MLP.__init__
    return dims


def init_mlp_params(key, layers):
    """Flat list [W0, b0, W1, b1, ...] with W: (in, out), b: (1, out), f32."""
    params = []
    for fan_in, fan_out in _mlp_layer_dims(layers):
        key, kw, kb = jax.random.split(key, 3)
        bound = 1.0 / (fan_in ** 0.5)
        W = jax.random.uniform(kw, (fan_in, fan_out), jnp.float32, -bound, bound)
        b = jax.random.uniform(kb, (1, fan_out), jnp.float32, -bound, bound)
        params += [W, b]
    return params


# ---------------------------------------------------------------------------
# Parameter packing for the kernel (feature-major / transposed layout).
# ---------------------------------------------------------------------------
def _block_diag_T(Wr, Wi):
    """Transposed block-diagonal fused weight: [[Wr^T, 0], [0, Wi^T]]."""
    o_r, i_r = Wr.shape[1], Wr.shape[0]
    o_i, i_i = Wi.shape[1], Wi.shape[0]
    top = jnp.concatenate([Wr.T, jnp.zeros((o_r, i_i), Wr.dtype)], axis=1)
    bot = jnp.concatenate([jnp.zeros((o_i, i_r), Wi.dtype), Wi.T], axis=1)
    return jnp.concatenate([top, bot], axis=0)          # (o_r+o_i, i_r+i_i)


def _pack_params(params_real, params_imag, params_trunk, matmul_dtype):
    nL = len(params_real) // 2                           # 6 linear layers
    W = lambda p, i: p[2 * i]
    b = lambda p, i: p[2 * i + 1]

    # Fused branch (real|imag), transposed (out, in) layout.
    bW0 = _block_diag_T(W(params_real, 0), W(params_imag, 0)).astype(matmul_dtype)     # (100, 200)
    bWh = jnp.stack([_block_diag_T(W(params_real, i), W(params_imag, i))
                     for i in range(1, nL)], axis=0).astype(matmul_dtype)               # (5, 100, 100)
    bB = jnp.concatenate(
        [jnp.concatenate([b(params_real, i), b(params_imag, i)], axis=1).T
         for i in range(nL)], axis=1)                                                   # (100, 6) f32

    # Trunk. First layer is evaluated on the VPU -> keep its weight in f32.
    tW0 = W(params_trunk, 0).T.astype(jnp.float32)                                      # (50, 2)
    tWh = jnp.stack([W(params_trunk, i).T for i in range(1, nL)],
                    axis=0).astype(matmul_dtype)                                        # (5, 50, 50)
    tB = jnp.concatenate([b(params_trunk, i).T for i in range(nL)], axis=1)             # (50, 6) f32
    return bW0, bWh, bB, tW0, tWh, tB


# ---------------------------------------------------------------------------
# Pallas kernel (feature-major: activations are (features, tb))
# ---------------------------------------------------------------------------
def deeponet_kernel(n_hidden, matmul_dtype,
                    u_ref, y_ref, bW0_ref, bWh_ref, bB_ref,
                    tW0_ref, tWh_ref, tB_ref,
                    out_r_ref, out_i_ref):
    f32 = jnp.float32
    bB = bB_ref[...]                                     # (100, 6) f32
    tB = tB_ref[...]                                     # (50, 6)  f32

    # ----- fused branch (real|imag): (200, tb) -> (100, tb) -> ... ----------
    u = u_ref[...].astype(matmul_dtype)                  # (200, tb)
    h = jnp.dot(bW0_ref[...], u, preferred_element_type=f32) + bB[:, 0:1]
    for j in range(n_hidden):                            # 5 remaining linears
        h = jnp.tanh(h).astype(matmul_dtype)
        h = jnp.dot(bWh_ref[j], h, preferred_element_type=f32) + bB[:, j + 1:j + 2]
    B = h                                                # (100, tb) f32, no tanh on last

    # ----- trunk: layer 0 on the VPU (contraction depth 2), rest on MXU -----
    y = y_ref[...]                                       # (2, tb) f32; row0=x, row1=t
    h = (tW0_ref[:, 0:1] * y[0:1, :]
         + tW0_ref[:, 1:2] * y[1:2, :]
         + tB[:, 0:1])                                   # (50, tb)
    for j in range(n_hidden):
        h = jnp.tanh(h).astype(matmul_dtype)
        h = jnp.dot(tWh_ref[j], h, preferred_element_type=f32) + tB[:, j + 1:j + 2]
    T = h                                                # (50, tb) f32

    # ----- per-sample reductions -> lane-dense (1, tb) rows ------------------
    d = T.shape[0]                                       # 50
    out_r_ref[...] = jnp.sum(B[:d, :] * T, axis=0, keepdims=True)
    out_i_ref[...] = jnp.sum(B[d:, :] * T, axis=0, keepdims=True)


# ---------------------------------------------------------------------------
# Wrapper
# ---------------------------------------------------------------------------
def _round_up(a, b):
    return ((a + b - 1) // b) * b


def pi_deeponet_forward(u_real, u_imag, x, t,
                        params_real, params_imag, params_trunk,
                        tb=256, matmul_dtype=jnp.bfloat16):
    """Forward pass. tb is the batch tile (sweep 256-1024; multiple of 128).

    On v7x (64 MiB VMEM) keep tb <= a few thousand or set
    pltpu.CompilerParams(vmem_limit_bytes=...) explicitly; at the default
    tb=256 the per-step working set is well under 1 MiB.
    """
    N = u_real.shape[0]
    n_layers = len(params_real) // 2
    assert len(params_imag) == len(params_real) == len(params_trunk)

    if N <= tb:
        tb_eff = max(8, _round_up(N, 8))                 # single full-array tile
    else:
        assert tb % 128 == 0, "multi-tile tb must be a multiple of 128"
        tb_eff = tb
    Np = _round_up(N, tb_eff)
    pad = Np - N

    # Build feature-major inputs: u is the fused (real|imag) sensor vector.
    u = jnp.concatenate([u_real, u_imag], axis=1)        # (N, 200)
    if pad:
        u = jnp.pad(u, ((0, pad), (0, 0)))
        x = jnp.pad(x, (0, pad))
        t = jnp.pad(t, (0, pad))
    u_t = u.T                                            # (200, Np)
    y_t = jnp.stack((x, t), axis=0)                      # (2, Np)  (== torch.stack((x,t),1).T)

    bW0, bWh, bB, tW0, tWh, tB = _pack_params(
        params_real, params_imag, params_trunk, matmul_dtype)

    in_specs = [
        pl.BlockSpec((u_t.shape[0], tb_eff), lambda i: (0, i)),   # u (features, tb)
        pl.BlockSpec((2, tb_eff), lambda i: (0, i)),              # y (2, tb)
        pl.BlockSpec(bW0.shape, lambda i: (0, 0)),                # whole-array params
        pl.BlockSpec(bWh.shape, lambda i: (0, 0, 0)),
        pl.BlockSpec(bB.shape, lambda i: (0, 0)),
        pl.BlockSpec(tW0.shape, lambda i: (0, 0)),
        pl.BlockSpec(tWh.shape, lambda i: (0, 0, 0)),
        pl.BlockSpec(tB.shape, lambda i: (0, 0)),
    ]
    out_specs = (
        pl.BlockSpec((1, tb_eff), lambda i: (0, i)),              # lane-dense row
        pl.BlockSpec((1, tb_eff), lambda i: (0, i)),
    )

    kernel = functools.partial(deeponet_kernel, n_layers - 1, matmul_dtype)
    out_r, out_i = pl.pallas_call(
        kernel,
        out_shape=(
            jax.ShapeDtypeStruct((1, Np), jnp.float32),
            jax.ShapeDtypeStruct((1, Np), jnp.float32),
        ),
        grid=(Np // tb_eff,),
        in_specs=in_specs,
        out_specs=out_specs,
        compiler_params=pltpu.CompilerParams(
            dimension_semantics=("parallel",)),          # lets v7x's 2 TCs split the batch
    )(u_t, y_t, bW0, bWh, bB, tW0, tWh, tB)

    # PyTorch returns 1-D tensors of shape [N].
    return out_r[0, :N], out_i[0, :N]


# ---------------------------------------------------------------------------
# Pure-JAX reference (mirrors the PyTorch forward exactly, all f32)
# ---------------------------------------------------------------------------
def _mlp_ref(x, params):
    n_layers = len(params) // 2
    for i in range(n_layers):
        x = x @ params[2 * i] + params[2 * i + 1]
        if i < n_layers - 1:
            x = jnp.tanh(x)
    return x


def pi_deeponet_ref(u_real, u_imag, x, t, params_real, params_imag, params_trunk):
    y = jnp.stack((x, t), axis=1)
    B_real = _mlp_ref(u_real, params_real)
    B_imag = _mlp_ref(u_imag, params_imag)
    T = _mlp_ref(y, params_trunk)
    return jnp.sum(B_real * T, axis=1), jnp.sum(B_imag * T, axis=1)


# NOTE: loss_PML / train (autograd-based PDE residual loss + Adam step) are
# training utilities, not part of the forward pass, and are not kernelized.
# TODO(synk): PDE-residual loss would need jax.grad around this forward; left out.

if __name__ == "__main__":
    key = jax.random.PRNGKey(0)
    k_pr, k_pi, k_pt, k_ur, k_ui, k_x, k_t = jax.random.split(key, 7)

    params_real = init_mlp_params(k_pr, BRANCH_LAYERS)
    params_imag = init_mlp_params(k_pi, BRANCH_LAYERS)
    params_trunk = init_mlp_params(k_pt, TRUNK_LAYERS)

    N = 1024  # 4 tiles of tb=256 -> grid long enough to feed 2 TCs on v7x
    u_real = jax.random.normal(k_ur, (N, M_SENSORS), jnp.float32)
    u_imag = jax.random.normal(k_ui, (N, M_SENSORS), jnp.float32)
    x = jax.random.normal(k_x, (N,), jnp.float32)
    t = jax.random.normal(k_t, (N,), jnp.float32)

    out_real, out_imag = pi_deeponet_forward(
        u_real, u_imag, x, t, params_real, params_imag, params_trunk, tb=256)
    jax.block_until_ready((out_real, out_imag))

    ref_real, ref_imag = pi_deeponet_ref(
        u_real, u_imag, x, t, params_real, params_imag, params_trunk)

    assert out_real.shape == (N,) and out_imag.shape == (N,)
    # bf16 matmul operands (f32 accumulation) vs. full-f32 reference -> loose tol.
    assert jnp.allclose(out_real, ref_real, rtol=3e-2, atol=3e-2), \
        float(jnp.max(jnp.abs(out_real - ref_real)))
    assert jnp.allclose(out_imag, ref_imag, rtol=3e-2, atol=3e-2), \
        float(jnp.max(jnp.abs(out_imag - ref_imag)))

    # Small, non-multiple batch exercises the padding / single-tile path.
    N2 = 37
    o2r, o2i = pi_deeponet_forward(
        u_real[:N2], u_imag[:N2], x[:N2], t[:N2],
        params_real, params_imag, params_trunk, tb=256)
    jax.block_until_ready((o2r, o2i))
    assert o2r.shape == (N2,) and o2i.shape == (N2,)
    assert jnp.allclose(o2r, ref_real[:N2], rtol=3e-2, atol=3e-2)
    assert jnp.allclose(o2i, ref_imag[:N2], rtol=3e-2, atol=3e-2)

    print("KERNEL_OK")
</pallas_src>

<mosaic_0001>
module attributes {stable_mosaic.version = 11 : i64} {
  func.func @deeponet_kernel(%arg0: i32, %arg1: memref<200x256xf32, #tpu.memory_space<vmem>>, %arg2: memref<2x256xf32, #tpu.memory_space<vmem>>, %arg3: memref<100x200xbf16, #tpu.memory_space<vmem>>, %arg4: memref<5x100x100xbf16, #tpu.memory_space<vmem>>, %arg5: memref<100x6xf32, #tpu.memory_space<vmem>>, %arg6: memref<50x2xf32, #tpu.memory_space<vmem>>, %arg7: memref<5x50x50xbf16, #tpu.memory_space<vmem>>, %arg8: memref<50x6xf32, #tpu.memory_space<vmem>>, %arg9: memref<1x256xf32, #tpu.memory_space<vmem>>, %arg10: memref<1x256xf32, #tpu.memory_space<vmem>>) attributes {dimension_semantics = [#tpu.dimension_semantics<parallel>], iteration_bounds = array<i64: 4>, scalar_prefetch = 0 : i64, scratch_operands = 0 : i64, tpu.core_type = #tpu.core_type<tc>, window_params = [{transform_indices = @transform_0, window_bounds = array<i64: 200, 256>}, {transform_indices = @transform_1, window_bounds = array<i64: 2, 256>}, {pipeline_mode = #tpu.pipeline_mode<synchronous>, transform_indices = @transform_2, window_bounds = array<i64: 100, 200>}, {pipeline_mode = #tpu.pipeline_mode<synchronous>, transform_indices = @transform_3, window_bounds = array<i64: 5, 100, 100>}, {pipeline_mode = #tpu.pipeline_mode<synchronous>, transform_indices = @transform_4, window_bounds = array<i64: 100, 6>}, {pipeline_mode = #tpu.pipeline_mode<synchronous>, transform_indices = @transform_5, window_bounds = array<i64: 50, 2>}, {pipeline_mode = #tpu.pipeline_mode<synchronous>, transform_indices = @transform_6, window_bounds = array<i64: 5, 50, 50>}, {pipeline_mode = #tpu.pipeline_mode<synchronous>, transform_indices = @transform_7, window_bounds = array<i64: 50, 6>}, {transform_indices = @transform_8, window_bounds = array<i64: 1, 256>}, {transform_indices = @transform_9, window_bounds = array<i64: 1, 256>}]} {
    %c0 = arith.constant 0 : index
    %c0_0 = arith.constant 0 : index
    %0 = vector.load %arg5[%c0, %c0_0] : memref<100x6xf32, #tpu.memory_space<vmem>>, vector<100x6xf32>
    %c0_1 = arith.constant 0 : index
    %c0_2 = arith.constant 0 : index
    %1 = vector.load %arg8[%c0_1, %c0_2] : memref<50x6xf32, #tpu.memory_space<vmem>>, vector<50x6xf32>
    %c0_3 = arith.constant 0 : index
    %c0_4 = arith.constant 0 : index
    %2 = vector.load %arg1[%c0_3, %c0_4] : memref<200x256xf32, #tpu.memory_space<vmem>>, vector<200x256xf32>
    %3 = arith.truncf %2 : vector<200x256xf32> to vector<200x256xbf16>
    %c0_5 = arith.constant 0 : index
    %c0_6 = arith.constant 0 : index
    %4 = vector.load %arg3[%c0_5, %c0_6] : memref<100x200xbf16, #tpu.memory_space<vmem>>, vector<100x200xbf16>
    %cst = arith.constant dense<0.000000e+00> : vector<100x256xf32>
    %5 = tpu.matmul %4, %3, %cst {dimension_numbers = #tpu.dot_dimension_numbers<[1], [0], [0], [1], [0, 0, 1, 1], [], []>} : vector<100x200xbf16>, vector<200x256xbf16>, vector<100x256xf32> -> vector<100x256xf32>
    %6 = vector.extract_strided_slice %0 {offsets = [0, 0], sizes = [100, 1], strides = [1, 1]} : vector<100x6xf32> to vector<100x1xf32>
    %7 = vector.broadcast %6 : vector<100x1xf32> to vector<100x256xf32>
    %8 = arith.addf %5, %7 : vector<100x256xf32>
    %9 = math.tanh %8 : vector<100x256xf32>
    %10 = arith.truncf %9 : vector<100x256xf32> to vector<100x256xbf16>
    %c0_7 = arith.constant 0 : index
    %c0_8 = arith.constant 0 : index
    %c0_9 = arith.constant 0 : index
    %11 = vector.load %arg4[%c0_7, %c0_8, %c0_9] : memref<5x100x100xbf16, #tpu.memory_space<vmem>>, vector<1x100x100xbf16>
    %12 = vector.shape_cast %11 : vector<1x100x100xbf16> to vector<100x100xbf16>
    %cst_10 = arith.constant dense<0.000000e+00> : vector<100x256xf32>
    %13 = tpu.matmul %12, %10, %cst_10 {dimension_numbers = #tpu.dot_dimension_numbers<[1], [0], [0], [1], [0, 0, 1, 1], [], []>} : vector<100x100xbf16>, vector<100x256xbf16>, vector<100x256xf32> -> vector<100x256xf32>
    %14 = vector.extract_strided_slice %0 {offsets = [0, 1], sizes = [100, 1], strides = [1, 1]} : vector<100x6xf32> to vector<100x1xf32>
    %15 = vector.broadcast %14 : vector<100x1xf32> to vector<100x256xf32>
    %16 = arith.addf %13, %15 : vector<100x256xf32>
    %17 = math.tanh %16 : vector<100x256xf32>
    %18 = arith.truncf %17 : vector<100x256xf32> to vector<100x256xbf16>
    %c1 = arith.constant 1 : index
    %c0_11 = arith.constant 0 : index
    %c0_12 = arith.constant 0 : index
    %19 = vector.load %arg4[%c1, %c0_11, %c0_12] : memref<5x100x100xbf16, #tpu.memory_space<vmem>>, vector<1x100x100xbf16>
    %20 = vector.shape_cast %19 : vector<1x100x100xbf16> to vector<100x100xbf16>
    %cst_13 = arith.constant dense<0.000000e+00> : vector<100x256xf32>
    %21 = tpu.matmul %20, %18, %cst_13 {dimension_numbers = #tpu.dot_dimension_numbers<[1], [0], [0], [1], [0, 0, 1, 1], [], []>} : vector<100x100xbf16>, vector<100x256xbf16>, vector<100x256xf32> -> vector<100x256xf32>
    %22 = vector.extract_strided_slice %0 {offsets = [0, 2], sizes = [100, 1], strides = [1, 1]} : vector<100x6xf32> to vector<100x1xf32>
    %23 = vector.broadcast %22 : vector<100x1xf32> to vector<100x256xf32>
    %24 = arith.addf %21, %23 : vector<100x256xf32>
    %25 = math.tanh %24 : vector<100x256xf32>
    %26 = arith.truncf %25 : vector<100x256xf32> to vector<100x256xbf16>
    %c2 = arith.constant 2 : index
    %c0_14 = arith.constant 0 : index
    %c0_15 = arith.constant 0 : index
    %27 = vector.load %arg4[%c2, %c0_14, %c0_15] : memref<5x100x100xbf16, #tpu.memory_space<vmem>>, vector<1x100x100xbf16>
    %28 = vector.shape_cast %27 : vector<1x100x100xbf16> to vector<100x100xbf16>
    %cst_16 = arith.constant dense<0.000000e+00> : vector<100x256xf32>
    %29 = tpu.matmul %28, %26, %cst_16 {dimension_numbers = #tpu.dot_dimension_numbers<[1], [0], [0], [1], [0, 0, 1, 1], [], []>} : vector<100x100xbf16>, vector<100x256xbf16>, vector<100x256xf32> -> vector<100x256xf32>
    %30 = vector.extract_strided_slice %0 {offsets = [0, 3], sizes = [100, 1], strides = [1, 1]} : vector<100x6xf32> to vector<100x1xf32>
    %31 = vector.broadcast %30 : vector<100x1xf32> to vector<100x256xf32>
    %32 = arith.addf %29, %31 : vector<100x256xf32>
    %33 = math.tanh %32 : vector<100x256xf32>
    %34 = arith.truncf %33 : vector<100x256xf32> to vector<100x256xbf16>
    %c3 = arith.constant 3 : index
    %c0_17 = arith.constant 0 : index
    %c0_18 = arith.constant 0 : index
    %35 = vector.load %arg4[%c3, %c0_17, %c0_18] : memref<5x100x100xbf16, #tpu.memory_space<vmem>>, vector<1x100x100xbf16>
    %36 = vector.shape_cast %35 : vector<1x100x100xbf16> to vector<100x100xbf16>
    %cst_19 = arith.constant dense<0.000000e+00> : vector<100x256xf32>
    %37 = tpu.matmul %36, %34, %cst_19 {dimension_numbers = #tpu.dot_dimension_numbers<[1], [0], [0], [1], [0, 0, 1, 1], [], []>} : vector<100x100xbf16>, vector<100x256xbf16>, vector<100x256xf32> -> vector<100x256xf32>
    %38 = vector.extract_strided_slice %0 {offsets = [0, 4], sizes = [100, 1], strides = [1, 1]} : vector<100x6xf32> to vector<100x1xf32>
    %39 = vector.broadcast %38 : vector<100x1xf32> to vector<100x256xf32>
    %40 = arith.addf %37, %39 : vector<100x256xf32>
    %41 = math.tanh %40 : vector<100x256xf32>
    %42 = arith.truncf %41 : vector<100x256xf32> to vector<100x256xbf16>
    %c4 = arith.constant 4 : index
    %c0_20 = arith.constant 0 : index
    %c0_21 = arith.constant 0 : index
    %43 = vector.load %arg4[%c4, %c0_20, %c0_21] : memref<5x100x100xbf16, #tpu.memory_space<vmem>>, vector<1x100x100xbf16>
    %44 = vector.shape_cast %43 : vector<1x100x100xbf16> to vector<100x100xbf16>
    %cst_22 = arith.constant dense<0.000000e+00> : vector<100x256xf32>
    %45 = tpu.matmul %44, %42, %cst_22 {dimension_numbers = #tpu.dot_dimension_numbers<[1], [0], [0], [1], [0, 0, 1, 1], [], []>} : vector<100x100xbf16>, vector<100x256xbf16>, vector<100x256xf32> -> vector<100x256xf32>
    %46 = vector.extract_strided_slice %0 {offsets = [0, 5], sizes = [100, 1], strides = [1, 1]} : vector<100x6xf32> to vector<100x1xf32>
    %47 = vector.broadcast %46 : vector<100x1xf32> to vector<100x256xf32>
    %48 = arith.addf %45, %47 : vector<100x256xf32>
    %c0_23 = arith.constant 0 : index
    %c0_24 = arith.constant 0 : index
    %49 = vector.load %arg2[%c0_23, %c0_24] : memref<2x256xf32, #tpu.memory_space<vmem>>, vector<2x256xf32>
    %c0_25 = arith.constant 0 : index
    %c0_26 = arith.constant 0 : index
    %50 = vector.load %arg6[%c0_25, %c0_26] : memref<50x2xf32, #tpu.memory_space<vmem>>, vector<50x1xf32>
    %51 = vector.extract_strided_slice %49 {offsets = [0, 0], sizes = [1, 256], strides = [1, 1]} : vector<2x256xf32> to vector<1x256xf32>
    %52 = vector.broadcast %50 : vector<50x1xf32> to vector<50x256xf32>
    %53 = vector.broadcast %51 : vector<1x256xf32> to vector<50x256xf32>
    %54 = arith.mulf %52, %53 : vector<50x256xf32>
    %c0_27 = arith.constant 0 : index
    %c1_28 = arith.constant 1 : index
    %55 = vector.load %arg6[%c0_27, %c1_28] : memref<50x2xf32, #tpu.memory_space<vmem>>, vector<50x1xf32>
    %56 = vector.extract_strided_slice %49 {offsets = [1, 0], sizes = [1, 256], strides = [1, 1]} : vector<2x256xf32> to vector<1x256xf32>
    %57 = vector.broadcast %55 : vector<50x1xf32> to vector<50x256xf32>
    %58 = vector.broadcast %56 : vector<1x256xf32> to vector<50x256xf32>
    %59 = arith.mulf %57, %58 : vector<50x256xf32>
    %60 = arith.addf %54, %59 : vector<50x256xf32>
    %61 = vector.extract_strided_slice %1 {offsets = [0, 0], sizes = [50, 1], strides = [1, 1]} : vector<50x6xf32> to vector<50x1xf32>
    %62 = vector.broadcast %61 : vector<50x1xf32> to vector<50x256xf32>
    %63 = arith.addf %60, %62 : vector<50x256xf32>
    %64 = math.tanh %63 : vector<50x256xf32>
    %65 = arith.truncf %64 : vector<50x256xf32> to vector<50x256xbf16>
    %c0_29 = arith.constant 0 : index
    %c0_30 = arith.constant 0 : index
    %c0_31 = arith.constant 0 : index
    %66 = vector.load %arg7[%c0_29, %c0_30, %c0_31] : memref<5x50x50xbf16, #tpu.memory_space<vmem>>, vector<1x50x50xbf16>
    %67 = vector.shape_cast %66 : vector<1x50x50xbf16> to vector<50x50xbf16>
    %cst_32 = arith.constant dense<0.000000e+00> : vector<50x256xf32>
    %68 = tpu.matmul %67, %65, %cst_32 {dimension_numbers = #tpu.dot_dimension_numbers<[1], [0], [0], [1], [0, 0, 1, 1], [], []>} : vector<50x50xbf16>, vector<50x256xbf16>, vector<50x256xf32> -> vector<50x256xf32>
    %69 = vector.extract_strided_slice %1 {offsets = [0, 1], sizes = [50, 1], strides = [1, 1]} : vector<50x6xf32> to vector<50x1xf32>
    %70 = vector.broadcast %69 : vector<50x1xf32> to vector<50x256xf32>
    %71 = arith.addf %68, %70 : vector<50x256xf32>
    %72 = math.tanh %71 : vector<50x256xf32>
    %73 = arith.truncf %72 : vector<50x256xf32> to vector<50x256xbf16>
    %c1_33 = arith.constant 1 : index
    %c0_34 = arith.constant 0 : index
    %c0_35 = arith.constant 0 : index
    %74 = vector.load %arg7[%c1_33, %c0_34, %c0_35] : memref<5x50x50xbf16, #tpu.memory_space<vmem>>, vector<1x50x50xbf16>
    %75 = vector.shape_cast %74 : vector<1x50x50xbf16> to vector<50x50xbf16>
    %cst_36 = arith.constant dense<0.000000e+00> : vector<50x256xf32>
    %76 = tpu.matmul %75, %73, %cst_36 {dimension_numbers = #tpu.dot_dimension_numbers<[1], [0], [0], [1], [0, 0, 1, 1], [], []>} : vector<50x50xbf16>, vector<50x256xbf16>, vector<50x256xf32> -> vector<50x256xf32>
    %77 = vector.extract_strided_slice %1 {offsets = [0, 2], sizes = [50, 1], strides = [1, 1]} : vector<50x6xf32> to vector<50x1xf32>
    %78 = vector.broadcast %77 : vector<50x1xf32> to vector<50x256xf32>
    %79 = arith.addf %76, %78 : vector<50x256xf32>
    %80 = math.tanh %79 : vector<50x256xf32>
    %81 = arith.truncf %80 : vector<50x256xf32> to vector<50x256xbf16>
    %c2_37 = arith.constant 2 : index
    %c0_38 = arith.constant 0 : index
    %c0_39 = arith.constant 0 : index
    %82 = vector.load %arg7[%c2_37, %c0_38, %c0_39] : memref<5x50x50xbf16, #tpu.memory_space<vmem>>, vector<1x50x50xbf16>
    %83 = vector.shape_cast %82 : vector<1x50x50xbf16> to vector<50x50xbf16>
    %cst_40 = arith.constant dense<0.000000e+00> : vector<50x256xf32>
    %84 = tpu.matmul %83, %81, %cst_40 {dimension_numbers = #tpu.dot_dimension_numbers<[1], [0], [0], [1], [0, 0, 1, 1], [], []>} : vector<50x50xbf16>, vector<50x256xbf16>, vector<50x256xf32> -> vector<50x256xf32>
    %85 = vector.extract_strided_slice %1 {offsets = [0, 3], sizes = [50, 1], strides = [1, 1]} : vector<50x6xf32> to vector<50x1xf32>
    %86 = vector.broadcast %85 : vector<50x1xf32> to vector<50x256xf32>
    %87 = arith.addf %84, %86 : vector<50x256xf32>
    %88 = math.tanh %87 : vector<50x256xf32>
    %89 = arith.truncf %88 : vector<50x256xf32> to vector<50x256xbf16>
    %c3_41 = arith.constant 3 : index
    %c0_42 = arith.constant 0 : index
    %c0_43 = arith.constant 0 : index
    %90 = vector.load %arg7[%c3_41, %c0_42, %c0_43] : memref<5x50x50xbf16, #tpu.memory_space<vmem>>, vector<1x50x50xbf16>
    %91 = vector.shape_cast %90 : vector<1x50x50xbf16> to vector<50x50xbf16>
    %cst_44 = arith.constant dense<0.000000e+00> : vector<50x256xf32>
    %92 = tpu.matmul %91, %89, %cst_44 {dimension_numbers = #tpu.dot_dimension_numbers<[1], [0], [0], [1], [0, 0, 1, 1], [], []>} : vector<50x50xbf16>, vector<50x256xbf16>, vector<50x256xf32> -> vector<50x256xf32>
    %93 = vector.extract_strided_slice %1 {offsets = [0, 4], sizes = [50, 1], strides = [1, 1]} : vector<50x6xf32> to vector<50x1xf32>
    %94 = vector.broadcast %93 : vector<50x1xf32> to vector<50x256xf32>
    %95 = arith.addf %92, %94 : vector<50x256xf32>
    %96 = math.tanh %95 : vector<50x256xf32>
    %97 = arith.truncf %96 : vector<50x256xf32> to vector<50x256xbf16>
    %c4_45 = arith.constant 4 : index
    %c0_46 = arith.constant 0 : index
    %c0_47 = arith.constant 0 : index
    %98 = vector.load %arg7[%c4_45, %c0_46, %c0_47] : memref<5x50x50xbf16, #tpu.memory_space<vmem>>, vector<1x50x50xbf16>
    %99 = vector.shape_cast %98 : vector<1x50x50xbf16> to vector<50x50xbf16>
    %cst_48 = arith.constant dense<0.000000e+00> : vector<50x256xf32>
    %100 = tpu.matmul %99, %97, %cst_48 {dimension_numbers = #tpu.dot_dimension_numbers<[1], [0], [0], [1], [0, 0, 1, 1], [], []>} : vector<50x50xbf16>, vector<50x256xbf16>, vector<50x256xf32> -> vector<50x256xf32>
    %101 = vector.extract_strided_slice %1 {offsets = [0, 5], sizes = [50, 1], strides = [1, 1]} : vector<50x6xf32> to vector<50x1xf32>
    %102 = vector.broadcast %101 : vector<50x1xf32> to vector<50x256xf32>
    %103 = arith.addf %100, %102 : vector<50x256xf32>
    %104 = vector.extract_strided_slice %48 {offsets = [0, 0], sizes = [50, 256], strides = [1, 1]} : vector<100x256xf32> to vector<50x256xf32>
    %105 = arith.mulf %104, %103 : vector<50x256xf32>
    %cst_49 = arith.constant dense<0.000000e+00> : vector<256xf32>
    %106 = vector.multi_reduction <add>, %105, %cst_49 [0] : vector<50x256xf32> to vector<256xf32>
    %107 = vector.shape_cast %106 : vector<256xf32> to vector<1x256xf32>
    %c0_50 = arith.constant 0 : index
    %c0_51 = arith.constant 0 : index
    %108 = vector.load %arg9[%c0_50, %c0_51] : memref<1x256xf32, #tpu.memory_space<vmem>>, vector<1x256xf32>
    tpu.vector_store %arg9[%c0_50, %c0_51], %107 {strides = array<i32>} : memref<1x256xf32, #tpu.memory_space<vmem>>, vector<1x256xf32>,
    %109 = vector.extract_strided_slice %48 {offsets = [50, 0], sizes = [50, 256], strides = [1, 1]} : vector<100x256xf32> to vector<50x256xf32>
    %110 = arith.mulf %109, %103 : vector<50x256xf32>
    %cst_52 = arith.constant dense<0.000000e+00> : vector<256xf32>
    %111 = vector.multi_reduction <add>, %110, %cst_52 [0] : vector<50x256xf32> to vector<256xf32>
    %112 = vector.shape_cast %111 : vector<256xf32> to vector<1x256xf32>
    %c0_53 = arith.constant 0 : index
    %c0_54 = arith.constant 0 : index
    %113 = vector.load %arg10[%c0_53, %c0_54] : memref<1x256xf32, #tpu.memory_space<vmem>>, vector<1x256xf32>
    tpu.vector_store %arg10[%c0_53, %c0_54], %112 {strides = array<i32>} : memref<1x256xf32, #tpu.memory_space<vmem>>, vector<1x256xf32>,
    return
  }
  func.func @transform_0(%arg0: i32) -> (i32, i32) {
    %c0_i32 = arith.constant 0 : i32
    %c0_i32_0 = arith.constant 0 : i32
    return %c0_i32, %arg0 : i32, i32
  }
  func.func @transform_1(%arg0: i32) -> (i32, i32) {
    %c0_i32 = arith.constant 0 : i32
    %c0_i32_0 = arith.constant 0 : i32
    return %c0_i32, %arg0 : i32, i32
  }
  func.func @transform_2(%arg0: i32) -> (i32, i32) {
    %c0_i32 = arith.constant 0 : i32
    %c0_i32_0 = arith.constant 0 : i32
    %c0_i32_1 = arith.constant 0 : i32
    return %c0_i32, %c0_i32_0 : i32, i32
  }
  func.func @transform_3(%arg0: i32) -> (i32, i32, i32) {
    %c0_i32 = arith.constant 0 : i32
    %c0_i32_0 = arith.constant 0 : i32
    %c0_i32_1 = arith.constant 0 : i32
    %c0_i32_2 = arith.constant 0 : i32
    return %c0_i32, %c0_i32_0, %c0_i32_1 : i32, i32, i32
  }
  func.func @transform_4(%arg0: i32) -> (i32, i32) {
    %c0_i32 = arith.constant 0 : i32
    %c0_i32_0 = arith.constant 0 : i32
    %c0_i32_1 = arith.constant 0 : i32
    return %c0_i32, %c0_i32_0 : i32, i32
  }
  func.func @transform_5(%arg0: i32) -> (i32, i32) {
    %c0_i32 = arith.constant 0 : i32
    %c0_i32_0 = arith.constant 0 : i32
    %c0_i32_1 = arith.constant 0 : i32
    return %c0_i32, %c0_i32_0 : i32, i32
  }
  func.func @transform_6(%arg0: i32) -> (i32, i32, i32) {
    %c0_i32 = arith.constant 0 : i32
    %c0_i32_0 = arith.constant 0 : i32
    %c0_i32_1 = arith.constant 0 : i32
    %c0_i32_2 = arith.constant 0 : i32
    return %c0_i32, %c0_i32_0, %c0_i32_1 : i32, i32, i32
  }
  func.func @transform_7(%arg0: i32) -> (i32, i32) {
    %c0_i32 = arith.constant 0 : i32
    %c0_i32_0 = arith.constant 0 : i32
    %c0_i32_1 = arith.constant 0 : i32
    return %c0_i32, %c0_i32_0 : i32, i32
  }
  func.func @transform_8(%arg0: i32) -> (i32, i32) {
    %c0_i32 = arith.constant 0 : i32
    %c0_i32_0 = arith.constant 0 : i32
    return %c0_i32, %arg0 : i32, i32
  }
  func.func @transform_9(%arg0: i32) -> (i32, i32) {
    %c0_i32 = arith.constant 0 : i32
    %c0_i32_0 = arith.constant 0 : i32
    return %c0_i32, %arg0 : i32, i32
  }
}

</mosaic_0001>

<bundles_post_ra>
// kernel: tpu_custom_call.1
= control target key start
LH: loop header
LB: loop body
LE: loop exit
PB: predicated region body
PF: predicated region fallthrough
CT: control target
= control target key end

     0   :  { %s6376_s0 = inlined_call_operand.hbm [shape: f32[200,1024], index: 0, kind: input, shape index: {}]   ;;  %s6377_s1 = inlined_call_operand.vmem [shape: f32[2,1024], index: 1, kind: input, shape index: {}]   ;;  %s6378_s2 = inlined_call_operand.vmem [shape: bf16[100,200], index: 2, kind: input, shape index: {}]   ;;  %s6379_s3 = inlined_call_operand.vmem [shape: bf16[5,100,100], index: 3, kind: input, shape index: {}]   ;;  %s6380_s4 = inlined_call_operand.vmem [shape: f32[100,6], index: 4, kind: input, shape index: {}]   ;;  %s6381_s5 = inlined_call_operand.vmem [shape: f32[50,2], index: 5, kind: input, shape index: {}]   ;;  %s6382_s6 = inlined_call_operand.hbm [shape: bf16[5,50,50], index: 6, kind: input, shape index: {}]   ;;  %s6383_s7 = inlined_call_operand.vmem [shape: f32[50,6], index: 7, kind: input, shape index: {}]   ;;  %s6384_s8 = inlined_call_operand.hbm [shape: f32[1,1024], index: 8, kind: output, shape index: {0}]   ;;  %s6385_s9 = inlined_call_operand.hbm [shape: f32[1,1024], index: 9, kind: output, shape index: {1}]  }
   0x1   :  { %6409 = sst [smem:[#allocation32_spill]] %s6382_s6 }
   0x2   :  { %15 = vsyncpa [#allocation3], 0 }
   0x3   :  { %17 = vsyncpa [#allocation3 + $0x1], 0 }
   0x4   :  { %18 = vsyncpa [#allocation6], 0 }
   0x5   :  { %19 = vsyncpa [#allocation4], 0 }
   0x6   :  { %21 = vsyncpa [#allocation4 + $0x1], 0 }
   0x7   :  { %22 = vsyncpa [#allocation9], 0 }
   0x8   :  { %24 = vsyncpa [#allocation9 + $0x1], 0  ;;  %s4661_s30 = smov 0   ;;  %s4663_s10 = smov 0  }
   0x9   :  { %s4665_s11 = smov 0   ;;  %s4667_s12 = smov 0  }
   0xa LB: > { %6410 = sst [smem:[#allocation14_spill]] %s4593_s11  ;;  %s4682_s13 = sadd.s32 4294967295, %s4597_s12   ;;  %s4597_s12 = sphi %s4667_s12, %s6463_s12   ;;  %s4593_s11 = sphi %s4665_s11, %s6465_s11   ;;  %s4589_s10 = sphi %s4663_s10, %s6467_s10   ;;  %s4585_s30 = sphi %s4661_s30, %s6466_s30  }
   0xb   : > { %s3394_s14 = sadd.s32 4294967294, %s4597_s12   ;;  %p50_p0 = scmp.ne.s32.totalorder %s4589_s10, %s4585_s30 }
   0xc   : > { %p51_p1 = scmp.eq.s32.totalorder %s4682_s13, 0  ;;  %p226_p2 = scmp.eq.s32.totalorder %s4682_s13, 3 }
   0xd   : > { %p232_p3 = scmp.eq.s32.totalorder %s3394_s14, 3  ;;  %p3395_p5 = scmp.ge.s32.totalorder %s4597_s12, 1 }
   0xe   : > { %p4691_p4 = por %p51_p1, %p50_p0  ;;  %p265_p7 = scmp.lt.s32.totalorder %s4597_s12, 5 }
   0xf   : > { %p4696_p6 = por %p232_p3, %p50_p0  ;;  %s6414_s6 = sld [smem:[#allocation32_spill]] }
  0x10   : > { %p4704_p8 = pnand %p3395_p5, %p265_p7  ;;  %s4599_s21 = smov [#allocation5]  }
  0x11   : > { %s6412_s16 = scalar_select %p4696_p6, 1, 0 }
  0x12   : > { %p3900_p9 = pneg %p4704_p8  ;;  %s290_s22 = sshll.u32 %s4599_s21, 4  ;;  %s291_s22 = int_to_ptr.vmem [resolvable:$true] %s290_s22 }
  0x13   : > { %6413 = sst [smem:[#allocation15_spill]] %s6412_s16  ;;  %s4713_s23 = sadd.s32 1, %s4597_s12  }
  0x14   : > { %p3901_p10 = pnand %p3900_p9, %p51_p1  ;;  %6416 = sst [smem:[#allocation16_spill]] %s4713_s23 }
  0x15   : > { %s288_s19 = sshll.u32 %s6414_s6, 4  ;;  %s4600_s24 = smov 64   ;;  %s289_s19 = int_to_ptr.hbm [resolvable:$true] %s288_s19 }
  0x16   : > { %s4601_s25 = smov 4   ;;  %s34_s26 = ssub.s32 %s4597_s12, %s4713_s23 }
  0x17   : > { %3903 = dma.hbm_to_vmem [thread:$0]  (!%p3901_p10), %s289_s19, 2240, %s291_s22, [#allocation6], %s4600_s24, %s4600_s24, %s4601_s25  }
  0x18   : > { %s37_s27 = sadd.s32 1, %s4593_s11  ;;  %p35_p11 = scmp.eq.s32.totalorder %s34_s26, 0 }
  0x19   : > { %p44_p12 = scmp.ne.s32.totalorder %s4593_s11, %s4589_s10  ;;  %p45_p13 = scmp.eq.s32.totalorder %s4597_s12, 0 }
  0x1a   : > { %p3916_p0 = scmp.lt.s32.totalorder %s4597_s12, 4  ;;  %s307_s14 = sand.u32 1, %s4593_s11  }
  0x1b   : > { %s4723_s28 = scalar_select %p35_p11, %s4593_s11, %s37_s27  }
  0x1c   : > { %p46_p3 = por %p45_p13, %p44_p12  ;;  %p4727_p5 = por %p226_p2, %p44_p12 }
  0x1d   : > { %6417 = sst [smem:[#allocation17_spill]] %s4723_s28  ;;  %s3816_s17 = sshll.u32 %s4597_s12, 4 }
  0x1e   : > { %s3888_s18 = smul.u32 400, %s307_s14  ;;  %s316_s19 = scalar_lea.hbm %s6376_s0, %s3816_s17 }
  0x1f   : > { %p4736_p7 = pnand %p3916_p0, %p46_p3  ;;  %s317_s24 = sshll.u32 %s316_s19, 4  ;;  %s318_s24 = int_to_ptr.hbm [resolvable:$true] %s317_s24 }
  0x20   : > { %s311_s25 = scalar_lea.vmem [#allocation2], %s3888_s18  ;;  %s308_s27 = scalar_lea.sflag [#allocation3], %s307_s14 }
  0x21   : > { %s319_s26 = sshll.u32 %s311_s25, 4  ;;  %s4465_s28 = sshra.s32 %s318_s24, 4  ;;  %s320_s26 = int_to_ptr.vmem [resolvable:$true] %s319_s26  ;;  %s4466_s28 = int_to_ptr.hbm [resolvable:$true] %s4465_s28 }
  0x22   : > { %s4467_s11 = scalar_lea.hbm %s4466_s28, 400  ;;  %p4469_p9 = pneg %p4736_p7 }
  0x23   : > { %p4468_p2 = scmp.ne.s32.totalorder %s4466_s28, %s4467_s11  ;;  %s4472_s21 = scalar_lea.hbm %s6376_s0, 1600 }
  0x24   : > { %p4473_p12 = scmp.lt.s32.totalorder %s4466_s28, %s6376_s0  ;;  %p4474_p13 = scmp.lt.s32.totalorder %s4472_s21, %s4467_s11 }
  0x25   : > { %p4470_p10 = pnand %p4469_p9, %p4468_p2 }
  0x26   : > { %p4475_p0 = por %p4474_p13, %p4473_p12 }
  0x27   : > { %p4471_p11 = pneg %p4470_p10 }
  0x29   : > { %p4476_p3 = pnand %p4475_p0, %p4471_p11 }
  0x2b   : > { %4479 = shalt.err (!%p4476_p3)
}
  0x2c   : > { %s4602_s14 = smov 1024   ;;  %s4603_s18 = smov 256  }
  0x2d   : > { %s4604_s19 = smov 16   ;;  %340 = sbr.rel (%p4704_p8) target bundleno = 2492 (0x9bc), region = 52 }
  0x2e   : > { %3907 = dma.hbm_to_vmem [thread:$0]  (!%p4736_p7), %s318_s24, 6400, %s320_s26, %s308_s27, %s4602_s14, %s4603_s18, %s4604_s19  }
  0x32   : > { %s4753_s25 = sand.u32 1, %s4589_s10  }
  0x33   : > { %s3889_s16 = smul.u32 400, %s4753_s25  ;;  %s343_s11 = scalar_lea.sflag [#allocation3], %s4753_s25 }
  0x35   : > { %s4757_s23 = scalar_lea.vmem [#allocation2], %s3889_s16 }
  0x36   : > { %4568 = dma.done.wait (%p4691_p4), %s343_s11, 6400  }
  0x37   : > { %4570 = vsyncadd (%p4691_p4), %s343_s11, 4294960896 }
  0x38   : > { %4572 = dma.done.wait (%p51_p1), [#allocation6], 2240  }
  0x39   : > { %4574 = vsyncadd (%p51_p1), [#allocation6], 4294965056  ;;  %v6390_v0 = vmov 0   ;;  %v455_v1 = vld [vmem:[%s4757_s23 + $0xe0] sm:$0xff]  ;;  %v457_v2 = vld [vmem:[%s4757_s23 + $0xf0] sm:$0xff]  ;;  %vm663_vm0 = vcmask 1043456  }
  0x3a   : > { %3963 = vset.pattern.permute.xlu0 %v6390_v0  ;;  %3965 = vset.pattern.permute.xlu2 %v6390_v0  ;;  %v456_v3 = vld [vmem:[%s4757_s23 + $0xe8] sm:$0xff]  ;;  %v491_v4 = vpack.c.bf16 %v457_v2, %v455_v1  ;;  %v458_v5 = vld [vmem:[%s4757_s23 + $0xf8] sm:$0xff]  ;;  %v451_v6 = vld [vmem:[%s4757_s23 + $0xc0] sm:$0xff]  ;;  %vm641_vm1 = vcmask 588800   ;;  %vm1002_vm2 = vcmask 1041408   ;;  %vm980_vm3 = vcmask 818176  }
  0x3b   : > { %3964 = vset.pattern.permute.xlu1 %v6390_v0  ;;  %v453_v7 = vld [vmem:[%s4757_s23 + $0xd0] sm:$0xff]  ;;  %v492_v8 = vpack.c.bf16 %v458_v5, %v456_v3  ;;  %v452_v9 = vld [vmem:[%s4757_s23 + $0xc8] sm:$0xff]  ;;  %v454_v10 = vld [vmem:[%s4757_s23 + $0xd8] sm:$0xff]  ;;  %s5726_s14 = sshll.u32 %s4682_s13, 1  ;;  %vm2366_vm4 = vcmask 1040384   ;;  %vm2353_vm5 = vcmask 408576  }
  0x3c   : > { %v476_v11 = vld [vmem:[%s4757_s23 + $0x188] sm:$0xff]  ;;  %670 = vmatpush.bf16.msra.mxu0 %v491_v4  ;;  %v489_v12 = vpack.c.bf16 %v453_v7, %v451_v6  ;;  %v447_v14 = vld [vmem:[%s4757_s23 + $0xa0] sm:$0xff]  ;;  %v490_v15 = vpack.c.bf16 %v454_v10, %v452_v9  ;;  %v449_v16 = vld [vmem:[%s4757_s23 + $0xb0] sm:$0xff]  ;;  %p399_p1 = scmp.lt.s32.totalorder %s5726_s14, 7  ;;  %vm3161_vm6 = vcmask 1045504   ;;  %s3402_s6 = sshll.u32 %s4753_s25, 1 }
  0x3d   : > { %v502_v13 = vpack.c.bf16 %v476_v11, %v476_v11  ;;  %756 = vmatpush.bf16.msra.mxu2 %v492_v8  ;;  %v472_v17 = vld [vmem:[%s4757_s23 + $0x168] sm:$0xff]  ;;  %v474_v18 = vld [vmem:[%s4757_s23 + $0x178] sm:$0xff]  ;;  %v475_v23 = vld [vmem:[%s4757_s23 + $0x180] sm:$0xff]  ;;  %v487_v24 = vpack.c.bf16 %v449_v16, %v447_v14  ;;  %s3264_s20 = scalar_lea.hbm %s6385_s9, %s5726_s14  ;;  %s3235_s28 = scalar_lea.sflag [#allocation4], %s4753_s25 }
  0x3e   : > { %v448_v20 = vld [vmem:[%s4757_s23 + $0xa8] sm:$0xff]  ;;  %v450_v21 = vld [vmem:[%s4757_s23 + $0xb8] sm:$0xff]  ;;  %v500_v22 = vpack.c.bf16 %v474_v18, %v472_v17  ;;  %v501_v25 = vpack.c.bf16 %v475_v23, %v475_v23  ;;  %v443_v29 = vld [vmem:[%s4757_s23 + $0x80] sm:$0xff]  ;;  %s400_s18 = scalar_select %p399_p1, %s5726_s14, 7 }
  0x3f   : > { %v668_v19 = vsel %vm663_vm0, %v502_v13, 0  ;;  %v468_v26 = vld [vmem:[%s4757_s23 + $0x148] sm:$0xff]  ;;  %v470_v27 = vld [vmem:[%s4757_s23 + $0x158] sm:$0xff]  ;;  %v488_v28 = vpack.c.bf16 %v450_v21, %v448_v20  ;;  %v445_v30 = vld [vmem:[%s4757_s23 + $0x90] sm:$0xff]  ;;  %s4515_s27 = scalar_lea.hbm %s6384_s8, 8 }
  0x40   : > { %802 = vmatpush.bf16.msra.mxu3 %v668_v19  ;;  %671 = vmatpush.bf16.msra.mxu0 %v489_v12  ;;  %v471_v31 = vld [vmem:[%s4757_s23 + $0x160] sm:$0xff]  ;;  %v444_v32 = vld [vmem:[%s4757_s23 + $0x88] sm:$0xff]  ;;  %v446_v33 = vld [vmem:[%s4757_s23 + $0x98] sm:$0xff]  ;;  %v665_v34 = vsel %vm663_vm0, %v501_v25, 0  ;;  %v498_v36 = vpack.c.bf16 %v470_v27, %v468_v26  ;;  %v485_v39 = vpack.c.bf16 %v445_v30, %v443_v29  ;;  %s3405_s13 = sshll.u32 %s400_s18, 1  ;;  %s3250_s18 = scalar_lea.hbm %s6384_s8, %s5726_s14 }
  0x41   : > { %757 = vmatpush.bf16.msra.mxu2 %v490_v15  ;;  %v473_v35 = vld [vmem:[%s4757_s23 + $0x170] sm:$0xff]  ;;  %716 = vmatpush.bf16.msra.mxu1 %v665_v34  ;;  %v464_v38 = vld [vmem:[%s4757_s23 + $0x128] sm:$0xff]  ;;  %v466_v40 = vld [vmem:[%s4757_s23 + $0x138] sm:$0xff]  ;;  %v486_v43 = vpack.c.bf16 %v446_v33, %v444_v32  ;;  %s402_s11 = scalar_lea.vmem %s6377_s1, %s3405_s13  ;;  %s389_s13 = scalar_lea.vmem [#allocation7], %s3402_s6 }
  0x42   : > { %v499_v37 = vpack.c.bf16 %v473_v35, %v471_v31  ;;  %v467_v41 = vld [vmem:[%s4757_s23 + $0x140] sm:$0xff]  ;;  %v469_v42 = vld [vmem:[%s4757_s23 + $0x150] sm:$0xff]  ;;  %v440_v46 = vld [vmem:[%s4757_s23 + $0x68] sm:$0xff]  ;;  %v496_v48 = vpack.c.bf16 %v466_v40, %v464_v38  ;;  %s3252_s19 = sshll.u32 %s389_s13, 4  ;;  %s6318_s16 = sshll.u32 %s3250_s18, 4  ;;  %s3253_s19 = int_to_ptr.vmem [resolvable:$true] %s3252_s19  ;;  %s3255_s16 = int_to_ptr.hbm [resolvable:$true] %s6318_s16 }
  0x43   : > { %v439_v44 = vld [vmem:[%s4757_s23 + $0x60] sm:$0xff]  ;;  %v441_v45 = vld [vmem:[%s4757_s23 + $0x70] sm:$0xff]  ;;  %v442_v47 = vld [vmem:[%s4757_s23 + $0x78] sm:$0xff]  ;;  %v497_v49 = vpack.c.bf16 %v469_v42, %v467_v41  ;;  %s4509_s22 = sshra.s32 %s3255_s16, 4  ;;  %s4510_s22 = int_to_ptr.hbm [resolvable:$true] %s4509_s22 }
  0x44   : > { %803 = vmatpush.bf16.msra.mxu3 %v500_v22  ;;  %672 = vmatpush.bf16.msra.mxu0 %v487_v24  ;;  %v460_v50 = vld [vmem:[%s4757_s23 + $0x108] sm:$0xff]  ;;  %v4808_v51 = vld [vmem:[%s6380_s4 + $0x60] sm:$0xf]  ;;  %v483_v52 = vpack.c.bf16 %v441_v45, %v439_v44  ;;  %v462_v53 = vld [vmem:[%s4757_s23 + $0x118] sm:$0xff]  ;;  %v484_v56 = vpack.c.bf16 %v442_v47, %v440_v46  ;;  %s4511_s24 = scalar_lea.hbm %s4510_s22, 2  ;;  %p4516_p2 = scmp.lt.s32.totalorder %s4510_s22, %s6384_s8 }
  0x45   : > { %758 = vmatpush.bf16.msra.mxu2 %v488_v28  ;;  %717 = vmatpush.bf16.msra.mxu1 %v499_v37  ;;  %6420 = vst [vmem:[#allocation18_spill] sm:$0xff] %v4808_v51  ;;  %v463_v54 = vld [vmem:[%s4757_s23 + $0x120] sm:$0xff]  ;;  %v465_v55 = vld [vmem:[%s4757_s23 + $0x130] sm:$0xff]  ;;  %v436_v59 = vld [vmem:[%s4757_s23 + $0x48] sm:$0xff]  ;;  %v494_v61 = vpack.c.bf16 %v462_v53, %v460_v50  ;;  %p4512_p4 = scmp.ne.s32.totalorder %s4510_s22, %s4511_s24  ;;  %p4517_p9 = scmp.lt.s32.totalorder %s4515_s27, %s4511_s24 }
  0x46   : > { %578 = vperm.xlu0 %3963, %v4808_v51   ;;  %v435_v57 = vld [vmem:[%s4757_s23 + $0x40] sm:$0xff]  ;;  %v437_v58 = vld [vmem:[%s4757_s23 + $0x50] sm:$0xff]  ;;  %v438_v60 = vld [vmem:[%s4757_s23 + $0x58] sm:$0xff]  ;;  %v495_v2 = vpack.c.bf16 %v465_v55, %v463_v54 }
  0x47   : > { %v431_v62 = vld [vmem:[%s4757_s23 + $0x20] sm:$0xff]  ;;  %v3410_v1 = vld [vmem:[%s6378_s2 + $0x8] sm:$0xf0]  ;;  %v481_v3 = vpack.c.bf16 %v437_v58, %v435_v57  ;;  %v433_v4 = vld [vmem:[%s4757_s23 + $0x30] sm:$0xff]  ;;  %v482_v7 = vpack.c.bf16 %v438_v60, %v436_v59  ;;  %p4513_p8 = pnand %p4512_p4, %p4727_p5  ;;  %p4518_p10 = por %p4517_p9, %p4516_p2 }
  0x48   : > { %804 = vmatpush.bf16.msra.mxu3 %v498_v36  ;;  %673 = vmatpush.bf16.msra.mxu0 %v485_v39  ;;  %v3817_v63 = vld [vmem:[%s6378_s2 + $0x4] sm:$0xf]  ;;  %v4831_v8 = vld [vmem:[%s6380_s4 + $0x50] sm:$0xff]  ;;  %v4836_v9 = vld [vmem:[%s6380_s4 + $0x58] sm:$0xff]  ;;  %v479_v15 = vpack.c.bf16 %v433_v4, %v431_v62 }
  0x49   : > { %759 = vmatpush.bf16.msra.mxu2 %v486_v43  ;;  %718 = vmatpush.bf16.msra.mxu1 %v497_v49  ;;  %v459_v5 = vld [vmem:[%s4757_s23 + $0x100] sm:$0xff]  ;;  %v461_v6 = vld [vmem:[%s4757_s23 + $0x110] sm:$0xff]  ;;  %6421 = vst [vmem:[#allocation19_spill] sm:$0xff] %v4831_v8  ;;  %v4841_v10 = vld [vmem:[%s6380_s4 + $0x48] sm:$0xff]  ;;  %v3413_v13 = vor.u32 %v3817_v63, %v3410_v1  ;;  %p4514_p7 = pneg %p4513_p8 }
  0x4a   : > { %v432_v11 = vld [vmem:[%s4757_s23 + $0x28] sm:$0xff]  ;;  %v434_v12 = vld [vmem:[%s4757_s23 + $0x38] sm:$0xff]  ;;  %573 = vperm.xlu1 %3964, %v4836_v9   ;;  %563 = vperm.xlu2 %3965, %v4841_v10   ;;  %v493_v14 = vpack.c.bf16 %v461_v6, %v459_v5  ;;  %v427_v17 = vld [vmem:[%s4757_s23] sm:$0xff] }
  0x4b   : > { %v480_v16 = vpack.c.bf16 %v434_v12, %v432_v11  ;;  %v429_v18 = vld [vmem:[%s4757_s23 + $0x10] sm:$0xff]  ;;  %v428_v19 = vld [vmem:[%s4757_s23 + $0x8] sm:$0xff]  ;;  %v430_v20 = vld [vmem:[%s4757_s23 + $0x18] sm:$0xff]  ;;  %p4519_p11 = pnand %p4518_p10, %p4514_p7 }
  0x4c   : > { %805 = vmatpush.bf16.msra.mxu3 %v496_v48  ;;  %674 = vmatpush.bf16.msra.mxu0 %v483_v52  ;;  %v4856_v21 = vld [vmem:[%s6380_s4 + $0x40] sm:$0xff]  ;;  %v477_v22 = vpack.c.bf16 %v429_v18, %v427_v17  ;;  %v3818_v24 = vld [vmem:[%s6378_s2 + $0x4] sm:$0xf0]  ;;  %v4867_v25 = vld [vmem:[%s6380_s4 + $0x30] sm:$0xff]  ;;  %v478_v26 = vpack.c.bf16 %v430_v20, %v428_v19 }
  0x4d   : > { %760 = vmatpush.bf16.msra.mxu2 %v484_v56  ;;  %719 = vmatpush.bf16.msra.mxu1 %v495_v2  ;;  %v3408_v23 = vld [vmem:[%s6378_s2] sm:$0xf]  ;;  %v4872_v27 = vld [vmem:[%s6380_s4 + $0x38] sm:$0xff]  ;;  %v3819_v29 = vld [vmem:[%s6378_s2 + $0x14] sm:$0xf] }
  0x4e   : > { %568 = vperm.xlu0 %3963, %v4831_v8   ;;  %v3409_v28 = vor.u32 %v3818_v24, %v3408_v23  ;;  %v3418_v30 = vld [vmem:[%s6378_s2 + $0x18] sm:$0xf0]  ;;  %v4887_v31 = vld [vmem:[%s6380_s4 + $0x28] sm:$0xff]  ;;  %v4892_v32 = vld [vmem:[%s6380_s4 + $0x20] sm:$0xff] }
  0x4f   : > { %6422 = vst [vmem:[#allocation20_spill] sm:$0xff] %v4887_v31  ;;  %v4897_v33 = vld [vmem:[%s6380_s4 + $0x10] sm:$0xff]  ;;  %v3421_v34 = vor.u32 %v3819_v29, %v3418_v30  ;;  %v4906_v35 = vld [vmem:[%s6380_s4 + $0x18] sm:$0xff]  ;;  %v4917_v38 = vld [vmem:[%s6380_s4] sm:$0xff] }
  0x50   : > { %806 = vmatpush.bf16.msra.mxu3 %v494_v61  ;;  %675 = vmatpush.bf16.msra.mxu0 %v481_v3  ;;  %6423 = vst [vmem:[#allocation21_spill] sm:$0xff] %v4897_v33  ;;  %v3416_v36 = vld [vmem:[%s6378_s2 + $0x10] sm:$0xf]  ;;  %v3820_v37 = vld [vmem:[%s6378_s2 + $0x14] sm:$0xf0]  ;;  %v4922_v39 = vld [vmem:[%s6380_s4 + $0x8] sm:$0xff] }
  0x51   : > { %761 = vmatpush.bf16.msra.mxu2 %v482_v7  ;;  %720 = vmatpush.bf16.msra.mxu1 %v493_v14  ;;  %6424 = vst [vmem:[#allocation22_spill] sm:$0xff] %v4917_v38  ;;  %v3417_v40 = vor.u32 %v3820_v37, %v3416_v36  ;;  %v3821_v41 = vld [vmem:[%s6378_s2 + $0x24] sm:$0xf]  ;;  %v3426_v42 = vld [vmem:[%s6378_s2 + $0x28] sm:$0xf0] }
  0x52   : > { %558 = vperm.xlu1 %3964, %v4856_v21   ;;  %548 = vperm.xlu2 %3965, %v4867_v25   ;;  %6425 = vst [vmem:[#allocation23_spill] sm:$0xff] %v4922_v39  ;;  %v3429_v43 = vor.u32 %v3821_v41, %v3426_v42  ;;  %v3424_v44 = vld [vmem:[%s6378_s2 + $0x20] sm:$0xf]  ;;  %v3822_v45 = vld [vmem:[%s6378_s2 + $0x24] sm:$0xf0] }
  0x53   : > { %3461 = vmatmul.msk.bf16.vlgmr.msra.gmra.mxu3 %vm641_vm1, %v3413_v13  ;;  %v3425_v46 = vor.u32 %v3822_v45, %v3424_v44  ;;  %v3823_v47 = vld [vmem:[%s6378_s2 + $0x34] sm:$0xf]  ;;  %v3434_v48 = vld [vmem:[%s6378_s2 + $0x38] sm:$0xf0]  ;;  %v3432_v50 = vld [vmem:[%s6378_s2 + $0x30] sm:$0xf] }
  0x54   : > { %676 = vmatpush.bf16.msra.mxu0 %v479_v15  ;;  %3454 = vmatmul.msk.bf16.vlgmr.msra.gmra.mxu1 %vm641_vm1, %v3413_v13  ;;  %v3437_v49 = vor.u32 %v3823_v47, %v3434_v48  ;;  %v3824_v52 = vld [vmem:[%s6378_s2 + $0x34] sm:$0xf0]  ;;  %v3825_v54 = vld [vmem:[%s6378_s2 + $0x44] sm:$0xf]  ;;  %v3442_v55 = vld [vmem:[%s6378_s2 + $0x48] sm:$0xf0] }
  0x55   : > { %762 = vmatpush.bf16.msra.mxu2 %v480_v16  ;;  %v3433_v53 = vor.u32 %v3824_v52, %v3432_v50  ;;  %v3445_v56 = vor.u32 %v3825_v54, %v3442_v55  ;;  %v3440_v57 = vld [vmem:[%s6378_s2 + $0x40] sm:$0xf]  ;;  %v3826_v58 = vld [vmem:[%s6378_s2 + $0x44] sm:$0xf0]  ;;  %v3827_v60 = vld [vmem:[%s6378_s2 + $0x54] sm:$0xf] }
  0x56   : > { %553 = vperm.xlu0 %3963, %v4872_v27   ;;  %v3441_v59 = vor.u32 %v3826_v58, %v3440_v57  ;;  %v3450_v61 = vld [vmem:[%s6378_s2 + $0x58] sm:$0xf0]  ;;  %v3448_v63 = vld [vmem:[%s6378_s2 + $0x50] sm:$0xf]  ;;  %v3828_v1 = vld [vmem:[%s6378_s2 + $0x54] sm:$0xf0] }
  0x57   : > { %v3453_v62 = vor.u32 %v3827_v60, %v3450_v61  ;;  %v3449_v2 = vor.u32 %v3828_v1, %v3448_v63  ;;  %v515_v3 = vld [vmem:[%s6378_s2 + $0x60] sm:$0x33] }
  0x58   : > { %677 = vmatpush.bf16.msra.mxu0 %v477_v22  ;;  %v619_v4 = vunpack.c.h.b16 %v515_v3  ;;  %v618_v6 = vunpack.c.l.b16 %v515_v3 }
  0x59   : > { %763 = vmatpush.bf16.msra.mxu2 %v478_v26 }
  0x5a   : > { %538 = vperm.xlu1 %3964, %v4892_v32   ;;  %543 = vperm.xlu2 %3965, %v4887_v31   ;;  %v633_v5 = vpack.c.b16 %v619_v4, %v619_v4  ;;  %v632_v7 = vpack.c.b16 %v618_v6, %v618_v6 }
  0x5b   : > { %678 = vmatmul.bf16.vlgmr.msra.gmra.mxu0 %v3409_v28 }
  0x5c   : > { %764 = vmatmul.bf16.vlgmr.msra.gmra.mxu2 %v3409_v28 }
  0x5e   : > { %528 = vperm.xlu0 %3963, %v4897_v33  }
  0x62   : > { %533 = vperm.xlu1 %3964, %v4906_v35   ;;  %518 = vperm.xlu2 %3965, %v4917_v38  }
  0x63   : > { %3462 = vmatmul.msk.bf16.gmra.mxu3 %vm641_vm1, %v3421_v34 }
  0x64   : > { %3455 = vmatmul.msk.bf16.gmra.mxu1 %vm641_vm1, %v3421_v34 }
  0x66   : > { %523 = vperm.xlu0 %3963, %v4922_v39  }
  0x6b   : > { %683 = vmatmul.bf16.gmra.mxu0 %v3417_v40 }
  0x6c   : > { %769 = vmatmul.bf16.gmra.mxu2 %v3417_v40 }
  0x73   : > { %3463 = vmatmul.msk.bf16.gmra.mxu3 %vm641_vm1, %v3429_v43 }
  0x74   : > { %3456 = vmatmul.msk.bf16.gmra.mxu1 %vm641_vm1, %v3429_v43 }
  0x7b   : > { %688 = vmatmul.bf16.gmra.mxu0 %v3425_v46 }
  0x7c   : > { %774 = vmatmul.bf16.gmra.mxu2 %v3425_v46 }
  0x83   : > { %3464 = vmatmul.msk.bf16.gmra.mxu3 %vm641_vm1, %v3437_v49 }
  0x84   : > { %3457 = vmatmul.msk.bf16.gmra.mxu1 %vm641_vm1, %v3437_v49 }
  0x8b   : > { %693 = vmatmul.bf16.gmra.mxu0 %v3433_v53 }
  0x8c   : > { %779 = vmatmul.bf16.gmra.mxu2 %v3433_v53 }
  0x93   : > { %3465 = vmatmul.msk.bf16.gmra.mxu3 %vm641_vm1, %v3445_v56 }
  0x94   : > { %3458 = vmatmul.msk.bf16.gmra.mxu1 %vm641_vm1, %v3445_v56 }
  0x9b   : > { %698 = vmatmul.bf16.gmra.mxu0 %v3441_v59 }
  0x9c   : > { %784 = vmatmul.bf16.gmra.mxu2 %v3441_v59 }
  0xa3   : > { %3466 = vmatmul.msk.bf16.gmra.mxu3 %vm641_vm1, %v3453_v62 }
  0xa4   : > { %3459 = vmatmul.msk.bf16.gmra.mxu1 %vm641_vm1, %v3453_v62  ;;  %v4989_v11 = vpop.permute.xlu2 %563 }
  0xab   : > { %703 = vmatmul.bf16.gmra.mxu0 %v3449_v2 }
  0xac   : > { %789 = vmatmul.bf16.gmra.mxu2 %v3449_v2  ;;  %v4991_v12 = vpop.permute.xlu2 %548 }
  0xb3   : > { %3467 = vmatmul.msk.bf16.gmra.mxu3 %vm641_vm1, %v633_v5 }
  0xb4   : > { %3460 = vmatmul.msk.bf16.gmra.mxu1 %vm641_vm1, %v633_v5  ;;  %v4995_v14 = vpop.permute.xlu2 %543 }
  0xb8   : > { %v4993_v13 = vpop.permute.xlu0 %578 }
  0xbb   : > { %708 = vmatmul.bf16.gmra.mxu0 %v632_v7 }
  0xbc   : > { %794 = vmatmul.bf16.gmra.mxu2 %v632_v7  ;;  %v519_v19 = vpop.permute.xlu2 %518  ;;  %v5011_v37 = vpop.permute.xlu1 %573 }
  0xc0   : > { %v4997_v16 = vpop.permute.xlu0 %568 }
  0xc4   : > { %v5021_v48 = vpop.permute.xlu1 %558 }
  0xc8   : > { %v5005_v26 = vpop.permute.xlu0 %553 }
  0xcc   : > { %v539_v57 = vpop.permute.xlu1 %538 }
  0xd0   : > { %v529_v42 = vpop.permute.xlu0 %528 }
  0xd1   : > { %v722_v15 = vpop.f32.mrf.mxu1 }
  0xd6   : > { %v808_v17 = vpop.f32.mrf.mxu3 }
  0xd8   : > { %v679_v18 = vpop.f32.mrf.mxu0 }
  0xd9   : > { %v680_v20 = vadd.f32 %v679_v18, %v519_v19  ;;  %v5001_v23 = vpop.f32.mrf.mxu1 }
  0xda   : > { %6427 = vst [vmem:[#allocation25_spill] sm:$0xff] %v5001_v23 }
  0xdb   : > { %v4999_v22 = vadd.f32 %v722_v15, %v680_v20 }
  0xdd   : > { %6426 = vst [vmem:[#allocation24_spill] sm:$0xff] %v4999_v22 }
  0xde   : > { %v5003_v24 = vpop.f32.mrf.mxu3 }
  0xdf   : > { %6428 = vst [vmem:[#allocation26_spill] sm:$0xff] %v5003_v24  ;;  %v765_v28 = vpop.f32.mrf.mxu2  ;;  %v6402_v24 = vmov 1  }
  0xe0   : > { %v766_v29 = vadd.f32 %v765_v28, %v519_v19  ;;  %v5007_v30 = vpop.f32.mrf.mxu0  ;;  %3966 = vset.pattern.permute.xlu1 %v6402_v24  ;;  %3967 = vset.pattern.permute.xlu2 %v6402_v24 }
  0xe1   : > { %v727_v36 = vpop.f32.mrf.mxu1  ;;  %944 = vperm.xlu1 %3966, %v4808_v51   ;;  %936 = vperm.xlu2 %3967, %v4831_v8  }
  0xe2   : > { %v5009_v34 = vadd.f32 %v808_v17, %v766_v29  ;;  %3968 = vset.pattern.permute.xlu0 %v6402_v24 }
  0xe3   : > { %940 = vperm.xlu0 %3968, %v4836_v9  }
  0xe4   : > { %6429 = vst [vmem:[#allocation27_spill] sm:$0xff] %v5009_v34 }
  0xe6   : > { %v813_v40 = vpop.f32.mrf.mxu3 }
  0xe7   : > { %v5013_v41 = vpop.f32.mrf.mxu2 }
  0xe8   : > { %6430 = vst [vmem:[#allocation28_spill] sm:$0xff] %v5013_v41  ;;  %v684_v43 = vpop.f32.mrf.mxu0 }
  0xe9   : > { %v685_v44 = vadd.f32 %v684_v43, %v529_v42  ;;  %v5017_v46 = vpop.f32.mrf.mxu1  ;;  %928 = vperm.xlu1 %3966, %v4856_v21   ;;  %932 = vperm.xlu2 %3967, %v4841_v10  }
  0xeb   : > { %v5015_v45 = vadd.f32 %v727_v36, %v685_v44  ;;  %912 = vperm.xlu0 %3968, %v4892_v32  }
  0xee   : > { %v5019_v47 = vpop.f32.mrf.mxu3 }
  0xef   : > { %6431 = vst [vmem:[#allocation29_spill] sm:$0xff] %v5019_v47  ;;  %v770_v49 = vpop.f32.mrf.mxu2 }
  0xf0   : > { %v771_v50 = vadd.f32 %v770_v49, %v529_v42  ;;  %v5023_v52 = vpop.f32.mrf.mxu0 }
  0xf1   : > { %v732_v54 = vpop.f32.mrf.mxu1  ;;  %920 = vperm.xlu1 %3966, %v4867_v25   ;;  %924 = vperm.xlu2 %3967, %v4872_v27  }
  0xf2   : > { %v5025_v53 = vadd.f32 %v813_v40, %v771_v50 }
  0xf3   : > { %908 = vperm.xlu0 %3968, %v4906_v35  }
  0xf4   : > { %6432 = vst [vmem:[#allocation30_spill] sm:$0xff] %v5025_v53 }
  0xf6   : > { %v818_v55 = vpop.f32.mrf.mxu3 }
  0xf7   : > { %v5027_v56 = vpop.f32.mrf.mxu2 }
  0xf8   : > { %v689_v58 = vpop.f32.mrf.mxu0 }
  0xf9   : > { %v690_v59 = vadd.f32 %v689_v58, %v539_v57  ;;  %v5031_v61 = vpop.f32.mrf.mxu1 }
  0xfb   : > { %v5029_v60 = vadd.f32 %v732_v54, %v690_v59 }
  0xfe   : > { %v5033_v62 = vpop.f32.mrf.mxu3 }
  0xff   : > { %v775_v63 = vpop.f32.mrf.mxu2 }
 0x100   : > { %v776_v1 = vadd.f32 %v775_v63, %v539_v57  ;;  %v5035_v2 = vpop.f32.mrf.mxu0 }
 0x101   : > { %v737_v4 = vpop.f32.mrf.mxu1 }
 0x102   : > { %v5037_v3 = vadd.f32 %v818_v55, %v776_v1 }
 0x104   : > { %6433 = vst [vmem:[#allocation31_spill] sm:$0xff] %v5037_v3 }
 0x106   : > { %v5039_v5 = vpop.f32.mrf.mxu3 }
 0x107   : > { %v5041_v6 = vpop.f32.mrf.mxu2 }
 0x108   : > { %v694_v7 = vpop.f32.mrf.mxu0 }
 0x109   : > { %v5043_v15 = vpop.f32.mrf.mxu1 }
 0x10e   : > { %v5045_v17 = vpop.f32.mrf.mxu3 }
 0x10f   : > { %v5047_v18 = vpop.f32.mrf.mxu2 }
 0x110   : > { %v696_v19 = vpop.f32.mrf.mxu0 }
 0x111   : > { %v742_v20 = vpop.f32.mrf.mxu1  ;;  %v697_v24 = vadd.f32 %v696_v19, %v5005_v26 }
 0x116   : > { %v5049_v28 = vpop.f32.mrf.mxu3 }
 0x117   : > { %v5051_v29 = vpop.f32.mrf.mxu2 }
 0x118   : > { %v699_v36 = vpop.f32.mrf.mxu0 }
 0x119   : > { %v744_v40 = vpop.f32.mrf.mxu1  ;;  %v700_v47 = vadd.f32 %v699_v36, %v5021_v48 }
 0x11b   : > { %v743_v23 = vadd.f32 %v742_v20, %v700_v47  ;;  %v781_v20 = vadd.f32 %v5047_v18, %v4991_v12 }
 0x11e   : > { %v5053_v42 = vpop.f32.mrf.mxu3 }
 0x11f   : > { %v785_v43 = vpop.f32.mrf.mxu2 }
 0x120   : > { %v701_v44 = vpop.f32.mrf.mxu0 }
 0x121   : > { %v747_v49 = vpop.f32.mrf.mxu1 }
 0x126   : > { %v833_v50 = vpop.f32.mrf.mxu3 }
 0x127   : > { %v787_v54 = vpop.f32.mrf.mxu2 }
 0x128   : > { %v704_v55 = vpop.f32.mrf.mxu0 }
 0x129   : > { %v749_v57 = vpop.f32.mrf.mxu1  ;;  %v705_v34 = vadd.f32 %v704_v55, %v4997_v16  ;;  %v702_v55 = vadd.f32 %v701_v44, %v4989_v11 }
 0x12b   : > { %v748_v41 = vadd.f32 %v747_v49, %v705_v34  ;;  %v745_v51 = vadd.f32 %v744_v40, %v702_v55  ;;  %v6436_v55 = vld [vmem:[#allocation21_spill] sm:$0xff] }
 0x12c   : > { %904 = vperm.xlu2 %3967, %v6436_v55  }
 0x12e   : > { %v835_v58 = vpop.f32.mrf.mxu3 }
 0x12f   : > { %v790_v59 = vpop.f32.mrf.mxu2 }
 0x130   : > { %v706_v63 = vpop.f32.mrf.mxu0 }
 0x131   : > { %v752_v1 = vpop.f32.mrf.mxu1  ;;  %v707_v38 = vadd.f32 %v706_v63, %v5011_v37 }
 0x133   : > { %v750_v33 = vadd.f32 %v749_v57, %v707_v38 }
 0x136   : > { %v838_v0 = vpop.f32.mrf.mxu3 }
 0x137   : > { %v792_v39 = vpop.f32.mrf.mxu2 }
 0x138   : > { %v709_v53 = vpop.f32.mrf.mxu0  ;;  %v793_v8 = vadd.f32 %v792_v39, %v5011_v37  ;;  %v788_v39 = vadd.f32 %v787_v54, %v4989_v11  ;;  %v534_v11 = vpop.permute.xlu1 %533 }
 0x139   : > { %v710_v3 = vadd.f32 %v709_v53, %v4993_v13  ;;  %v754_v22 = vpop.f32.mrf.mxu1  ;;  %v695_v53 = vadd.f32 %v694_v7, %v4991_v12 }
 0x13a   : > { %v791_v22 = vadd.f32 %v790_v59, %v4997_v16  ;;  %v836_v37 = vadd.f32 %v835_v58, %v793_v8  ;;  %v783_v8 = vadd.f32 %v5051_v29, %v5005_v26  ;;  %v831_v7 = vadd.f32 %v5053_v42, %v788_v39  ;;  %v524_v29 = vpop.permute.xlu0 %523 }
 0x13b   : > { %v753_v63 = vadd.f32 %v752_v1, %v710_v3  ;;  %v6435_v1 = vld [vmem:[#allocation20_spill] sm:$0xff] }
 0x13c   : > { %916 = vperm.xlu1 %3966, %v6435_v1  }
 0x13d   : > { %4009 = vtanh.f32 %v753_v63  ;;  %v6437_v63 = vld [vmem:[#allocation24_spill] sm:$0xff] }
 0x13e   : > { %v840_v31 = vpop.f32.mrf.mxu3  ;;  %4011 = vtanh.f32 %v748_v41 }
 0x13f   : > { %v795_v36 = vpop.f32.mrf.mxu2  ;;  %4013 = vtanh.f32 %v750_v33  ;;  %v738_v31 = vadd.f32 %v737_v4, %v695_v53  ;;  %v692_v33 = vadd.f32 %v5035_v2, %v4995_v14  ;;  %v786_v4 = vadd.f32 %v785_v43, %v5021_v48 }
 0x140   : > { %v796_v34 = vadd.f32 %v795_v36, %v4993_v13  ;;  %v711_v3 = vpop.f32.mrf.mxu0  ;;  %4015 = vtanh.f32 %v743_v23  ;;  %v740_v13 = vadd.f32 %v5043_v15, %v697_v24  ;;  %v834_v23 = vadd.f32 %v833_v50, %v791_v22  ;;  %v6439_v36 = vld [vmem:[#allocation29_spill] sm:$0xff] }
 0x141   : > { %4017 = vtanh.f32 %v745_v51  ;;  %v687_v15 = vadd.f32 %v5023_v52, %v534_v11  ;;  %v735_v19 = vadd.f32 %v5031_v61, %v692_v33  ;;  %v829_v40 = vadd.f32 %v5049_v28, %v786_v4  ;;  %v6441_v33 = vld [vmem:[#allocation26_spill] sm:$0xff] }
 0x142   : > { %v839_v38 = vadd.f32 %v838_v0, %v796_v34  ;;  %v778_v52 = vadd.f32 %v5041_v6, %v4995_v14  ;;  %v826_v61 = vadd.f32 %v5045_v17, %v783_v8  ;;  %v682_v28 = vadd.f32 %v5007_v30, %v524_v29 }
 0x143   : > { %v4010_v47 = vpop.eup %4009  ;;  %v730_v42 = vadd.f32 %v5017_v46, %v687_v15  ;;  %v773_v50 = vadd.f32 %v5027_v56, %v534_v11  ;;  %v6434_v46 = vld [vmem:[#allocation25_spill] sm:$0xff]  ;;  %v6444_v11 = vld [vmem:[#allocation23_spill] sm:$0xff] }
 0x144   : > { %4019 = vtanh.f32 %v839_v38  ;;  %v880_v16 = vpack.c.bf16 %v4010_v47, %v4010_v47  ;;  %v4012_v41 = vpop.eup %4011  ;;  %v821_v54 = vadd.f32 %v5033_v62, %v778_v52  ;;  %v725_v57 = vadd.f32 %v6434_v46, %v682_v28  ;;  %v6438_v62 = vld [vmem:[#allocation28_spill] sm:$0xff]  ;;  %v6440_v38 = vld [vmem:[#allocation31_spill] sm:$0xff]  ;;  %900 = vperm.xlu2 %3967, %v6444_v11  }
 0x145   : > { %v4014_v0 = vpop.eup %4013  ;;  %4021 = vtanh.f32 %v738_v31  ;;  %v768_v53 = vadd.f32 %v6438_v62, %v524_v29  ;;  %v816_v34 = vadd.f32 %v6439_v36, %v773_v50  ;;  %v6445_v15 = vld [vmem:[#allocation27_spill] sm:$0xff]  ;;  %v3830_v52 = vld [vmem:[%s6379_s3 + $0x8] sm:$0xff] }
 0x146   : > { %v1004_v51 = vsel %vm1002_vm2, %v880_v16, 0  ;;  %4023 = vtanh.f32 %v836_v37  ;;  %v4016_v24 = vpop.eup %4015  ;;  %v878_v43 = vpack.c.bf16 %v4014_v0, %v4012_v41  ;;  %v3834_v28 = vld [vmem:[%s6379_s3 + $0x28] sm:$0xff] }
 0x147   : > { %v797_v2 = vpop.f32.mrf.mxu2  ;;  %1010 = vmatpush.bf16.msrb.mxu1 %v1004_v51  ;;  %4025 = vtanh.f32 %v740_v13  ;;  %v4018_v48 = vpop.eup %4017  ;;  %v811_v13 = vadd.f32 %v6441_v33, %v768_v53  ;;  %v6443_v51 = vld [vmem:[#allocation22_spill] sm:$0xff] }
 0x148   : > { %4027 = vtanh.f32 %v834_v23  ;;  %v876_v14 = vpack.c.bf16 %v4018_v48, %v4016_v24  ;;  %v6442_v23 = vld [vmem:[#allocation30_spill] sm:$0xff]  ;;  %896 = vperm.xlu1 %3966, %v6443_v51   ;;  %v3829_v48 = vld [vmem:[%s6379_s3] sm:$0xff] }
 0x149   : > { %4029 = vtanh.f32 %v5029_v60  ;;  %v824_v60 = vadd.f32 %v5039_v5, %v781_v20 }
 0x14a   : > { %v4020_v26 = vpop.eup %4019  ;;  %4031 = vtanh.f32 %v831_v7 }
 0x14b   : > { %1011 = vmatpush.bf16.msrb.mxu1 %v878_v43  ;;  %v881_v12 = vpack.c.bf16 %v4020_v26, %v4020_v26  ;;  %v4022_v18 = vpop.eup %4021  ;;  %4033 = vtanh.f32 %v735_v19 }
 0x14c   : > { %v4024_v44 = vpop.eup %4023  ;;  %4035 = vtanh.f32 %v829_v40 }
 0x14d   : > { %v1007_v49 = vsel %vm1002_vm2, %v881_v12, 0  ;;  %v4026_v6 = vpop.eup %4025  ;;  %4037 = vtanh.f32 %v5015_v45  ;;  %v3832_v12 = vld [vmem:[%s6379_s3 + $0x18] sm:$0xff] }
 0x14e   : > { %1053 = vmatpush.bf16.msrb.mxu3 %v1007_v49  ;;  %v4028_v17 = vpop.eup %4027  ;;  %4039 = vtanh.f32 %v826_v61  ;;  %v874_v59 = vpack.c.bf16 %v4026_v6, %v4022_v18  ;;  %v3831_v61 = vld [vmem:[%s6379_s3 + $0x10] sm:$0xff]  ;;  %v3833_v18 = vld [vmem:[%s6379_s3 + $0x20] sm:$0xff] }
 0x14f   : > { %1012 = vmatpush.bf16.msrb.mxu1 %v876_v14  ;;  %v4030_v30 = vpop.eup %4029  ;;  %4041 = vtanh.f32 %v730_v42  ;;  %v879_v5 = vpack.c.bf16 %v4024_v44, %v4028_v17  ;;  %v894_v42 = vld [vmem:[%s6379_s3 + $0x30] sm:$0x3] }
 0x150   : > { %v4032_v58 = vpop.eup %4031  ;;  %4043 = vtanh.f32 %v824_v60  ;;  %v972_v44 = vunpack.c.l.b16 %v894_v42  ;;  %v6447_v42 = vld [vmem:[#allocation19_spill] sm:$0xff] }
 0x151   : > { %v4034_v45 = vpop.eup %4033  ;;  %4045 = vtanh.f32 %v6437_v63 }
 0x152   : > { %1054 = vmatpush.bf16.msrb.mxu3 %v879_v5  ;;  %v4036_v56 = vpop.eup %4035  ;;  %4047 = vtanh.f32 %v821_v54  ;;  %v872_v47 = vpack.c.bf16 %v4034_v45, %v4030_v30  ;;  %v979_v60 = vpack.c.b16 %v972_v44, %v972_v44 }
 0x153   : > { %1013 = vmatpush.bf16.msrb.mxu1 %v874_v59  ;;  %v4038_v3 = vpop.eup %4037  ;;  %4049 = vtanh.f32 %v725_v57  ;;  %v877_v22 = vpack.c.bf16 %v4032_v58, %v4036_v56 }
 0x154   : > { %v4040_v31 = vpop.eup %4039  ;;  %4051 = vtanh.f32 %v6440_v38 }
 0x155   : > { %v4042_v39 = vpop.eup %4041  ;;  %4053 = vtanh.f32 %v816_v34  ;;  %v945_v34 = vpop.permute.xlu1 %944 }
 0x156   : > { %1055 = vmatpush.bf16.msrb.mxu3 %v877_v22  ;;  %v4044_v37 = vpop.eup %4043  ;;  %4055 = vtanh.f32 %v6442_v23  ;;  %v870_v0 = vpack.c.bf16 %v4042_v39, %v4038_v3  ;;  %v937_v3 = vpop.permute.xlu2 %936 }
 0x157   : > { %1014 = vmatpush.bf16.msrb.mxu1 %v872_v47  ;;  %v4046_v16 = vpop.eup %4045  ;;  %v875_v41 = vpack.c.bf16 %v4040_v31, %v4044_v37  ;;  %4057 = vtanh.f32 %v811_v13  ;;  %v941_v33 = vpop.permute.xlu0 %940 }
 0x158   : > { %v4048_v4 = vpop.eup %4047  ;;  %4059 = vtanh.f32 %v6445_v15 }
 0x159   : > { %v4050_v8 = vpop.eup %4049 }
 0x15a   : > { %1056 = vmatpush.bf16.msrb.mxu3 %v875_v41  ;;  %v4052_v7 = vpop.eup %4051  ;;  %v868_v19 = vpack.c.bf16 %v4050_v8, %v4046_v16 }
 0x15b   : > { %1015 = vmatpush.bf16.msrb.mxu1 %v870_v0  ;;  %v873_v2 = vpack.c.bf16 %v4048_v4, %v4052_v7  ;;  %v4054_v24 = vpop.eup %4053 }
 0x15c   : > { %v4056_v20 = vpop.eup %4055 }
 0x15d   : > { %v871_v40 = vpack.c.bf16 %v4054_v24, %v4056_v20  ;;  %v4058_v43 = vpop.eup %4057  ;;  %v5175_v38 = vpop.permute.xlu1 %928 }
 0x15e   : > { %1057 = vmatpush.bf16.msrb.mxu3 %v873_v2  ;;  %v4060_v26 = vpop.eup %4059  ;;  %v933_v39 = vpop.permute.xlu2 %932 }
 0x15f   : > { %1016 = vmatpush.bf16.msrb.mxu1 %v868_v19  ;;  %v869_v29 = vpack.c.bf16 %v4058_v43, %v4060_v26  ;;  %v5182_v15 = vpop.permute.xlu0 %912 }
 0x162   : > { %1058 = vmatpush.bf16.msrb.mxu3 %v871_v40  ;;  %3492 = vmatmul.msk.bf16.vlgmr.msrb.gmra.mxu1 %vm980_vm3, %v3829_v48 }
 0x165   : > { %v5177_v41 = vpop.permute.xlu1 %920 }
 0x166   : > { %1059 = vmatpush.bf16.msrb.mxu3 %v869_v29  ;;  %v5179_v0 = vpop.permute.xlu2 %924 }
 0x169   : > { %3499 = vmatmul.msk.bf16.vlgmr.msrb.gmra.mxu3 %vm980_vm3, %v3829_v48 }
 0x172   : > { %3493 = vmatmul.msk.bf16.gmra.mxu1 %vm980_vm3, %v3830_v52 }
 0x179   : > { %3500 = vmatmul.msk.bf16.gmra.mxu3 %vm980_vm3, %v3830_v52 }
 0x182   : > { %3494 = vmatmul.msk.bf16.gmra.mxu1 %vm980_vm3, %v3831_v61 }
 0x189   : > { %3501 = vmatmul.msk.bf16.gmra.mxu3 %vm980_vm3, %v3831_v61  ;;  %v5188_v61 = vpop.permute.xlu2 %904 }
 0x192   : > { %3495 = vmatmul.msk.bf16.gmra.mxu1 %vm980_vm3, %v3832_v12 }
 0x199   : > { %3502 = vmatmul.msk.bf16.gmra.mxu3 %vm980_vm3, %v3832_v12  ;;  %v4607_v12 = vmov 2  }
 0x19a   : > { %3969 = vset.pattern.permute.xlu0 %v4607_v12  ;;  %3970 = vset.pattern.permute.xlu1 %v4607_v12 }
 0x19b   : > { %1190 = vperm.xlu1 %3970, %v6447_v42   ;;  %3971 = vset.pattern.permute.xlu2 %v4607_v12 }
 0x19c   : > { %1194 = vperm.xlu2 %3971, %v4836_v9  }
 0x1a2   : > { %3496 = vmatmul.msk.bf16.gmra.mxu1 %vm980_vm3, %v3833_v18 }
 0x1a3   : > { %1182 = vperm.xlu1 %3970, %v4856_v21  }
 0x1a4   : > { %1186 = vperm.xlu2 %3971, %v4841_v10  }
 0x1a9   : > { %3503 = vmatmul.msk.bf16.gmra.mxu3 %vm980_vm3, %v3833_v18 }
 0x1ab   : > { %1178 = vperm.xlu1 %3970, %v4872_v27  }
 0x1ac   : > { %1166 = vperm.xlu2 %3971, %v4892_v32  }
 0x1ae   : > { %v5184_v40 = vpop.permute.xlu1 %916 }
 0x1b2   : > { %3497 = vmatmul.msk.bf16.gmra.mxu1 %vm980_vm3, %v3834_v28 }
 0x1b3   : > { %1158 = vperm.xlu1 %3970, %v6436_v55  }
 0x1b4   : > { %1162 = vperm.xlu2 %3971, %v4906_v35   ;;  %v3836_v35 = vld [vmem:[%s6379_s3 + $0x3c] sm:$0xff] }
 0x1b9   : > { %3504 = vmatmul.msk.bf16.gmra.mxu3 %vm980_vm3, %v3834_v28  ;;  %v6446_v28 = vld [vmem:[#allocation18_spill] sm:$0xff] }
 0x1ba   : > { %1198 = vperm.xlu0 %3969, %v6446_v28  }
 0x1bb   : > { %1154 = vperm.xlu1 %3970, %v6444_v11   ;;  %v3838_v11 = vld [vmem:[%s6379_s3 + $0x4c] sm:$0xff] }
 0x1c2   : > { %3498 = vmatmul.msk.bf16.gmra.mxu1 %vm980_vm3, %v979_v60  ;;  %1174 = vperm.xlu0 %3969, %v4867_v25  }
 0x1c9   : > { %3505 = vmatmul.msk.bf16.gmra.mxu3 %vm980_vm3, %v979_v60 }
 0x1ca   : > { %1170 = vperm.xlu0 %3969, %v6435_v1  }
 0x1d2   : > { %1150 = vperm.xlu0 %3969, %v6443_v51  }
 0x1df   : > { %v5149_v49 = vpop.f32.mrf.mxu1 }
 0x1e7   : > { %v5151_v14 = vpop.f32.mrf.mxu1 }
 0x1ec   : > { %v5153_v6 = vpop.f32.mrf.mxu3 }
 0x1ef   : > { %v5155_v17 = vpop.f32.mrf.mxu1 }
 0x1f4   : > { %v5157_v50 = vpop.f32.mrf.mxu3 }
 0x1f7   : > { %v5159_v54 = vpop.f32.mrf.mxu1 }
 0x1fc   : > { %v5161_v30 = vpop.f32.mrf.mxu3 }
 0x1fd   : > { %v1067_v27 = vadd.f32 %v5161_v30, %v5188_v61 }
 0x1ff   : > { %v1028_v46 = vpop.f32.mrf.mxu1 }
 0x200   : > { %v1029_v44 = vadd.f32 %v1028_v46, %v5182_v15  ;;  %v909_v46 = vpop.permute.xlu0 %908 }
 0x204   : > { %v5163_v57 = vpop.f32.mrf.mxu3 }
 0x207   : > { %v1030_v5 = vpop.f32.mrf.mxu1 }
 0x20c   : > { %v5165_v58 = vpop.f32.mrf.mxu3 }
 0x20f   : > { %v1033_v59 = vpop.f32.mrf.mxu1 }
 0x210   : > { %v1034_v43 = vadd.f32 %v1033_v59, %v5177_v41 }
 0x214   : > { %v5167_v45 = vpop.f32.mrf.mxu3 }
 0x217   : > { %v1035_v63 = vpop.f32.mrf.mxu1 }
 0x218   : > { %v1036_v29 = vadd.f32 %v1035_v63, %v5179_v0  ;;  %v1031_v63 = vadd.f32 %v1030_v5, %v5184_v40  ;;  %v5202_v5 = vpop.permute.xlu1 %896 }
 0x219   : > { %v1062_v30 = vadd.f32 %v5153_v6, %v5202_v5 }
 0x21c   : > { %v5169_v56 = vpop.f32.mrf.mxu3 }
 0x21f   : > { %v1038_v62 = vpop.f32.mrf.mxu1 }
 0x220   : > { %v1039_v7 = vadd.f32 %v1038_v62, %v5175_v38 }
 0x224   : > { %v5171_v53 = vpop.f32.mrf.mxu3 }
 0x227   : > { %v1040_v36 = vpop.f32.mrf.mxu1 }
 0x228   : > { %v1041_v24 = vadd.f32 %v1040_v36, %v933_v39 }
 0x22c   : > { %v5173_v22 = vpop.f32.mrf.mxu3 }
 0x22f   : > { %v1043_v31 = vpop.f32.mrf.mxu1 }
 0x230   : > { %v1044_v16 = vadd.f32 %v1043_v31, %v937_v3 }
 0x232   : > { %4061 = vtanh.f32 %v1044_v16  ;;  %v1024_v16 = vadd.f32 %v5155_v17, %v5188_v61  ;;  %v901_v17 = vpop.permute.xlu2 %900 }
 0x234   : > { %v1083_v47 = vpop.f32.mrf.mxu3 }
 0x237   : > { %v1045_v37 = vpop.f32.mrf.mxu1 }
 0x238   : > { %v1046_v4 = vadd.f32 %v1045_v37, %v941_v33  ;;  %v4062_v19 = vpop.eup %4061 }
 0x23c   : > { %v1086_v13 = vpop.f32.mrf.mxu3 }
 0x23f   : > { %v1048_v23 = vpop.f32.mrf.mxu1 }
 0x240   : > { %v1049_v8 = vadd.f32 %v1048_v23, %v945_v34  ;;  %v1026_v23 = vadd.f32 %v5159_v54, %v909_v46  ;;  %v1082_v54 = vadd.f32 %v5173_v22, %v5175_v38  ;;  %v1077_v22 = vadd.f32 %v5169_v56, %v5177_v41 }
 0x241   : > { %v1072_v41 = vadd.f32 %v5165_v58, %v5182_v15  ;;  %v1064_v15 = vadd.f32 %v5157_v50, %v901_v17 }
 0x242   : > { %4063 = vtanh.f32 %v1049_v8 }
 0x243   : > { %4065 = vtanh.f32 %v1046_v4  ;;  %v1087_v4 = vadd.f32 %v1086_v13, %v937_v3 }
 0x244   : > { %v1088_v2 = vpop.f32.mrf.mxu3  ;;  %4067 = vtanh.f32 %v1039_v7 }
 0x245   : > { %4069 = vtanh.f32 %v1041_v24  ;;  %v1089_v31 = vadd.f32 %v1088_v2, %v941_v33  ;;  %v1019_v33 = vadd.f32 %v5149_v49, %v5202_v5  ;;  %v1079_v49 = vadd.f32 %v5171_v53, %v5179_v0 }
 0x246   : > { %4071 = vtanh.f32 %v1034_v43  ;;  %v1074_v53 = vadd.f32 %v5167_v45, %v5184_v40  ;;  %v1069_v45 = vadd.f32 %v5163_v57, %v909_v46  ;;  %v3835_v57 = vld [vmem:[%s6379_s3 + $0x34] sm:$0xff] }
 0x247   : > { %v1050_v48 = vpop.f32.mrf.mxu1  ;;  %4073 = vtanh.f32 %v1036_v29 }
 0x248   : > { %v4064_v20 = vpop.eup %4063 }
 0x249   : > { %v4066_v26 = vpop.eup %4065  ;;  %v1133_v52 = vpack.c.bf16 %v4064_v20, %v4064_v20 }
 0x24a   : > { %v1131_v59 = vpack.c.bf16 %v4066_v26, %v4062_v19  ;;  %v4068_v36 = vpop.eup %4067 }
 0x24b   : > { %v1256_v18 = vsel %vm1002_vm2, %v1133_v52, 0  ;;  %v4070_v37 = vpop.eup %4069 }
 0x24c   : > { %v1091_v60 = vpop.f32.mrf.mxu3  ;;  %1262 = vmatpush.bf16.msrb.mxu0 %v1256_v18  ;;  %v4072_v8 = vpop.eup %4071  ;;  %v1129_v9 = vpack.c.bf16 %v4070_v37, %v4068_v36 }
 0x24d   : > { %v1092_v62 = vadd.f32 %v1091_v60, %v945_v34  ;;  %v1084_v34 = vadd.f32 %v1083_v47, %v933_v39  ;;  %v4074_v7 = vpop.eup %4073  ;;  %v1021_v47 = vadd.f32 %v5151_v14, %v901_v17  ;;  %v3837_v60 = vld [vmem:[%s6379_s3 + $0x44] sm:$0xff] }
 0x24e   : > { %v1127_v25 = vpack.c.bf16 %v4074_v7, %v4072_v8 }
 0x24f   : > { %4075 = vtanh.f32 %v1092_v62  ;;  %v3518_v62 = vld [vmem:[%s6379_s3 + $0x64] sm:$0x3] }
 0x250   : > { %4077 = vtanh.f32 %v1029_v44  ;;  %1263 = vmatpush.bf16.msrb.mxu0 %v1131_v59  ;;  %v3839_v59 = vld [vmem:[%s6379_s3 + $0x54] sm:$0xff]  ;;  %v1226_v36 = vunpack.c.l.b16 %v3518_v62 }
 0x251   : > { %4079 = vtanh.f32 %v1031_v63  ;;  %v3840_v63 = vld [vmem:[%s6379_s3 + $0x5c] sm:$0xff] }
 0x252   : > { %4081 = vtanh.f32 %v1089_v31  ;;  %v1233_v31 = vpack.c.b16 %v1226_v36, %v1226_v36 }
 0x253   : > { %4083 = vtanh.f32 %v1024_v16 }
 0x254   : > { %4085 = vtanh.f32 %v1087_v4  ;;  %v1093_v3 = vpop.f32.mrf.mxu3  ;;  %1264 = vmatpush.bf16.msrb.mxu0 %v1129_v9 }
 0x255   : > { %v4076_v13 = vpop.eup %4075  ;;  %4087 = vtanh.f32 %v1026_v23 }
 0x256   : > { %v4078_v39 = vpop.eup %4077  ;;  %4089 = vtanh.f32 %v1084_v34  ;;  %v1134_v21 = vpack.c.bf16 %v4076_v13, %v4076_v13 }
 0x257   : > { %v4080_v2 = vpop.eup %4079  ;;  %4091 = vtanh.f32 %v1019_v33 }
 0x258   : > { %v4082_v24 = vpop.eup %4081  ;;  %4093 = vtanh.f32 %v1082_v54  ;;  %1265 = vmatpush.bf16.msrb.mxu0 %v1127_v25  ;;  %v1259_v14 = vsel %vm1002_vm2, %v1134_v21, 0  ;;  %v1125_v0 = vpack.c.bf16 %v4080_v2, %v4078_v39  ;;  %v5289_v25 = vpop.permute.xlu1 %1190 }
 0x259   : > { %v4084_v38 = vpop.eup %4083  ;;  %4095 = vtanh.f32 %v1021_v47  ;;  %1305 = vmatpush.bf16.msrb.mxu2 %v1259_v14  ;;  %v1195_v2 = vpop.permute.xlu2 %1194 }
 0x25a   : > { %v4086_v10 = vpop.eup %4085  ;;  %4097 = vtanh.f32 %v1079_v49 }
 0x25b   : > { %v4088_v19 = vpop.eup %4087  ;;  %v1132_v48 = vpack.c.bf16 %v4082_v24, %v4086_v10  ;;  %4099 = vtanh.f32 %v1077_v22  ;;  %v1199_v22 = vpop.permute.xlu0 %1198 }
 0x25c   : > { %v4090_v56 = vpop.eup %4089  ;;  %1266 = vmatpush.bf16.msrb.mxu0 %v1125_v0  ;;  %4101 = vtanh.f32 %v1074_v53  ;;  %v1123_v40 = vpack.c.bf16 %v4088_v19, %v4084_v38 }
 0x25d   : > { %v4092_v20 = vpop.eup %4091  ;;  %1306 = vmatpush.bf16.msrb.mxu2 %v1132_v48  ;;  %4103 = vtanh.f32 %v1072_v41 }
 0x25e   : > { %v4094_v43 = vpop.eup %4093  ;;  %4105 = vtanh.f32 %v1069_v45 }
 0x25f   : > { %v4096_v26 = vpop.eup %4095  ;;  %v1130_v29 = vpack.c.bf16 %v4090_v56, %v4094_v43  ;;  %4107 = vtanh.f32 %v1067_v27 }
 0x260   : > { %v4098_v1 = vpop.eup %4097  ;;  %1267 = vmatpush.bf16.msrb.mxu0 %v1123_v40  ;;  %v1121_v52 = vpack.c.bf16 %v4096_v26, %v4092_v20  ;;  %4109 = vtanh.f32 %v1064_v15  ;;  %v5293_v14 = vpop.permute.xlu1 %1182 }
 0x261   : > { %1307 = vmatpush.bf16.msrb.mxu2 %v1130_v29  ;;  %v4100_v58 = vpop.eup %4099  ;;  %4111 = vtanh.f32 %v1062_v30  ;;  %v1187_v53 = vpop.permute.xlu2 %1186 }
 0x262   : > { %v1128_v32 = vpack.c.bf16 %v4098_v1, %v4100_v58  ;;  %v4102_v18 = vpop.eup %4101 }
 0x263   : > { %v4104_v50 = vpop.eup %4103  ;;  %v5296_v19 = vpop.permute.xlu0 %1174 }
 0x264   : > { %1268 = vmatpush.bf16.msrb.mxu0 %v1121_v52  ;;  %v1126_v61 = vpack.c.bf16 %v4102_v18, %v4104_v50  ;;  %v4106_v28 = vpop.eup %4105 }
 0x265   : > { %1308 = vmatpush.bf16.msrb.mxu2 %v1128_v32  ;;  %v4108_v51 = vpop.eup %4107 }
 0x266   : > { %v1124_v42 = vpack.c.bf16 %v4106_v28, %v4108_v51  ;;  %v4110_v55 = vpop.eup %4109 }
 0x267   : > { %3543 = vmatmul.msk.bf16.vlgmr.msrb.gmra.mxu0 %vm980_vm3, %v3835_v57  ;;  %v4112_v6 = vpop.eup %4111 }
 0x268   : > { %v1122_v44 = vpack.c.bf16 %v4110_v55, %v4112_v6  ;;  %v5298_v41 = vpop.permute.xlu1 %1178 }
 0x269   : > { %1309 = vmatpush.bf16.msrb.mxu2 %v1126_v61  ;;  %v5301_v26 = vpop.permute.xlu2 %1166 }
 0x26b   : > { %v5303_v58 = vpop.permute.xlu0 %1170 }
 0x26d   : > { %1310 = vmatpush.bf16.msrb.mxu2 %v1124_v42 }
 0x270   : > { %v5307_v18 = vpop.permute.xlu1 %1158 }
 0x271   : > { %1311 = vmatpush.bf16.msrb.mxu2 %v1122_v44  ;;  %v5313_v44 = vpop.permute.xlu2 %1162 }
 0x274   : > { %3550 = vmatmul.msk.bf16.vlgmr.msrb.gmra.mxu2 %vm980_vm3, %v3835_v57 }
 0x277   : > { %3544 = vmatmul.msk.bf16.gmra.mxu0 %vm980_vm3, %v3836_v35 }
 0x284   : > { %3551 = vmatmul.msk.bf16.gmra.mxu2 %vm980_vm3, %v3836_v35 }
 0x287   : > { %3545 = vmatmul.msk.bf16.gmra.mxu0 %vm980_vm3, %v3837_v60 }
 0x294   : > { %3552 = vmatmul.msk.bf16.gmra.mxu2 %vm980_vm3, %v3837_v60 }
 0x297   : > { %3546 = vmatmul.msk.bf16.gmra.mxu0 %vm980_vm3, %v3838_v11 }
 0x2a4   : > { %3553 = vmatmul.msk.bf16.gmra.mxu2 %vm980_vm3, %v3838_v11 }
 0x2a7   : > { %3547 = vmatmul.msk.bf16.gmra.mxu0 %vm980_vm3, %v3839_v59 }
 0x2b4   : > { %3554 = vmatmul.msk.bf16.gmra.mxu2 %vm980_vm3, %v3839_v59  ;;  %v5316_v59 = vpop.permute.xlu0 %1150 }
 0x2b7   : > { %3548 = vmatmul.msk.bf16.gmra.mxu0 %vm980_vm3, %v3840_v63 }
 0x2c4   : > { %3555 = vmatmul.msk.bf16.gmra.mxu2 %vm980_vm3, %v3840_v63 }
 0x2c7   : > { %3549 = vmatmul.msk.bf16.gmra.mxu0 %vm980_vm3, %v1233_v31 }
 0x2d4   : > { %3556 = vmatmul.msk.bf16.gmra.mxu2 %vm980_vm3, %v1233_v31 }
 0x2e4   : > { %v5269_v37 = vpop.f32.mrf.mxu0 }
 0x2e5   : > { %v1271_v36 = vadd.f32 %v5269_v37, %v5316_v59  ;;  %v4608_v37 = vmov 3  }
 0x2e6   : > { %3973 = vset.pattern.permute.xlu0 %v4608_v37  ;;  %3972 = vset.pattern.permute.xlu2 %v4608_v37 }
 0x2e7   : > { %3974 = vset.pattern.permute.xlu1 %v4608_v37 }
 0x2ec   : > { %v5271_v16 = vpop.f32.mrf.mxu0 }
 0x2f4   : > { %v1275_v46 = vpop.f32.mrf.mxu0 }
 0x2f5   : > { %v1276_v6 = vadd.f32 %v1275_v46, %v5307_v18 }
 0x2f7   : > { %v5273_v4 = vpop.f32.mrf.mxu2 }
 0x2fc   : > { %v1277_v23 = vpop.f32.mrf.mxu0 }
 0x2fd   : > { %v1278_v35 = vadd.f32 %v1277_v23, %v5313_v44 }
 0x2ff   : > { %v5275_v8 = vpop.f32.mrf.mxu2 }
 0x304   : > { %v1280_v5 = vpop.f32.mrf.mxu0 }
 0x305   : > { %v1281_v28 = vadd.f32 %v1280_v5, %v5301_v26  ;;  %v5320_v5 = vpop.permute.xlu1 %1154 }
 0x306   : > { %v1273_v23 = vadd.f32 %v5271_v16, %v5320_v5 }
 0x307   : > { %v5277_v34 = vpop.f32.mrf.mxu2 }
 0x30c   : > { %v1282_v9 = vpop.f32.mrf.mxu0 }
 0x30d   : > { %v1283_v55 = vadd.f32 %v1282_v9, %v5303_v58 }
 0x30f   : > { %v5279_v7 = vpop.f32.mrf.mxu2 }
 0x314   : > { %v1285_v33 = vpop.f32.mrf.mxu0 }
 0x315   : > { %v1286_v15 = vadd.f32 %v1285_v33, %v5296_v19 }
 0x317   : > { %v5281_v17 = vpop.f32.mrf.mxu2 }
 0x31c   : > { %v1287_v54 = vpop.f32.mrf.mxu0 }
 0x31d   : > { %v1288_v32 = vadd.f32 %v1287_v54, %v5298_v41 }
 0x31f   : > { %v5283_v3 = vpop.f32.mrf.mxu2 }
 0x324   : > { %v1290_v13 = vpop.f32.mrf.mxu0 }
 0x325   : > { %v1291_v43 = vadd.f32 %v1290_v13, %v5293_v14 }
 0x327   : > { %v5285_v47 = vpop.f32.mrf.mxu2 }
 0x32c   : > { %v1292_v39 = vpop.f32.mrf.mxu0 }
 0x32d   : > { %v1293_v40 = vadd.f32 %v1292_v39, %v1187_v53 }
 0x32f   : > { %v5287_v49 = vpop.f32.mrf.mxu2 }
 0x334   : > { %v1295_v21 = vpop.f32.mrf.mxu0 }
 0x335   : > { %v1296_v0 = vadd.f32 %v1295_v21, %v5289_v25 }
 0x337   : > { %v5291_v24 = vpop.f32.mrf.mxu2  ;;  %4113 = vtanh.f32 %v1296_v0  ;;  %v5345_v0 = vld [vmem:[%s6380_s4 + $0x58] sm:$0xff] }
 0x338   : > { %1446 = vperm.xlu1 %3974, %v5345_v0  }
 0x33c   : > { %v1297_v38 = vpop.f32.mrf.mxu0 }
 0x33d   : > { %v1298_v48 = vadd.f32 %v1297_v38, %v1195_v2  ;;  %v4114_v29 = vpop.eup %4113 }
 0x33f   : > { %v1335_v10 = vpop.f32.mrf.mxu2 }
 0x340   : > { %v1336_v39 = vadd.f32 %v1335_v10, %v1187_v53  ;;  %v5338_v10 = vld [vmem:[%s6380_s4 + $0x60] sm:$0xf] }
 0x341   : > { %1450 = vperm.xlu2 %3972, %v5338_v10  }
 0x344   : > { %v1300_v56 = vpop.f32.mrf.mxu0 }
 0x345   : > { %v1301_v20 = vadd.f32 %v1300_v56, %v1199_v22 }
 0x347   : > { %4115 = vtanh.f32 %v1301_v20  ;;  %v1338_v45 = vpop.f32.mrf.mxu2  ;;  %v1329_v20 = vadd.f32 %v5285_v47, %v5296_v19  ;;  %v1324_v19 = vadd.f32 %v5281_v17, %v5301_v26  ;;  %v1321_v26 = vadd.f32 %v5279_v7, %v5313_v44  ;;  %v5388_v7 = vld [vmem:[%s6380_s4 + $0x10] sm:$0xff]  ;;  %v5408_v44 = vld [vmem:[%s6380_s4 + $0x8] sm:$0xff] }
 0x348   : > { %4117 = vtanh.f32 %v1298_v48  ;;  %v1339_v33 = vadd.f32 %v1338_v45, %v5289_v25  ;;  %v1334_v25 = vadd.f32 %v5291_v24, %v5293_v14  ;;  %v1331_v24 = vadd.f32 %v5287_v49, %v5298_v41  ;;  %v5358_v41 = vld [vmem:[%s6380_s4 + $0x38] sm:$0xff] }
 0x349   : > { %4119 = vtanh.f32 %v1291_v43 }
 0x34a   : > { %4121 = vtanh.f32 %v1293_v40 }
 0x34b   : > { %4123 = vtanh.f32 %v1286_v15  ;;  %v5375_v15 = vld [vmem:[%s6380_s4 + $0x48] sm:$0xff] }
 0x34c   : > { %v1302_v1 = vpop.f32.mrf.mxu0  ;;  %4125 = vtanh.f32 %v1288_v32  ;;  %1438 = vperm.xlu1 %3974, %v5375_v15  }
 0x34d   : > { %v4116_v27 = vpop.eup %4115  ;;  %4127 = vtanh.f32 %v1281_v28  ;;  %v1326_v1 = vadd.f32 %v5283_v3, %v5303_v58  ;;  %v5366_v3 = vld [vmem:[%s6380_s4 + $0x40] sm:$0xff]  ;;  %v3841_v58 = vld [vmem:[%s6379_s3 + $0x68] sm:$0xff] }
 0x34e   : > { %v4118_v52 = vpop.eup %4117  ;;  %v1385_v57 = vpack.c.bf16 %v4116_v27, %v4116_v27  ;;  %4129 = vtanh.f32 %v1283_v55  ;;  %1434 = vperm.xlu2 %3972, %v5366_v3  }
 0x34f   : > { %v1340_v30 = vpop.f32.mrf.mxu2  ;;  %v4120_v61 = vpop.eup %4119  ;;  %v1383_v51 = vpack.c.bf16 %v4118_v52, %v4114_v29  ;;  %4131 = vtanh.f32 %v1276_v6 }
 0x350   : > { %v1508_v50 = vsel %vm1002_vm2, %v1385_v57, 0  ;;  %v4122_v42 = vpop.eup %4121  ;;  %4133 = vtanh.f32 %v1278_v35  ;;  %v1341_v46 = vadd.f32 %v1340_v30, %v1195_v2  ;;  %v5329_v2 = vld [vmem:[%s6380_s4 + $0x50] sm:$0xff]  ;;  %v1319_v57 = vadd.f32 %v5277_v34, %v5307_v18 }
 0x351   : > { %1514 = vmatpush.bf16.msra.mxu1 %v1508_v50  ;;  %v1381_v60 = vpack.c.bf16 %v4122_v42, %v4120_v61  ;;  %v4124_v11 = vpop.eup %4123  ;;  %1442 = vperm.xlu0 %3973, %v5329_v2   ;;  %v1316_v50 = vadd.f32 %v5275_v8, %v5320_v5  ;;  %v1314_v34 = vadd.f32 %v5273_v4, %v5316_v59  ;;  %v5396_v18 = vld [vmem:[%s6380_s4 + $0x30] sm:$0xff]  ;;  %v5402_v8 = vld [vmem:[%s6380_s4 + $0x20] sm:$0xff]  ;;  %v5423_v59 = vld [vmem:[%s6380_s4 + $0x18] sm:$0xff] }
 0x352   : > { %v4126_v62 = vpop.eup %4125  ;;  %v3844_v5 = vld [vmem:[%s6379_s3 + $0x80] sm:$0xff] }
 0x353   : > { %v4128_v9 = vpop.eup %4127  ;;  %v1379_v54 = vpack.c.bf16 %v4126_v62, %v4124_v11  ;;  %v3842_v11 = vld [vmem:[%s6379_s3 + $0x70] sm:$0xff] }
 0x354   : > { %v4130_v13 = vpop.eup %4129  ;;  %1418 = vperm.xlu1 %3974, %v5402_v8  }
 0x355   : > { %1515 = vmatpush.bf16.msra.mxu1 %v1383_v51  ;;  %v4132_v21 = vpop.eup %4131  ;;  %v1377_v38 = vpack.c.bf16 %v4130_v13, %v4128_v9  ;;  %v3569_v9 = vld [vmem:[%s6379_s3 + $0x98] sm:$0x3] }
 0x356   : > { %v4134_v16 = vpop.eup %4133  ;;  %1426 = vperm.xlu2 %3972, %v5396_v18  }
 0x357   : > { %v1343_v63 = vpop.f32.mrf.mxu2  ;;  %v1375_v45 = vpack.c.bf16 %v4134_v16, %v4132_v21 }
 0x358   : > { %v1344_v31 = vadd.f32 %v1343_v63, %v1199_v22 }
 0x359   : > { %1516 = vmatpush.bf16.msra.mxu1 %v1381_v60  ;;  %1430 = vperm.xlu0 %3973, %v5358_v41   ;;  %v5414_v60 = vld [vmem:[%s6380_s4 + $0x28] sm:$0xff] }
 0x35a   : > { %4135 = vtanh.f32 %v1344_v31  ;;  %v3843_v31 = vld [vmem:[%s6379_s3 + $0x78] sm:$0xff] }
 0x35b   : > { %4137 = vtanh.f32 %v1271_v36  ;;  %v5431_v36 = vld [vmem:[%s6380_s4] sm:$0xff] }
 0x35c   : > { %4139 = vtanh.f32 %v1341_v46  ;;  %1414 = vperm.xlu1 %3974, %v5423_v59   ;;  %v3845_v46 = vld [vmem:[%s6379_s3 + $0x88] sm:$0xff] }
 0x35d   : > { %1517 = vmatpush.bf16.msra.mxu1 %v1379_v54  ;;  %4141 = vtanh.f32 %v1273_v23  ;;  %v3846_v23 = vld [vmem:[%s6379_s3 + $0x90] sm:$0xff] }
 0x35e   : > { %4143 = vtanh.f32 %v1339_v33  ;;  %1422 = vperm.xlu2 %3972, %v5414_v60   ;;  %v1478_v33 = vunpack.c.l.b16 %v3569_v9 }
 0x35f   : > { %v1345_v22 = vpop.f32.mrf.mxu2  ;;  %4145 = vtanh.f32 %v1336_v39 }
 0x360   : > { %v4136_v53 = vpop.eup %4135  ;;  %4147 = vtanh.f32 %v1334_v25  ;;  %v1485_v54 = vpack.c.b16 %v1478_v33, %v1478_v33 }
 0x361   : > { %v1386_v14 = vpack.c.bf16 %v4136_v53, %v4136_v53  ;;  %1518 = vmatpush.bf16.msra.mxu1 %v1377_v38  ;;  %v4138_v48 = vpop.eup %4137  ;;  %4149 = vtanh.f32 %v1331_v24  ;;  %1410 = vperm.xlu0 %3973, %v5388_v7  }
 0x362   : > { %v4140_v56 = vpop.eup %4139  ;;  %4151 = vtanh.f32 %v1329_v20 }
 0x363   : > { %v1511_v43 = vsel %vm1002_vm2, %v1386_v14, 0  ;;  %v4142_v40 = vpop.eup %4141  ;;  %4153 = vtanh.f32 %v1326_v1 }
 0x364   : > { %1557 = vmatpush.bf16.msra.mxu3 %v1511_v43  ;;  %v4144_v29 = vpop.eup %4143  ;;  %v1373_v27 = vpack.c.bf16 %v4142_v40, %v4138_v48  ;;  %4155 = vtanh.f32 %v1324_v19 }
 0x365   : > { %1519 = vmatpush.bf16.msra.mxu1 %v1375_v45  ;;  %v1384_v49 = vpack.c.bf16 %v4140_v56, %v4144_v29  ;;  %v4146_v47 = vpop.eup %4145  ;;  %4157 = vtanh.f32 %v1321_v26 }
 0x366   : > { %v4148_v17 = vpop.eup %4147  ;;  %4159 = vtanh.f32 %v1319_v57  ;;  %1402 = vperm.xlu2 %3972, %v5431_v36  }
 0x367   : > { %v1382_v52 = vpack.c.bf16 %v4146_v47, %v4148_v17  ;;  %v4150_v32 = vpop.eup %4149  ;;  %4161 = vtanh.f32 %v1316_v50 }
 0x368   : > { %1558 = vmatpush.bf16.msra.mxu3 %v1384_v49  ;;  %v4152_v30 = vpop.eup %4151  ;;  %4163 = vtanh.f32 %v1314_v34 }
 0x369   : > { %1520 = vmatpush.bf16.msra.mxu1 %v1373_v27  ;;  %v1380_v61 = vpack.c.bf16 %v4150_v32, %v4152_v30  ;;  %v4154_v28 = vpop.eup %4153  ;;  %1406 = vperm.xlu0 %3973, %v5408_v44  }
 0x36a   : > { %v4156_v51 = vpop.eup %4155 }
 0x36b   : > { %v1378_v42 = vpack.c.bf16 %v4154_v28, %v4156_v51  ;;  %v4158_v4 = vpop.eup %4157 }
 0x36c   : > { %1559 = vmatpush.bf16.msra.mxu3 %v1382_v52  ;;  %3594 = vmatmul.msk.bf16.vlgmr.msra.gmra.mxu1 %vm980_vm3, %v3841_v58  ;;  %v4160_v55 = vpop.eup %4159 }
 0x36d   : > { %v1376_v6 = vpack.c.bf16 %v4158_v4, %v4160_v55  ;;  %v4162_v35 = vpop.eup %4161 }
 0x36e   : > { %v4164_v63 = vpop.eup %4163 }
 0x36f   : > { %v1374_v62 = vpack.c.bf16 %v4162_v35, %v4164_v63 }
 0x370   : > { %1560 = vmatpush.bf16.msra.mxu3 %v1380_v61 }
 0x374   : > { %1561 = vmatpush.bf16.msra.mxu3 %v1378_v42 }
 0x378   : > { %1562 = vmatpush.bf16.msra.mxu3 %v1376_v6 }
 0x37c   : > { %1563 = vmatpush.bf16.msra.mxu3 %v1374_v62  ;;  %3595 = vmatmul.msk.bf16.gmra.mxu1 %vm980_vm3, %v3842_v11 }
 0x37f   : > { %3601 = vmatmul.msk.bf16.vlgmr.msra.gmra.mxu3 %vm980_vm3, %v3841_v58 }
 0x38c   : > { %3596 = vmatmul.msk.bf16.gmra.mxu1 %vm980_vm3, %v3843_v31 }
 0x38f   : > { %3602 = vmatmul.msk.bf16.gmra.mxu3 %vm980_vm3, %v3842_v11 }
 0x39b   : > { %v5482_v1 = vpop.permute.xlu2 %1450 }
 0x39c   : > { %3597 = vmatmul.msk.bf16.gmra.mxu1 %vm980_vm3, %v3844_v5 }
 0x39f   : > { %3603 = vmatmul.msk.bf16.gmra.mxu3 %vm980_vm3, %v3843_v31 }
 0x3a8   : > { %v5488_v27 = vpop.permute.xlu2 %1434 }
 0x3aa   : > { %v5486_v19 = vpop.permute.xlu1 %1446 }
 0x3ac   : > { %3598 = vmatmul.msk.bf16.gmra.mxu1 %vm980_vm3, %v3845_v46 }
 0x3af   : > { %3604 = vmatmul.msk.bf16.gmra.mxu3 %vm980_vm3, %v3844_v5 }
 0x3b0   : > { %v5497_v57 = vpop.permute.xlu2 %1426 }
 0x3b8   : > { %v5511_v5 = vpop.permute.xlu2 %1422 }
 0x3bc   : > { %3599 = vmatmul.msk.bf16.gmra.mxu1 %vm980_vm3, %v3846_v23 }
 0x3be   : > { %v5494_v52 = vpop.permute.xlu1 %1438 }
 0x3bf   : > { %3605 = vmatmul.msk.bf16.gmra.mxu3 %vm980_vm3, %v3845_v46 }
 0x3c3   : > { %v5490_v58 = vpop.permute.xlu0 %1442 }
 0x3c6   : > { %v5507_v4 = vpop.permute.xlu1 %1418 }
 0x3cb   : > { %v5500_v61 = vpop.permute.xlu0 %1430 }
 0x3cc   : > { %3600 = vmatmul.msk.bf16.gmra.mxu1 %vm980_vm3, %v1485_v54 }
 0x3cf   : > { %3606 = vmatmul.msk.bf16.gmra.mxu3 %vm980_vm3, %v3846_v23 }
 0x3d3   : > { %v5513_v23 = vpop.permute.xlu0 %1410 }
 0x3df   : > { %3607 = vmatmul.msk.bf16.gmra.mxu3 %vm980_vm3, %v1485_v54 }
 0x3e9   : > { %v5460_v13 = vpop.f32.mrf.mxu1 }
 0x3f1   : > { %v5462_v39 = vpop.f32.mrf.mxu1 }
 0x3f9   : > { %v5464_v21 = vpop.f32.mrf.mxu1 }
 0x401   : > { %v5466_v16 = vpop.f32.mrf.mxu1 }
 0x402   : > { %v5468_v25 = vpop.f32.mrf.mxu3 }
 0x409   : > { %v1532_v22 = vpop.f32.mrf.mxu1 }
 0x40a   : > { %v5470_v38 = vpop.f32.mrf.mxu3  ;;  %v1533_v54 = vadd.f32 %v1532_v22, %v5507_v4  ;;  %v5524_v22 = vpop.permute.xlu1 %1414 }
 0x411   : > { %v1534_v53 = vpop.f32.mrf.mxu1 }
 0x412   : > { %v5472_v24 = vpop.f32.mrf.mxu3 }
 0x419   : > { %v1537_v14 = vpop.f32.mrf.mxu1 }
 0x41a   : > { %v5474_v48 = vpop.f32.mrf.mxu3  ;;  %v1538_v55 = vadd.f32 %v1537_v14, %v5497_v57 }
 0x421   : > { %v1539_v56 = vpop.f32.mrf.mxu1 }
 0x422   : > { %v5476_v20 = vpop.f32.mrf.mxu3  ;;  %v1540_v35 = vadd.f32 %v1539_v56, %v5500_v61 }
 0x429   : > { %v1542_v43 = vpop.f32.mrf.mxu1 }
 0x42a   : > { %v5478_v45 = vpop.f32.mrf.mxu3  ;;  %v1543_v51 = vadd.f32 %v1542_v43, %v5488_v27  ;;  %v1535_v43 = vadd.f32 %v1534_v53, %v5511_v5 }
 0x431   : > { %v1544_v40 = vpop.f32.mrf.mxu1 }
 0x432   : > { %v5480_v29 = vpop.f32.mrf.mxu3  ;;  %v1545_v42 = vadd.f32 %v1544_v40, %v5494_v52  ;;  %v4609_v40 = vmov 4  }
 0x433   : > { %3975 = vset.pattern.permute.xlu1 %v4609_v40  ;;  %3977 = vset.pattern.permute.xlu0 %v4609_v40 }
 0x434   : > { %1702 = vperm.xlu1 %3975, %v5338_v10   ;;  %1698 = vperm.xlu0 %3977, %v5345_v0   ;;  %v5530_v10 = vpop.permute.xlu2 %1402 }
 0x435   : > { %3976 = vset.pattern.permute.xlu2 %v4609_v40  ;;  %v1523_v0 = vadd.f32 %v5460_v13, %v5530_v10 }
 0x436   : > { %1694 = vperm.xlu2 %3976, %v5329_v2  }
 0x439   : > { %v1547_v49 = vpop.f32.mrf.mxu1 }
 0x43a   : > { %v5484_v47 = vpop.f32.mrf.mxu3  ;;  %v1548_v32 = vadd.f32 %v1547_v49, %v5490_v58 }
 0x43c   : > { %4165 = vtanh.f32 %v1548_v32  ;;  %1686 = vperm.xlu1 %3975, %v5366_v3   ;;  %1670 = vperm.xlu0 %3977, %v5402_v8  }
 0x43e   : > { %1690 = vperm.xlu2 %3976, %v5375_v15  }
 0x441   : > { %v1549_v17 = vpop.f32.mrf.mxu1 }
 0x442   : > { %v5492_v26 = vpop.f32.mrf.mxu3  ;;  %v1550_v30 = vadd.f32 %v1549_v17, %v5486_v19  ;;  %v4166_v6 = vpop.eup %4165  ;;  %v1528_v17 = vadd.f32 %v5464_v21, %v5513_v23 }
 0x443   : > { %v5534_v21 = vpop.permute.xlu0 %1406  ;;  %v1586_v15 = vadd.f32 %v5492_v26, %v5488_v27  ;;  %v1581_v27 = vadd.f32 %v5480_v29, %v5497_v57 }
 0x444   : > { %1678 = vperm.xlu1 %3975, %v5396_v18   ;;  %1666 = vperm.xlu0 %3977, %v5423_v59   ;;  %v3847_v18 = vld [vmem:[%s6379_s3 + $0x9c] sm:$0xff] }
 0x446   : > { %1682 = vperm.xlu2 %3976, %v5358_v41  }
 0x449   : > { %v1552_v50 = vpop.f32.mrf.mxu1 }
 0x44a   : > { %v1553_v28 = vadd.f32 %v1552_v50, %v5482_v1  ;;  %v5503_v34 = vpop.f32.mrf.mxu3  ;;  %v1530_v50 = vadd.f32 %v5466_v16, %v5524_v22 }
 0x44b   : > { %v1588_v8 = vadd.f32 %v5503_v34, %v5494_v52 }
 0x44c   : > { %4167 = vtanh.f32 %v1553_v28  ;;  %1674 = vperm.xlu1 %3975, %v5414_v60   ;;  %1654 = vperm.xlu0 %3977, %v5431_v36   ;;  %v1571_v60 = vadd.f32 %v5472_v24, %v5513_v23  ;;  %v6449_v24 = vmov 1  }
 0x44d   : > { %4169 = vtanh.f32 %v1550_v30 }
 0x44e   : > { %4171 = vtanh.f32 %v1543_v51  ;;  %v1525_v51 = vadd.f32 %v5462_v39, %v5534_v21  ;;  %1662 = vperm.xlu2 %3976, %v5388_v7   ;;  %v1568_v7 = vadd.f32 %v5470_v38, %v5534_v21  ;;  %v3848_v38 = vld [vmem:[%s6379_s3 + $0xa4] sm:$0xff]  ;;  %v2106_v21 = vld [vmem:[%s6381_s5 + $0x10] sm:$0xff] }
 0x44f   : > { %4173 = vtanh.f32 %v1545_v42 }
 0x450   : > { %4175 = vtanh.f32 %v1538_v55 }
 0x451   : > { %v1554_v11 = vpop.f32.mrf.mxu1  ;;  %4177 = vtanh.f32 %v1540_v35 }
 0x452   : > { %v4168_v63 = vpop.eup %4167  ;;  %v1590_v62 = vpop.f32.mrf.mxu3  ;;  %4179 = vtanh.f32 %v1533_v54 }
 0x453   : > { %v4170_v31 = vpop.eup %4169  ;;  %v1637_v46 = vpack.c.bf16 %v4168_v63, %v4168_v63  ;;  %4181 = vtanh.f32 %v1535_v43  ;;  %v1591_v11 = vadd.f32 %v1590_v62, %v5490_v58  ;;  %v1583_v58 = vadd.f32 %v5484_v47, %v5500_v61 }
 0x454   : > { %v4172_v33 = vpop.eup %4171  ;;  %v1635_v14 = vpack.c.bf16 %v4170_v31, %v4166_v6  ;;  %4183 = vtanh.f32 %v1528_v17  ;;  %v1578_v47 = vadd.f32 %v5478_v45, %v5511_v5  ;;  %v1573_v45 = vadd.f32 %v5474_v48, %v5524_v22  ;;  %v3849_v22 = vld [vmem:[%s6379_s3 + $0xac] sm:$0xff] }
 0x455   : > { %v1760_v9 = vsel %vm1002_vm2, %v1637_v46, 0  ;;  %v4174_v56 = vpop.eup %4173  ;;  %4185 = vtanh.f32 %v1530_v50  ;;  %v1576_v46 = vadd.f32 %v5476_v20, %v5507_v4  ;;  %v2110_v20 = vld [vmem:[%s6381_s5 + $0x30] sm:$0x3]  ;;  %v2107_v50 = vld [vmem:[%s6381_s5 + $0x18] sm:$0xff] }
 0x456   : > { %1766 = vmatpush.bf16.msra.mxu0 %v1760_v9  ;;  %v4176_v49 = vpop.eup %4175  ;;  %v1633_v30 = vpack.c.bf16 %v4174_v56, %v4172_v33  ;;  %4187 = vtanh.f32 %v1523_v0  ;;  %v6448_v9 = vmov 0   ;;  %v1566_v33 = vadd.f32 %v5468_v25, %v5530_v10  ;;  %3979 = vset.pattern.permute.xlu2 %v6449_v24  ;;  %v5618_v10 = vld [vmem:[%s6383_s7 + $0x30] sm:$0x3]  ;;  %v3852_v0 = vld [vmem:[%s6379_s3 + $0xc4] sm:$0xff] }
 0x457   : > { %v4178_v53 = vpop.eup %4177  ;;  %4189 = vtanh.f32 %v1525_v51  ;;  %3978 = vset.pattern.permute.xlu1 %v6448_v9  ;;  %3982 = vset.pattern.permute.xlu0 %v6448_v9  ;;  %6450 = vst [vmem:[#allocation25_spill] sm:$0xff] %v5618_v10  ;;  %v3620_v51 = vld [vmem:[%s6379_s3 + $0xcc] sm:$0x3] }
 0x458   : > { %v1631_v28 = vpack.c.bf16 %v4178_v53, %v4176_v49  ;;  %v4180_v42 = vpop.eup %4179  ;;  %2143 = vperm.xlu1 %3978, %v2110_v20   ;;  %2192 = vperm.xlu2 %3979, %v2110_v20   ;;  %v2108_v53 = vld [vmem:[%s6381_s5 + $0x20] sm:$0xff] }
 0x459   : > { %v4182_v55 = vpop.eup %4181  ;;  %2133 = vperm.xlu0 %3982, %v2108_v53  }
 0x45a   : > { %v1592_v32 = vpop.f32.mrf.mxu3  ;;  %1767 = vmatpush.bf16.msra.mxu0 %v1635_v14  ;;  %v4184_v16 = vpop.eup %4183  ;;  %v1629_v35 = vpack.c.bf16 %v4182_v55, %v4180_v42  ;;  %v1730_v42 = vunpack.c.l.b16 %v3620_v51  ;;  %v5642_v55 = vld [vmem:[%s6383_s7 + $0x28] sm:$0xff] }
 0x45b   : > { %v1593_v6 = vadd.f32 %v1592_v32, %v5486_v19  ;;  %v4186_v39 = vpop.eup %4185  ;;  %v3851_v32 = vld [vmem:[%s6379_s3 + $0xbc] sm:$0xff]  ;;  %6452 = vst [vmem:[#allocation21_spill] sm:$0xff] %v5642_v55 }
 0x45c   : > { %v4188_v3 = vpop.eup %4187  ;;  %v1627_v63 = vpack.c.bf16 %v4186_v39, %v4184_v16  ;;  %v2104_v16 = vld [vmem:[%s6381_s5] sm:$0xff]  ;;  %v5672_v39 = vld [vmem:[%s6383_s7 + $0x8] sm:$0xff] }
 0x45d   : > { %v4190_v31 = vpop.eup %4189  ;;  %6454 = vst [vmem:[#allocation28_spill] sm:$0xff] %v5672_v39 }
 0x45e   : > { %1768 = vmatpush.bf16.msra.mxu0 %v1633_v30  ;;  %v1625_v34 = vpack.c.bf16 %v4190_v31, %v4188_v3  ;;  %v2109_v30 = vld [vmem:[%s6381_s5 + $0x28] sm:$0xff] }
 0x460   : > { %3980 = vset.pattern.permute.xlu1 %v4609_v40  ;;  %3981 = vset.pattern.permute.xlu2 %v6448_v9 }
 0x461   : > { %1658 = vperm.xlu1 %3980, %v5408_v44   ;;  %v3850_v44 = vld [vmem:[%s6379_s3 + $0xb4] sm:$0xff]  ;;  %2128 = vperm.xlu0 %3982, %v2107_v50  }
 0x462   : > { %v1595_v2 = vpop.f32.mrf.mxu3  ;;  %1769 = vmatpush.bf16.msra.mxu0 %v1631_v28  ;;  %2261 = vperm.xlu2 %3981, %v5618_v10   ;;  %v5630_v28 = vld [vmem:[%s6383_s7 + $0x20] sm:$0xff] }
 0x463   : > { %v1596_v13 = vadd.f32 %v1595_v2, %v5482_v1  ;;  %6451 = vst [vmem:[#allocation20_spill] sm:$0xff] %v5630_v28  ;;  %v2105_v2 = vld [vmem:[%s6381_s5 + $0x8] sm:$0xff] }
 0x465   : > { %4191 = vtanh.f32 %v1596_v13  ;;  %v1737_v13 = vpack.c.b16 %v1730_v42, %v1730_v42 }
 0x466   : > { %1770 = vmatpush.bf16.msra.mxu0 %v1629_v35  ;;  %4193 = vtanh.f32 %v1593_v6  ;;  %v5658_v6 = vld [vmem:[%s6383_s7 + $0x10] sm:$0xff]  ;;  %v5665_v35 = vld [vmem:[%s6383_s7 + $0x18] sm:$0xff] }
 0x467   : > { %4195 = vtanh.f32 %v1591_v11  ;;  %6453 = vst [vmem:[#allocation24_spill] sm:$0xff] %v5658_v6 }
 0x468   : > { %4197 = vtanh.f32 %v1588_v8 }
 0x469   : > { %4199 = vtanh.f32 %v1586_v15  ;;  %3983 = vset.pattern.permute.xlu1 %v6448_v9  ;;  %2251 = vperm.xlu0 %3982, %v5630_v28   ;;  %v5700_v15 = vld [vmem:[%s6383_s7] sm:$0xff] }
 0x46a   : > { %v1597_v1 = vpop.f32.mrf.mxu3  ;;  %1771 = vmatpush.bf16.msra.mxu0 %v1627_v63  ;;  %4201 = vtanh.f32 %v1583_v58  ;;  %2138 = vperm.xlu1 %3983, %v2109_v30  }
 0x46b   : > { %v4192_v19 = vpop.eup %4191  ;;  %4203 = vtanh.f32 %v1581_v27  ;;  %3984 = vset.pattern.permute.xlu2 %v6449_v24 }
 0x46c   : > { %v1638_v52 = vpack.c.bf16 %v4192_v19, %v4192_v19  ;;  %v4194_v59 = vpop.eup %4193  ;;  %4205 = vtanh.f32 %v1578_v47  ;;  %2184 = vperm.xlu2 %3984, %v2108_v53  }
 0x46d   : > { %v4196_v41 = vpop.eup %4195  ;;  %4207 = vtanh.f32 %v1576_v46 }
 0x46e   : > { %1772 = vmatpush.bf16.msra.mxu0 %v1625_v34  ;;  %v1763_v26 = vsel %vm1002_vm2, %v1638_v52, 0  ;;  %v1636_v61 = vpack.c.bf16 %v4194_v59, %v4196_v41  ;;  %v4198_v62 = vpop.eup %4197  ;;  %4209 = vtanh.f32 %v1573_v45  ;;  %v5753_v45 = vld [vmem:[%s402_s11] sm:$0xf] }
 0x46f   : > { %1809 = vmatpush.bf16.msra.mxu2 %v1763_v26  ;;  %v4200_v29 = vpop.eup %4199  ;;  %4211 = vtanh.f32 %v1571_v60 }
 0x470   : > { %v1634_v57 = vpack.c.bf16 %v4198_v62, %v4200_v29  ;;  %v4202_v5 = vpop.eup %4201  ;;  %4213 = vtanh.f32 %v1568_v7 }
 0x471   : > { %3645 = vmatmul.msk.bf16.vlgmr.msra.gmra.mxu0 %vm980_vm3, %v3847_v18  ;;  %v4204_v36 = vpop.eup %4203  ;;  %4215 = vtanh.f32 %v1566_v33  ;;  %2118 = vperm.xlu0 %3982, %v2105_v2  }
 0x472   : > { %v1632_v4 = vpack.c.bf16 %v4202_v5, %v4204_v36  ;;  %v4206_v48 = vpop.eup %4205  ;;  %3985 = vset.pattern.permute.xlu1 %v6449_v24  ;;  %v2148_v5 = vperm.slane %v5753_v45, 2 }
 0x473   : > { %1810 = vmatpush.bf16.msra.mxu2 %v1636_v61  ;;  %v4208_v23 = vpop.eup %4207  ;;  %2188 = vperm.xlu1 %3985, %v2109_v30  }
 0x474   : > { %v1630_v54 = vpack.c.bf16 %v4206_v48, %v4208_v23  ;;  %v4210_v14 = vpop.eup %4209  ;;  %3986 = vset.pattern.permute.xlu2 %v6448_v9 }
 0x475   : > { %v4212_v56 = vpop.eup %4211  ;;  %2123 = vperm.xlu2 %3986, %v2106_v21  }
 0x476   : > { %v1628_v25 = vpack.c.bf16 %v4210_v14, %v4212_v56  ;;  %v4214_v43 = vpop.eup %4213 }
 0x477   : > { %1811 = vmatpush.bf16.msra.mxu2 %v1634_v57  ;;  %v4216_v49 = vpop.eup %4215 }
 0x478   : > { %v1626_v17 = vpack.c.bf16 %v4214_v43, %v4216_v49 }
 0x479   : > { %2241 = vperm.xlu0 %3982, %v5658_v6  }
 0x47b   : > { %1812 = vmatpush.bf16.msra.mxu2 %v1632_v4  ;;  %2176 = vperm.xlu1 %3985, %v2106_v21   ;;  %v5767_v4 = vperm.slane %v2148_v5, 0 }
 0x47d   : > { %3987 = vset.pattern.permute.xlu2 %v6449_v24 }
 0x47e   : > { %2180 = vperm.xlu2 %3987, %v2107_v50  }
 0x47f   : > { %1813 = vmatpush.bf16.msra.mxu2 %v1630_v54 }
 0x481   : > { %3646 = vmatmul.msk.bf16.gmra.mxu0 %vm980_vm3, %v3848_v38  ;;  %2236 = vperm.xlu0 %3982, %v5672_v39  }
 0x483   : > { %1814 = vmatpush.bf16.msra.mxu2 %v1628_v25  ;;  %3988 = vset.pattern.permute.xlu1 %v6448_v9 }
 0x484   : > { %2256 = vperm.xlu1 %3988, %v5642_v55  }
 0x486   : > { %3989 = vset.pattern.permute.xlu2 %v6448_v9 }
 0x487   : > { %1815 = vmatpush.bf16.msra.mxu2 %v1626_v17  ;;  %2113 = vperm.xlu2 %3989, %v2104_v16  }
 0x489   : > { %3996 = vset.pattern.permute.xlu0 %v6449_v24 }
 0x48a   : > { %3652 = vmatmul.msk.bf16.vlgmr.msra.gmra.mxu2 %vm980_vm3, %v3847_v18  ;;  %2328 = vperm.xlu0 %3996, %v5642_v55  }
 0x48c   : > { %3990 = vset.pattern.permute.xlu1 %v6449_v24 }
 0x48d   : > { %2168 = vperm.xlu1 %3990, %v2104_v16  }
 0x48f   : > { %3991 = vset.pattern.permute.xlu2 %v6449_v24 }
 0x490   : > { %2172 = vperm.xlu2 %3991, %v2105_v2   ;;  %v5695_v31 = vpop.permute.xlu2 %1694 }
 0x491   : > { %3647 = vmatmul.msk.bf16.gmra.mxu0 %vm980_vm3, %v3849_v22 }
 0x492   : > { %3997 = vset.pattern.permute.xlu0 %v4607_v12 }
 0x493   : > { %2484 = vperm.xlu0 %3997, %v5618_v10  }
 0x495   : > { %3992 = vset.pattern.permute.xlu1 %v6448_v9 }
 0x496   : > { %2246 = vperm.xlu1 %3992, %v5665_v35  }
 0x498   : > { %3993 = vset.pattern.permute.xlu2 %v6448_v9  ;;  %v5711_v52 = vpop.permute.xlu2 %1690  ;;  %v2196_v9 = vperm.slane %v5753_v45, 3 }
 0x499   : > { %2231 = vperm.xlu2 %3993, %v5700_v15  }
 0x49a   : > { %3653 = vmatmul.msk.bf16.gmra.mxu2 %vm980_vm3, %v3848_v38  ;;  %v5770_v48 = vperm.slane %v2196_v9, 1 }
 0x49b   : > { %2460 = vperm.xlu0 %3997, %v5700_v15  }
 0x49e   : > { %3994 = vset.pattern.permute.xlu1 %v6449_v24 }
 0x49f   : > { %2332 = vperm.xlu1 %3994, %v5618_v10  }
 0x4a0   : > { %v5732_v26 = vpop.permute.xlu2 %1682 }
 0x4a1   : > { %3648 = vmatmul.msk.bf16.gmra.mxu0 %vm980_vm3, %v3850_v44  ;;  %3995 = vset.pattern.permute.xlu2 %v6449_v24 }
 0x4a2   : > { %2324 = vperm.xlu2 %3995, %v5630_v28  }
 0x4a3   : > { %4001 = vset.pattern.permute.xlu0 %v4608_v37 }
 0x4a4   : > { %2626 = vperm.xlu0 %4001, %v5630_v28  }
 0x4a6   : > { %v5677_v11 = vpop.permute.xlu1 %1702  ;;  %v5687_v8 = vpop.permute.xlu0 %1698 }
 0x4a7   : > { %2316 = vperm.xlu1 %3994, %v5658_v6  }
 0x4a8   : > { %v5750_v29 = vpop.permute.xlu2 %1662 }
 0x4aa   : > { %3654 = vmatmul.msk.bf16.gmra.mxu2 %vm980_vm3, %v3849_v22  ;;  %2320 = vperm.xlu2 %3995, %v5665_v35  }
 0x4ac   : > { %2614 = vperm.xlu0 %4001, %v5672_v39  }
 0x4ae   : > { %v5685_v3 = vpop.permute.xlu1 %1686  ;;  %v5709_v58 = vpop.permute.xlu0 %1670 }
 0x4af   : > { %2308 = vperm.xlu1 %3994, %v5700_v15  }
 0x4b1   : > { %3649 = vmatmul.msk.bf16.gmra.mxu0 %vm980_vm3, %v3851_v32 }
 0x4b2   : > { %2312 = vperm.xlu2 %3995, %v5672_v39   ;;  %v5765_v7 = vpop.permute.xlu2 %2192 }
 0x4b3   : > { %v2214_v23 = vmul.f32 %v5770_v48, %v5765_v7 }
 0x4b4   : > { %4005 = vset.pattern.permute.xlu0 %v4609_v40 }
 0x4b5   : > { %2780 = vperm.xlu0 %4005, %v5642_v55  }
 0x4b6   : > { %v5703_v1 = vpop.permute.xlu1 %1678  ;;  %v5723_v59 = vpop.permute.xlu0 %1666 }
 0x4b7   : > { %3998 = vset.pattern.permute.xlu1 %v4607_v12 }
 0x4b8   : > { %2476 = vperm.xlu1 %3998, %v5630_v28  }
 0x4ba   : > { %3655 = vmatmul.msk.bf16.gmra.mxu2 %vm980_vm3, %v3850_v44  ;;  %3999 = vset.pattern.permute.xlu2 %v4607_v12 }
 0x4bb   : > { %2480 = vperm.xlu2 %3999, %v5642_v55  }
 0x4bc   : > { %v5781_v43 = vpop.permute.xlu2 %2261 }
 0x4be   : > { %v5720_v18 = vpop.permute.xlu1 %1674  ;;  %v5739_v47 = vpop.permute.xlu0 %1654 }
 0x4c0   : > { %2468 = vperm.xlu1 %3998, %v5658_v6  }
 0x4c1   : > { %3650 = vmatmul.msk.bf16.gmra.mxu0 %vm980_vm3, %v3852_v0 }
 0x4c3   : > { %2472 = vperm.xlu2 %3999, %v5665_v35  }
 0x4c6   : > { %v5805_v2 = vpop.permute.xlu2 %2184 }
 0x4c8   : > { %2464 = vperm.xlu1 %3998, %v5672_v39  }
 0x4ca   : > { %3656 = vmatmul.msk.bf16.gmra.mxu2 %vm980_vm3, %v3851_v32  ;;  %v5737_v41 = vpop.permute.xlu1 %2143 }
 0x4cb   : > { %v2166_v33 = vmul.f32 %v5767_v4, %v5737_v41  ;;  %4000 = vset.pattern.permute.xlu2 %v4608_v37  ;;  %v5803_v42 = vpop.permute.xlu0 %2133 }
 0x4cc   : > { %2634 = vperm.xlu2 %4000, %v5618_v10  }
 0x4cd   : > { %v2228_v25 = vadd.f32 %v2214_v23, %v2166_v33 }
 0x4cf   : > { %v5784_v49 = vadd.f32 %v5781_v43, %v2228_v25  ;;  %v2195_v25 = vperm.slane %v5753_v45, 1 }
 0x4d0   : > { %4002 = vset.pattern.permute.xlu1 %v4608_v37 }
 0x4d1   : > { %3651 = vmatmul.msk.bf16.gmra.mxu0 %vm980_vm3, %v1737_v13  ;;  %2630 = vperm.xlu1 %4002, %v5642_v55  }
 0x4d3   : > { %v5755_v57 = vpop.permute.xlu1 %1658 }
 0x4d4   : > { %2618 = vperm.xlu2 %4000, %v5658_v6  }
 0x4d9   : > { %2622 = vperm.xlu1 %4002, %v5665_v35  }
 0x4da   : > { %3657 = vmatmul.msk.bf16.gmra.mxu2 %vm980_vm3, %v3852_v0 }
 0x4dc   : > { %2610 = vperm.xlu2 %4000, %v5700_v15   ;;  %v5800_v51 = vpop.permute.xlu1 %2138 }
 0x4e1   : > { %4003 = vset.pattern.permute.xlu1 %v4609_v40 }
 0x4e2   : > { %2784 = vperm.xlu1 %4003, %v5618_v10   ;;  %v5840_v10 = vperm.slane %v2195_v25, 1 }
 0x4e4   : > { %4004 = vset.pattern.permute.xlu2 %v4609_v40  ;;  %v2213_v25 = vmul.f32 %v5840_v10, %v5765_v7 }
 0x4e5   : > { %2776 = vperm.xlu2 %4004, %v5630_v28  }
 0x4ea   : > { %3658 = vmatmul.msk.bf16.gmra.mxu2 %vm980_vm3, %v1737_v13  ;;  %2768 = vperm.xlu1 %4003, %v5658_v6  }
 0x4ed   : > { %2772 = vperm.xlu2 %4004, %v5665_v35  }
 0x4ee   : > { %v5691_v63 = vpop.f32.mrf.mxu0 }
 0x4f2   : > { %2760 = vperm.xlu1 %4003, %v5700_v15  }
 0x4f5   : > { %2764 = vperm.xlu2 %4004, %v5672_v39  }
 0x4f6   : > { %v5706_v19 = vpop.f32.mrf.mxu0 }
 0x4fe   : > { %v5716_v34 = vpop.f32.mrf.mxu0 }
 0x4ff   : > { %v1780_v7 = vadd.f32 %v5716_v34, %v5750_v29 }
 0x506   : > { %v5730_v27 = vpop.f32.mrf.mxu0 }
 0x50d   : > { %v1817_v61 = vpop.f32.mrf.mxu2 }
 0x50e   : > { %v1818_v62 = vadd.f32 %v1817_v61, %v5739_v47  ;;  %v5743_v46 = vpop.f32.mrf.mxu0  ;;  %v5811_v61 = vpop.permute.xlu1 %2188 }
 0x50f   : > { %v2211_v34 = vmul.f32 %v5840_v10, %v5811_v61 }
 0x510   : > { %4217 = vtanh.f32 %v1818_v62  ;;  %v5813_v62 = vpop.permute.xlu0 %2128 }
 0x515   : > { %v1819_v60 = vpop.f32.mrf.mxu2 }
 0x516   : > { %v1820_v20 = vadd.f32 %v1819_v60, %v5755_v57  ;;  %v5760_v36 = vpop.f32.mrf.mxu0  ;;  %v4218_v12 = vpop.eup %4217 }
 0x517   : > { %v5817_v60 = vpop.permute.xlu2 %2123  ;;  %v5820_v9 = vpop.permute.xlu1 %2176 }
 0x518   : > { %4219 = vtanh.f32 %v1820_v20  ;;  %v5824_v33 = vpop.permute.xlu0 %2251 }
 0x51d   : > { %v1822_v24 = vpop.f32.mrf.mxu2 }
 0x51e   : > { %v4220_v54 = vpop.eup %4219  ;;  %v1823_v38 = vadd.f32 %v1822_v24, %v5750_v29  ;;  %v1789_v14 = vpop.f32.mrf.mxu0 }
 0x51f   : > { %v5779_v56 = vpack.c.bf16 %v4220_v54, %v4218_v12  ;;  %v5827_v23 = vpop.permute.xlu2 %2180 }
 0x520   : > { %4221 = vtanh.f32 %v1823_v38  ;;  %v2147_v38 = vperm.slane %v5753_v45, 0  ;;  %v1790_v45 = vadd.f32 %v1789_v14, %v5703_v1  ;;  %v5845_v28 = vpop.permute.xlu0 %2118  ;;  %v1785_v14 = vadd.f32 %v5743_v46, %v5709_v58 }
 0x525   : > { %v1824_v17 = vpop.f32.mrf.mxu2 }
 0x526   : > { %v1825_v22 = vadd.f32 %v1824_v17, %v5723_v59  ;;  %v1791_v44 = vpop.f32.mrf.mxu0  ;;  %v4222_v32 = vpop.eup %4221 }
 0x528   : > { %4223 = vtanh.f32 %v1825_v22 }
 0x52d   : > { %v5791_v30 = vpop.f32.mrf.mxu2 }
 0x52e   : > { %v4224_v53 = vpop.eup %4223  ;;  %v1794_v50 = vpop.f32.mrf.mxu0 }
 0x52f   : > { %v5793_v0 = vpack.c.bf16 %v4224_v53, %v4222_v32  ;;  %v5837_v53 = vperm.slane %v2147_v38, 0 }
 0x535   : > { %v5797_v37 = vpop.f32.mrf.mxu2 }
 0x536   : > { %v1796_v21 = vpop.f32.mrf.mxu0 }
 0x537   : > { %v1797_v22 = vadd.f32 %v1796_v21, %v5711_v52  ;;  %v1792_v21 = vadd.f32 %v1791_v44, %v5732_v26 }
 0x53d   : > { %v5807_v13 = vpop.f32.mrf.mxu2 }
 0x53e   : > { %v1799_v16 = vpop.f32.mrf.mxu0 }
 0x53f   : > { %v1800_v17 = vadd.f32 %v1799_v16, %v5695_v31 }
 0x545   : > { %v5815_v5 = vpop.f32.mrf.mxu2 }
 0x546   : > { %v1801_v20 = vpop.f32.mrf.mxu0 }
 0x547   : > { %v1802_v54 = vadd.f32 %v1801_v20, %v5687_v8  ;;  %v5842_v20 = vpop.permute.xlu1 %2256 }
 0x54d   : > { %v5822_v12 = vpop.f32.mrf.mxu2 }
 0x54e   : > { %v1804_v40 = vpop.f32.mrf.mxu0 }
 0x54f   : > { %v1805_v24 = vadd.f32 %v1804_v40, %v5677_v11  ;;  %v1795_v40 = vadd.f32 %v1794_v50, %v5685_v3  ;;  %v2165_v50 = vmul.f32 %v5837_v53, %v5737_v41 }
 0x551   : > { %4225 = vtanh.f32 %v1805_v24 }
 0x552   : > { %4227 = vtanh.f32 %v1802_v54  ;;  %v5848_v54 = vpop.permute.xlu2 %2113 }
 0x553   : > { %4229 = vtanh.f32 %v1800_v17 }
 0x554   : > { %4231 = vtanh.f32 %v1797_v22 }
 0x555   : > { %v5835_v32 = vpop.f32.mrf.mxu2  ;;  %4233 = vtanh.f32 %v1795_v40 }
 0x556   : > { %v1806_v24 = vpop.f32.mrf.mxu0  ;;  %4235 = vtanh.f32 %v1790_v45  ;;  %v1782_v45 = vadd.f32 %v5730_v27, %v5723_v59 }
 0x557   : > { %v4226_v55 = vpop.eup %4225  ;;  %4237 = vtanh.f32 %v1792_v21  ;;  %v2227_v24 = vadd.f32 %v2213_v25, %v2165_v50  ;;  %v2209_v21 = vmul.f32 %v5840_v10, %v5805_v2  ;;  %v2163_v50 = vmul.f32 %v5837_v53, %v5800_v51  ;;  %v5875_v25 = vpop.permute.xlu0 %2241 }
 0x558   : > { %v1889_v16 = vpack.c.bf16 %v4226_v55, %v4226_v55  ;;  %v4228_v38 = vpop.eup %4227  ;;  %v1787_v55 = vadd.f32 %v5760_v36, %v5720_v18  ;;  %4239 = vtanh.f32 %v1785_v14  ;;  %v2161_v36 = vmul.f32 %v5837_v53, %v5803_v42 }
 0x559   : > { %v4230_v44 = vpop.eup %4229  ;;  %v2276_v27 = vadd.f32 %v5781_v43, %v2227_v24  ;;  %v2157_v14 = vmul.f32 %v5837_v53, %v5817_v60  ;;  %v2225_v24 = vadd.f32 %v2211_v34, %v2163_v50 }
 0x55a   : > { %v2012_v17 = vsel %vm1002_vm2, %v1889_v16, 0  ;;  %v1887_v41 = vpack.c.bf16 %v4228_v38, %v4230_v44  ;;  %v4232_v40 = vpop.eup %4231  ;;  %4241 = vtanh.f32 %v1787_v55  ;;  %v5869_v16 = vpop.permute.xlu1 %2168  ;;  %v2205_v44 = vmul.f32 %v5840_v10, %v5820_v9 }
 0x55b   : > { %2018 = vmatpush.bf16.msrb.mxu0 %v2012_v17  ;;  %3874 = vmatpush.bf16.msrb.mxu1 %v2012_v17  ;;  %v4234_v46 = vpop.eup %4233  ;;  %v1775_v17 = vadd.f32 %v5691_v63, %v5739_v47  ;;  %4243 = vtanh.f32 %v1780_v7  ;;  %v5884_v55 = vpop.permute.xlu2 %2172  ;;  %v2159_v63 = vmul.f32 %v5837_v53, %v5813_v62  ;;  %v2207_v47 = vmul.f32 %v5840_v10, %v5827_v23 }
 0x55c   : > { %v4236_v38 = vpop.eup %4235  ;;  %v1885_v29 = vpack.c.bf16 %v4232_v40, %v4234_v46  ;;  %4245 = vtanh.f32 %v1782_v45  ;;  %v2223_v40 = vadd.f32 %v2209_v21, %v2161_v36  ;;  %v2203_v45 = vmul.f32 %v5840_v10, %v5884_v55 }
 0x55d   : > { %v5859_v22 = vpop.f32.mrf.mxu2  ;;  %v4238_v59 = vpop.eup %4237  ;;  %4247 = vtanh.f32 %v2276_v27  ;;  %v2153_v36 = vmul.f32 %v5837_v53, %v5848_v54  ;;  %v2201_v21 = vmul.f32 %v5840_v10, %v5869_v16  ;;  %v2274_v50 = vadd.f32 %v5842_v20, %v2225_v24 }
 0x55e   : > { %v4240_v43 = vpop.eup %4239  ;;  %v1883_v46 = vpack.c.bf16 %v4238_v59, %v4236_v38  ;;  %4249 = vtanh.f32 %v1775_v17  ;;  %v2221_v59 = vadd.f32 %v2207_v47, %v2159_v63 }
 0x55f   : > { %2019 = vmatpush.bf16.msrb.mxu0 %v1887_v41  ;;  %3875 = vmatpush.bf16.msrb.mxu1 %v1887_v41  ;;  %v1777_v41 = vadd.f32 %v5706_v19, %v5755_v57  ;;  %v2219_v19 = vadd.f32 %v2205_v44, %v2157_v14  ;;  %v2272_v57 = vadd.f32 %v5824_v33, %v2223_v40  ;;  %v5905_v44 = vpop.permute.xlu0 %2236 }
 0x560   : > { %v4242_v6 = vpop.eup %4241 }
 0x561   : > { %4251 = vtanh.f32 %v1777_v41  ;;  %v4244_v38 = vpop.eup %4243  ;;  %v1881_v34 = vpack.c.bf16 %v4242_v6, %v4240_v43  ;;  %v2268_v14 = vadd.f32 %v5875_v25, %v2219_v19 }
 0x562   : > { %v4246_v27 = vpop.eup %4245  ;;  %v5902_v39 = vpop.permute.xlu1 %2246  ;;  %4253 = vtanh.f32 %v2272_v57  ;;  %v1843_v57 = vadd.f32 %v5859_v22, %v5695_v31  ;;  %v1838_v22 = vadd.f32 %v5822_v12, %v5685_v3  ;;  %v1833_v3 = vadd.f32 %v5807_v13, %v5703_v1 }
 0x563   : > { %2020 = vmatpush.bf16.msrb.mxu0 %v1885_v29  ;;  %3876 = vmatpush.bf16.msrb.mxu1 %v1885_v29  ;;  %v2155_v29 = vmul.f32 %v5837_v53, %v5845_v28  ;;  %v4248_v41 = vpop.eup %4247  ;;  %v2215_v53 = vadd.f32 %v2201_v21, %v2153_v36  ;;  %4255 = vtanh.f32 %v2274_v50  ;;  %v2270_v6 = vadd.f32 %v5902_v39, %v2221_v59  ;;  %v5908_v43 = vpop.permute.xlu2 %2231 }
 0x564   : > { %v4250_v40 = vpop.eup %4249  ;;  %4257 = vtanh.f32 %v2268_v14  ;;  %v1830_v14 = vadd.f32 %v5797_v37, %v5720_v18  ;;  %v2162_v1 = vmul.f32 %v5767_v4, %v5803_v42  ;;  %v2210_v13 = vmul.f32 %v5770_v48, %v5805_v2 }
 0x565   : > { %v1844_v7 = vpop.f32.mrf.mxu2  ;;  %v2217_v17 = vadd.f32 %v2203_v45, %v2155_v29  ;;  %v2298_v29 = vpack.c.bf16 %v4248_v41, %v4248_v41  ;;  %v2264_v19 = vadd.f32 %v5908_v43, %v2215_v53  ;;  %v2160_v2 = vmul.f32 %v5767_v4, %v5813_v62 }
 0x566   : > { %v1845_v45 = vadd.f32 %v1844_v7, %v5687_v8  ;;  %v1840_v7 = vadd.f32 %v5835_v32, %v5711_v52  ;;  %v1835_v52 = vadd.f32 %v5815_v5, %v5732_v26  ;;  %v1828_v26 = vadd.f32 %v5791_v30, %v5709_v58 }
 0x567   : > { %2021 = vmatpush.bf16.msrb.mxu0 %v1883_v46  ;;  %3877 = vmatpush.bf16.msrb.mxu1 %v1883_v46  ;;  %v1879_v46 = vpack.c.bf16 %v4246_v27, %v4244_v38  ;;  %v4252_v63 = vpop.eup %4251  ;;  %v2266_v24 = vadd.f32 %v5905_v44, %v2217_v17  ;;  %v2368_v38 = vsel %vm2366_vm4, %v2298_v29, 0  ;;  %v2164_v58 = vmul.f32 %v5767_v4, %v5800_v51 }
 0x568   : > { %v1877_v36 = vpack.c.bf16 %v4252_v63, %v4250_v40  ;;  %v4254_v21 = vpop.eup %4253  ;;  %v2212_v30 = vmul.f32 %v5770_v48, %v5811_v61  ;;  %v2158_v29 = vmul.f32 %v5767_v4, %v5817_v60  ;;  %v2206_v51 = vmul.f32 %v5770_v48, %v5820_v9 }
 0x569   : > { %v4256_v8 = vpop.eup %4255  ;;  %v2208_v61 = vmul.f32 %v5770_v48, %v5827_v23  ;;  %v2156_v62 = vmul.f32 %v5767_v4, %v5845_v28  ;;  %v2154_v9 = vmul.f32 %v5767_v4, %v5848_v54  ;;  %v2204_v23 = vmul.f32 %v5770_v48, %v5884_v55  ;;  %v4422_v4 = vld [vmem:[%s6380_s4] sm:$0xff]  ;;  %v4423_v54 = vld [vmem:[%s6380_s4 + $0x8] sm:$0xff] }
 0x56a   : > { %v4258_v31 = vpop.eup %4257  ;;  %v2296_v59 = vpack.c.bf16 %v4256_v8, %v4254_v21  ;;  %v2220_v8 = vadd.f32 %v2206_v51, %v2158_v29  ;;  %v4610_v28 = vmov 5  }
 0x56b   : > { %2022 = vmatpush.bf16.msrb.mxu0 %v1881_v34  ;;  %3878 = vmatpush.bf16.msrb.mxu1 %v1881_v34 }
 0x56c   : > { %4006 = vset.pattern.permute.xlu0 %v4610_v28  ;;  %4007 = vset.pattern.permute.xlu1 %v4610_v28 }
 0x56d   : > { %v1847_v10 = vpop.f32.mrf.mxu2  ;;  %1906 = vperm.xlu0 %4006, %v4422_v4   ;;  %1910 = vperm.xlu1 %4007, %v4423_v54  }
 0x56e   : > { %v1848_v47 = vadd.f32 %v1847_v10, %v5677_v11  ;;  %v5919_v11 = vld [vmem:[%s6379_s3 + $0xd0] sm:$0xff]  ;;  %4008 = vset.pattern.permute.xlu2 %v4610_v28 }
 0x56f   : > { %2023 = vmatpush.bf16.msrb.mxu0 %v1879_v46  ;;  %3879 = vmatpush.bf16.msrb.mxu1 %v1879_v46 }
 0x570   : > { %4259 = vtanh.f32 %v1848_v47 }
 0x571   : > { %4261 = vtanh.f32 %v2270_v6 }
 0x572   : > { %4263 = vtanh.f32 %v2266_v24  ;;  %v2224_v24 = vadd.f32 %v2210_v13, %v2162_v1  ;;  %v6458_v1 = vld [vmem:[#allocation21_spill] sm:$0xff] }
 0x573   : > { %4265 = vtanh.f32 %v1845_v45  ;;  %2024 = vmatpush.bf16.msrb.mxu0 %v1877_v36  ;;  %3880 = vmatpush.bf16.msrb.mxu1 %v1877_v36  ;;  %v5951_v45 = vld [vmem:[#allocation5] sm:$0xff]  ;;  %v6459_v13 = vld [vmem:[#allocation25_spill] sm:$0xff] }
 0x574   : > { %4267 = vtanh.f32 %v2264_v19  ;;  %v2226_v19 = vadd.f32 %v2212_v30, %v2164_v58  ;;  %v2273_v21 = vadd.f32 %v5824_v33, %v2224_v24  ;;  %v2202_v33 = vmul.f32 %v5770_v48, %v5869_v16  ;;  %v4433_v58 = vld [vmem:[%s6380_s4 + $0x58] sm:$0xff]  ;;  %v4434_v30 = vld [vmem:[%s6380_s4 + $0x60] sm:$0xf] }
 0x575   : > { %4269 = vtanh.f32 %v1843_v57  ;;  %v1849_v50 = vpop.f32.mrf.mxu2  ;;  %v2269_v48 = vadd.f32 %v5875_v25, %v2220_v8  ;;  %v2218_v16 = vadd.f32 %v2204_v23, %v2156_v62  ;;  %v2329_v8 = vpop.permute.xlu0 %2328 }
 0x576   : > { %v4260_v34 = vpop.eup %4259  ;;  %3696 = vmatmul.msk.bf16.vlgmr.msrb.gmra.mxu0 %vm980_vm3, %v5919_v11  ;;  %4271 = vtanh.f32 %v1840_v7  ;;  %v2222_v7 = vadd.f32 %v2208_v61, %v2160_v2  ;;  %v2333_v61 = vpop.permute.xlu1 %2332 }
 0x577   : > { %2377 = vmatpush.bf16.msra.mxu0 %v2368_v38  ;;  %v4262_v27 = vpop.eup %4261  ;;  %v1890_v32 = vpack.c.bf16 %v4260_v34, %v4260_v34  ;;  %4273 = vtanh.f32 %v1838_v22  ;;  %v2216_v38 = vadd.f32 %v2202_v33, %v2154_v9  ;;  %v2267_v50 = vadd.f32 %v5905_v44, %v2218_v16  ;;  %v3860_v44 = vld [vmem:[#allocation5 + $0x8] sm:$0xff] }
 0x578   : > { %v4264_v17 = vpop.eup %4263  ;;  %v2294_v40 = vpack.c.bf16 %v4262_v27, %v4258_v31  ;;  %4275 = vtanh.f32 %v1835_v52  ;;  %v2271_v55 = vadd.f32 %v5902_v39, %v2222_v7  ;;  %v4424_v31 = vld [vmem:[%s6380_s4 + $0x10] sm:$0xff]  ;;  %v4425_v39 = vld [vmem:[%s6380_s4 + $0x18] sm:$0xff] }
 0x579   : > { %v4266_v41 = vpop.eup %4265  ;;  %v2015_v12 = vsel %vm1002_vm2, %v1890_v32, 0  ;;  %4277 = vtanh.f32 %v1830_v14  ;;  %1914 = vperm.xlu2 %4008, %v4424_v31   ;;  %v2265_v25 = vadd.f32 %v5908_v43, %v2216_v38  ;;  %1918 = vperm.xlu1 %4007, %v4425_v39   ;;  %v4427_v43 = vld [vmem:[%s6380_s4 + $0x20] sm:$0xff] }
 0x57a   : > { %v4268_v53 = vpop.eup %4267  ;;  %2061 = vmatpush.bf16.msrb.mxu2 %v2015_v12  ;;  %3881 = vmatpush.bf16.msrb.mxu3 %v2015_v12  ;;  %4279 = vtanh.f32 %v1833_v3 }
 0x57b   : > { %2378 = vmatpush.bf16.msra.mxu0 %v2296_v59  ;;  %v4270_v10 = vpop.eup %4269  ;;  %v2292_v5 = vpack.c.bf16 %v4264_v17, %v4268_v53  ;;  %4281 = vtanh.f32 %v1828_v26  ;;  %v4426_v59 = vld [vmem:[%s6380_s4 + $0x28] sm:$0xff]  ;;  %v4431_v26 = vld [vmem:[%s6380_s4 + $0x40] sm:$0xff] }
 0x57c   : > { %v1888_v18 = vpack.c.bf16 %v4266_v41, %v4270_v10  ;;  %v4272_v37 = vpop.eup %4271  ;;  %4283 = vtanh.f32 %v5784_v49  ;;  %v2275_v49 = vadd.f32 %v5842_v20, %v2226_v19  ;;  %1926 = vperm.xlu0 %4006, %v4426_v59   ;;  %v4428_v41 = vld [vmem:[%s6380_s4 + $0x30] sm:$0xff]  ;;  %v6455_v53 = vld [vmem:[#allocation28_spill] sm:$0xff]  ;;  %v2325_v19 = vpop.permute.xlu2 %2324 }
 0x57d   : > { %v4274_v46 = vpop.eup %4273  ;;  %4285 = vtanh.f32 %v2273_v21  ;;  %v4430_v10 = vld [vmem:[%s6380_s4 + $0x48] sm:$0xff] }
 0x57e   : > { %2062 = vmatpush.bf16.msrb.mxu2 %v1888_v18  ;;  %3882 = vmatpush.bf16.msrb.mxu3 %v1888_v18  ;;  %v1886_v6 = vpack.c.bf16 %v4272_v37, %v4274_v46  ;;  %v4276_v63 = vpop.eup %4275  ;;  %4287 = vtanh.f32 %v2275_v49  ;;  %v6457_v18 = vld [vmem:[#allocation20_spill] sm:$0xff]  ;;  %v4432_v46 = vld [vmem:[%s6380_s4 + $0x50] sm:$0xff]  ;;  %v2317_v21 = vpop.permute.xlu1 %2316 }
 0x57f   : > { %2379 = vmatpush.bf16.msra.mxu0 %v2294_v40  ;;  %v4278_v47 = vpop.eup %4277  ;;  %4289 = vtanh.f32 %v2269_v48  ;;  %v3861_v40 = vld [vmem:[#allocation5 + $0x10] sm:$0xff] }
 0x580   : > { %v4280_v42 = vpop.eup %4279  ;;  %4291 = vtanh.f32 %v2271_v55 }
 0x581   : > { %v1884_v57 = vpack.c.bf16 %v4276_v63, %v4280_v42  ;;  %v4282_v36 = vpop.eup %4281  ;;  %4293 = vtanh.f32 %v2267_v50  ;;  %1922 = vperm.xlu2 %4008, %v4427_v43   ;;  %1930 = vperm.xlu1 %4007, %v4428_v41  }
 0x582   : > { %2063 = vmatpush.bf16.msrb.mxu2 %v1886_v6  ;;  %3883 = vmatpush.bf16.msrb.mxu3 %v1886_v6  ;;  %v1882_v60 = vpack.c.bf16 %v4278_v47, %v4282_v36  ;;  %v4284_v20 = vpop.eup %4283  ;;  %4295 = vtanh.f32 %v2265_v25 }
 0x583   : > { %2380 = vmatpush.bf16.msra.mxu0 %v2292_v5  ;;  %v2299_v22 = vpack.c.bf16 %v4284_v20, %v4284_v20  ;;  %v4286_v34 = vpop.eup %4285 }
 0x584   : > { %v4288_v27 = vpop.eup %4287  ;;  %2910 = vperm.xlu0 %4006, %v5700_v15   ;;  %v6456_v15 = vld [vmem:[#allocation24_spill] sm:$0xff] }
 0x585   : > { %v4290_v52 = vpop.eup %4289  ;;  %v2297_v32 = vpack.c.bf16 %v4288_v27, %v4286_v34 }
 0x586   : > { %2064 = vmatpush.bf16.msrb.mxu2 %v1884_v57  ;;  %3884 = vmatpush.bf16.msrb.mxu3 %v1884_v57  ;;  %v4292_v17 = vpop.eup %4291  ;;  %v2309_v54 = vpop.permute.xlu1 %2308 }
 0x587   : > { %3722 = vmatmul.msk.bf16.vlgmr.msra.gmra.mxu0 %vm2353_vm5, %v5951_v45  ;;  %v2295_v14 = vpack.c.bf16 %v4292_v17, %v4290_v52  ;;  %v3862_v17 = vld [vmem:[#allocation5 + $0x1c] sm:$0xff] }
 0x589   : > { %2914 = vperm.xlu1 %4007, %v6455_v53  }
 0x58a   : > { %2065 = vmatpush.bf16.msrb.mxu2 %v1882_v60  ;;  %3885 = vmatpush.bf16.msrb.mxu3 %v1882_v60  ;;  %v2321_v60 = vpop.permute.xlu2 %2320 }
 0x58c   : > { %2922 = vperm.xlu0 %4006, %v5665_v35   ;;  %v2306_v35 = vld [vmem:[#allocation5 + $0x18] sm:$0x1] }
 0x58d   : > { %v2348_v37 = vunpack.c.l.b16 %v2306_v35 }
 0x58e   : > { %2066 = vmatpush.bf16.msrb.mxu2 %v5793_v0  ;;  %3886 = vmatpush.bf16.msrb.mxu3 %v5793_v0  ;;  %v2371_v0 = vsel %vm2366_vm4, %v2299_v22, 0 }
 0x58f   : > { %v2352_v5 = vpack.c.b16 %v2348_v37, %v2348_v37 }
 0x591   : > { %1938 = vperm.xlu1 %4007, %v4431_v26  }
 0x592   : > { %2067 = vmatpush.bf16.msrb.mxu2 %v5779_v56  ;;  %3887 = vmatpush.bf16.msrb.mxu3 %v5779_v56  ;;  %v4294_v56 = vpop.eup %4293  ;;  %v2313_v48 = vpop.permute.xlu2 %2312 }
 0x593   : > { %v4296_v3 = vpop.eup %4295 }
 0x594   : > { %v2293_v12 = vpack.c.bf16 %v4294_v56, %v4296_v3  ;;  %1942 = vperm.xlu0 %4006, %v4430_v10  }
 0x595   : > { %3703 = vmatmul.msk.bf16.vlgmr.msrb.gmra.mxu2 %vm980_vm3, %v5919_v11  ;;  %v4429_v11 = vld [vmem:[%s6380_s4 + $0x38] sm:$0xff] }
 0x596   : > { %2405 = vmatpush.bf16.msra.mxu2 %v2371_v0  ;;  %1934 = vperm.xlu2 %4008, %v4429_v11  }
 0x597   : > { %3723 = vmatmul.msk.bf16.gmra.mxu0 %vm2353_vm5, %v3860_v44 }
 0x599   : > { %2930 = vperm.xlu1 %4007, %v6458_v1  }
 0x59a   : > { %2406 = vmatpush.bf16.msra.mxu2 %v2297_v32 }
 0x59c   : > { %2934 = vperm.xlu0 %4006, %v6459_v13  }
 0x59e   : > { %2407 = vmatpush.bf16.msra.mxu2 %v2295_v14  ;;  %2918 = vperm.xlu2 %4008, %v6456_v15  }
 0x5a1   : > { %1950 = vperm.xlu1 %4007, %v4433_v58  }
 0x5a2   : > { %2408 = vmatpush.bf16.msra.mxu2 %v2293_v12  ;;  %v3863_v12 = vld [vmem:[#allocation5 + $0x24] sm:$0xff] }
 0x5a5   : > { %3726 = vmatmul.msk.bf16.vlgmr.msra.gmra.mxu2 %vm2353_vm5, %v5951_v45 }
 0x5a6   : > { %2926 = vperm.xlu2 %4008, %v6457_v18  }
 0x5a7   : > { %3724 = vmatmul.msk.bf16.gmra.mxu0 %vm2353_vm5, %v3861_v40 }
 0x5ae   : > { %1946 = vperm.xlu2 %4008, %v4432_v46  }
 0x5b5   : > { %3727 = vmatmul.msk.bf16.gmra.mxu2 %vm2353_vm5, %v3860_v44 }
 0x5b6   : > { %1954 = vperm.xlu2 %4008, %v4434_v30  }
 0x5b7   : > { %3725 = vmatmul.msk.bf16.gmra.mxu0 %vm2353_vm5, %v2352_v5 }
 0x5c5   : > { %3728 = vmatmul.msk.bf16.gmra.mxu2 %vm2353_vm5, %v3861_v40 }
 0x5d5   : > { %3729 = vmatmul.msk.bf16.gmra.mxu2 %vm2353_vm5, %v2352_v5 }
 0x5f3   : > { %v6033_v6 = vpop.f32.mrf.mxu0 }
 0x5fb   : > { %v6035_v63 = vpop.f32.mrf.mxu0 }
 0x604   : > { %v2382_v47 = vpop.f32.mrf.mxu0 }
 0x605   : > { %v2383_v20 = vadd.f32 %v2382_v47, %v2309_v54 }
 0x60c   : > { %v2384_v24 = vpop.f32.mrf.mxu0 }
 0x60d   : > { %v2385_v55 = vadd.f32 %v2384_v24, %v2313_v48  ;;  %v3864_v24 = vld [vmem:[#allocation5 + $0x2c] sm:$0xff] }
 0x614   : > { %v2387_v42 = vpop.f32.mrf.mxu0 }
 0x615   : > { %v2388_v7 = vadd.f32 %v2387_v42, %v2317_v21 }
 0x618   : > { %v6037_v2 = vpop.f32.mrf.mxu2 }
 0x61c   : > { %v2389_v29 = vpop.f32.mrf.mxu0 }
 0x61d   : > { %v2390_v28 = vadd.f32 %v2389_v29, %v2321_v60 }
 0x620   : > { %v6039_v51 = vpop.f32.mrf.mxu2 }
 0x624   : > { %v2392_v45 = vpop.f32.mrf.mxu0 }
 0x625   : > { %v2393_v9 = vadd.f32 %v2392_v45, %v2325_v19  ;;  %v2458_v45 = vld [vmem:[#allocation5 + $0x34] sm:$0x1] }
 0x627   : > { %4297 = vtanh.f32 %v2393_v9 }
 0x628   : > { %v6041_v57 = vpop.f32.mrf.mxu2 }
 0x629   : > { %v2411_v37 = vadd.f32 %v6041_v57, %v2309_v54  ;;  %v3854_v57 = vld [vmem:[%s6379_s3 + $0xd8] sm:$0xff]  ;;  %v2477_v54 = vpop.permute.xlu1 %2476 }
 0x62a   : > { %3697 = vmatmul.msk.bf16.vlgmr.msrb.gmra.mxu1 %vm980_vm3, %v3854_v57  ;;  %3704 = vmatmul.msk.bf16.vlgmr.msrb.gmra.mxu3 %vm980_vm3, %v3854_v57 }
 0x62c   : > { %v2394_v36 = vpop.f32.mrf.mxu0 }
 0x62d   : > { %v2395_v23 = vadd.f32 %v2394_v36, %v2329_v8  ;;  %v4298_v16 = vpop.eup %4297  ;;  %v3855_v36 = vld [vmem:[%s6379_s3 + $0xe0] sm:$0xff] }
 0x630   : > { %v2412_v62 = vpop.f32.mrf.mxu2 }
 0x631   : > { %v2413_v26 = vadd.f32 %v2412_v62, %v2313_v48  ;;  %v3857_v62 = vld [vmem:[%s6379_s3 + $0xf0] sm:$0xff] }
 0x634   : > { %v2397_v49 = vpop.f32.mrf.mxu0 }
 0x635   : > { %v2398_v33 = vadd.f32 %v2397_v49, %v2333_v61 }
 0x637   : > { %4299 = vtanh.f32 %v2398_v33  ;;  %v3671_v33 = vld [vmem:[%s6379_s3 + $0x100] sm:$0x3] }
 0x638   : > { %4301 = vtanh.f32 %v2395_v23  ;;  %v2415_v4 = vpop.f32.mrf.mxu2 }
 0x639   : > { %4303 = vtanh.f32 %v2388_v7  ;;  %v2416_v40 = vadd.f32 %v2415_v4, %v2317_v21  ;;  %v3856_v21 = vld [vmem:[%s6379_s3 + $0xe8] sm:$0xff]  ;;  %v1982_v7 = vunpack.c.l.b16 %v3671_v33 }
 0x63a   : > { %4305 = vtanh.f32 %v2390_v28  ;;  %3698 = vmatmul.msk.bf16.gmra.mxu1 %vm980_vm3, %v3855_v36  ;;  %3705 = vmatmul.msk.bf16.gmra.mxu3 %vm980_vm3, %v3855_v36 }
 0x63b   : > { %4307 = vtanh.f32 %v2383_v20  ;;  %v1989_v28 = vpack.c.b16 %v1982_v7, %v1982_v7  ;;  %v2481_v20 = vpop.permute.xlu2 %2480 }
 0x63c   : > { %v2399_v38 = vpop.f32.mrf.mxu0  ;;  %4309 = vtanh.f32 %v2385_v55  ;;  %v2485_v55 = vpop.permute.xlu0 %2484 }
 0x63d   : > { %v4300_v31 = vpop.eup %4299  ;;  %v2469_v38 = vpop.permute.xlu1 %2468 }
 0x63e   : > { %v4302_v22 = vpop.eup %4301  ;;  %v2449_v50 = vpack.c.bf16 %v4300_v31, %v4300_v31 }
 0x63f   : > { %v4304_v39 = vpop.eup %4303  ;;  %v2447_v59 = vpack.c.bf16 %v4302_v22, %v4298_v16 }
 0x640   : > { %v2417_v25 = vpop.f32.mrf.mxu2  ;;  %v2518_v34 = vsel %vm2366_vm4, %v2449_v50, 0  ;;  %v4306_v27 = vpop.eup %4305 }
 0x641   : > { %2527 = vmatpush.bf16.msrb.mxu0 %v2518_v34  ;;  %v4308_v0 = vpop.eup %4307  ;;  %v2445_v44 = vpack.c.bf16 %v4306_v27, %v4304_v39  ;;  %v2418_v53 = vadd.f32 %v2417_v25, %v2321_v60 }
 0x642   : > { %v4310_v43 = vpop.eup %4309 }
 0x643   : > { %v2443_v32 = vpack.c.bf16 %v4310_v43, %v4308_v0  ;;  %v2473_v34 = vpop.permute.xlu2 %2472 }
 0x644   : > { %v2461_v0 = vpop.permute.xlu0 %2460 }
 0x645   : > { %2528 = vmatpush.bf16.msrb.mxu0 %v2447_v59 }
 0x648   : > { %v2420_v52 = vpop.f32.mrf.mxu2 }
 0x649   : > { %2529 = vmatpush.bf16.msrb.mxu0 %v2445_v44  ;;  %v2421_v11 = vadd.f32 %v2420_v52, %v2325_v19  ;;  %v2465_v44 = vpop.permute.xlu1 %2464 }
 0x64a   : > { %3699 = vmatmul.msk.bf16.gmra.mxu1 %vm980_vm3, %v3856_v21  ;;  %3706 = vmatmul.msk.bf16.gmra.mxu3 %vm980_vm3, %v3856_v21 }
 0x64d   : > { %2530 = vmatpush.bf16.msrb.mxu0 %v2443_v32 }
 0x650   : > { %v2422_v56 = vpop.f32.mrf.mxu2  ;;  %3742 = vmatmul.msk.bf16.vlgmr.msrb.gmra.mxu0 %vm2353_vm5, %v3862_v17 }
 0x651   : > { %v2423_v3 = vadd.f32 %v2422_v56, %v2329_v8  ;;  %v3858_v8 = vld [vmem:[%s6379_s3 + $0xf8] sm:$0xff] }
 0x658   : > { %v2425_v14 = vpop.f32.mrf.mxu2 }
 0x659   : > { %v2426_v41 = vadd.f32 %v2425_v14, %v2333_v61  ;;  %v2500_v61 = vunpack.c.l.b16 %v2458_v45 }
 0x65a   : > { %3700 = vmatmul.msk.bf16.gmra.mxu1 %vm980_vm3, %v3857_v62  ;;  %3707 = vmatmul.msk.bf16.gmra.mxu3 %vm980_vm3, %v3857_v62 }
 0x65b   : > { %4311 = vtanh.f32 %v2426_v41  ;;  %v2504_v19 = vpack.c.b16 %v2500_v61, %v2500_v61 }
 0x65c   : > { %4313 = vtanh.f32 %v2423_v3 }
 0x65d   : > { %4315 = vtanh.f32 %v2421_v11 }
 0x65e   : > { %4317 = vtanh.f32 %v2418_v53 }
 0x65f   : > { %4319 = vtanh.f32 %v2416_v40 }
 0x660   : > { %v2427_v15 = vpop.f32.mrf.mxu2  ;;  %3743 = vmatmul.msk.bf16.gmra.mxu0 %vm2353_vm5, %v3863_v12  ;;  %4321 = vtanh.f32 %v2413_v26 }
 0x661   : > { %v4312_v10 = vpop.eup %4311  ;;  %4323 = vtanh.f32 %v2411_v37 }
 0x662   : > { %v2450_v35 = vpack.c.bf16 %v4312_v10, %v4312_v10  ;;  %v4314_v18 = vpop.eup %4313 }
 0x663   : > { %v4316_v13 = vpop.eup %4315 }
 0x664   : > { %v2521_v1 = vsel %vm2366_vm4, %v2450_v35, 0  ;;  %v2448_v5 = vpack.c.bf16 %v4314_v18, %v4316_v13  ;;  %v4318_v46 = vpop.eup %4317 }
 0x665   : > { %2555 = vmatpush.bf16.msrb.mxu2 %v2521_v1  ;;  %v4320_v58 = vpop.eup %4319  ;;  %v3865_v1 = vld [vmem:[#allocation5 + $0x38] sm:$0xff] }
 0x666   : > { %v2446_v30 = vpack.c.bf16 %v4318_v46, %v4320_v58  ;;  %v4322_v47 = vpop.eup %4321 }
 0x667   : > { %v4324_v42 = vpop.eup %4323 }
 0x668   : > { %v2444_v29 = vpack.c.bf16 %v4322_v47, %v4324_v42 }
 0x669   : > { %2556 = vmatpush.bf16.msrb.mxu2 %v2448_v5 }
 0x66a   : > { %3701 = vmatmul.msk.bf16.gmra.mxu1 %vm980_vm3, %v3858_v8  ;;  %3708 = vmatmul.msk.bf16.gmra.mxu3 %vm980_vm3, %v3858_v8 }
 0x66d   : > { %2557 = vmatpush.bf16.msrb.mxu2 %v2446_v30  ;;  %v3866_v30 = vld [vmem:[#allocation5 + $0x40] sm:$0xff] }
 0x670   : > { %3744 = vmatmul.msk.bf16.gmra.mxu0 %vm2353_vm5, %v3864_v24 }
 0x671   : > { %2558 = vmatpush.bf16.msrb.mxu2 %v2444_v29 }
 0x674   : > { %3746 = vmatmul.msk.bf16.vlgmr.msrb.gmra.mxu2 %vm2353_vm5, %v3862_v17 }
 0x67a   : > { %3702 = vmatmul.msk.bf16.gmra.mxu1 %vm980_vm3, %v1989_v28  ;;  %3709 = vmatmul.msk.bf16.gmra.mxu3 %vm980_vm3, %v1989_v28 }
 0x680   : > { %3745 = vmatmul.msk.bf16.gmra.mxu0 %vm2353_vm5, %v2504_v19 }
 0x684   : > { %3747 = vmatmul.msk.bf16.gmra.mxu2 %vm2353_vm5, %v3863_v12 }
 0x694   : > { %3748 = vmatmul.msk.bf16.gmra.mxu2 %vm2353_vm5, %v3864_v24 }
 0x6a4   : > { %3749 = vmatmul.msk.bf16.gmra.mxu2 %vm2353_vm5, %v2504_v19 }
 0x6a7   : > { %v6087_v37 = vpop.f32.mrf.mxu1 }
 0x6af   : > { %v6090_v5 = vpop.f32.mrf.mxu1 }
 0x6b7   : > { %v6092_v58 = vpop.f32.mrf.mxu1 }
 0x6bf   : > { %v6095_v61 = vpop.f32.mrf.mxu1 }
 0x6c7   : > { %v6099_v28 = vpop.f32.mrf.mxu1 }
 0x6cd   : > { %v2532_v60 = vpop.f32.mrf.mxu0 }
 0x6ce   : > { %v2533_v43 = vadd.f32 %v2532_v60, %v2461_v0 }
 0x6d5   : > { %v2534_v9 = vpop.f32.mrf.mxu0 }
 0x6d6   : > { %v2535_v32 = vadd.f32 %v2534_v9, %v2465_v44 }
 0x6dd   : > { %v2537_v23 = vpop.f32.mrf.mxu0 }
 0x6de   : > { %v2538_v59 = vadd.f32 %v2537_v23, %v2469_v38 }
 0x6e5   : > { %v2539_v49 = vpop.f32.mrf.mxu0 }
 0x6e6   : > { %v2540_v27 = vadd.f32 %v2539_v49, %v2473_v34  ;;  %v3867_v49 = vld [vmem:[#allocation5 + $0x48] sm:$0xff] }
 0x6ed   : > { %v2542_v4 = vpop.f32.mrf.mxu0 }
 0x6ee   : > { %v2543_v31 = vadd.f32 %v2542_v4, %v2477_v54 }
 0x6f0   : > { %4325 = vtanh.f32 %v2543_v31 }
 0x6f5   : > { %v2544_v48 = vpop.f32.mrf.mxu0 }
 0x6f6   : > { %v2545_v50 = vadd.f32 %v2544_v48, %v2481_v20  ;;  %v4326_v52 = vpop.eup %4325 }
 0x6f7   : > { %v6084_v16 = vpop.f32.mrf.mxu2 }
 0x6f8   : > { %v2561_v9 = vadd.f32 %v6084_v16, %v2461_v0 }
 0x6fd   : > { %v2547_v22 = vpop.f32.mrf.mxu0 }
 0x6fe   : > { %v2548_v25 = vadd.f32 %v2547_v22, %v2485_v55  ;;  %v6104_v22 = vpop.f32.mrf.mxu3 }
 0x6ff   : > { %v2562_v39 = vpop.f32.mrf.mxu2 }
 0x700   : > { %4327 = vtanh.f32 %v2548_v25  ;;  %v2563_v21 = vadd.f32 %v2562_v39, %v2465_v44 }
 0x701   : > { %4329 = vtanh.f32 %v2545_v50 }
 0x702   : > { %4331 = vtanh.f32 %v2538_v59 }
 0x703   : > { %4333 = vtanh.f32 %v2540_v27 }
 0x704   : > { %4335 = vtanh.f32 %v2533_v43 }
 0x705   : > { %v2549_v17 = vpop.f32.mrf.mxu0  ;;  %4337 = vtanh.f32 %v2535_v32 }
 0x706   : > { %v4328_v56 = vpop.eup %4327 }
 0x707   : > { %v4330_v14 = vpop.eup %4329  ;;  %v2599_v41 = vpack.c.bf16 %v4328_v56, %v4328_v56  ;;  %v2565_v3 = vpop.f32.mrf.mxu2 }
 0x708   : > { %v4332_v12 = vpop.eup %4331  ;;  %v2597_v53 = vpack.c.bf16 %v4330_v14, %v4326_v52  ;;  %v2566_v19 = vadd.f32 %v2565_v3, %v2469_v38  ;;  %v6102_v38 = vpop.f32.mrf.mxu1 }
 0x709   : > { %v2668_v11 = vsel %vm2366_vm4, %v2599_v41, 0  ;;  %v4334_v40 = vpop.eup %4333 }
 0x70a   : > { %2677 = vmatpush.bf16.msra.mxu1 %v2668_v11  ;;  %v4336_v15 = vpop.eup %4335  ;;  %v2595_v10 = vpack.c.bf16 %v4334_v40, %v4332_v12 }
 0x70b   : > { %v4338_v26 = vpop.eup %4337 }
 0x70c   : > { %v2593_v18 = vpack.c.bf16 %v4338_v26, %v4336_v15 }
 0x70e   : > { %2678 = vmatpush.bf16.msra.mxu1 %v2597_v53 }
 0x70f   : > { %v2567_v35 = vpop.f32.mrf.mxu2 }
 0x710   : > { %v2568_v45 = vadd.f32 %v2567_v35, %v2473_v34  ;;  %v6107_v25 = vpop.f32.mrf.mxu1  ;;  %v6110_v34 = vpop.f32.mrf.mxu3 }
 0x711   : > { %v2635_v35 = vpop.permute.xlu2 %2634 }
 0x712   : > { %2679 = vmatpush.bf16.msra.mxu1 %v2595_v10 }
 0x716   : > { %2680 = vmatpush.bf16.msra.mxu1 %v2593_v18 }
 0x717   : > { %v2570_v13 = vpop.f32.mrf.mxu2 }
 0x718   : > { %v2571_v29 = vadd.f32 %v2570_v13, %v2477_v54  ;;  %v6112_v39 = vpop.f32.mrf.mxu1  ;;  %v6114_v59 = vpop.f32.mrf.mxu3 }
 0x719   : > { %3762 = vmatmul.msk.bf16.vlgmr.msra.gmra.mxu1 %vm2353_vm5, %v3865_v1  ;;  %v2619_v13 = vpop.permute.xlu2 %2618 }
 0x71f   : > { %v2572_v46 = vpop.f32.mrf.mxu2 }
 0x720   : > { %v2573_v42 = vadd.f32 %v2572_v46, %v2481_v20  ;;  %v6117_v27 = vpop.f32.mrf.mxu1  ;;  %v6119_v0 = vpop.f32.mrf.mxu3 }
 0x721   : > { %v2627_v46 = vpop.permute.xlu0 %2626 }
 0x727   : > { %v2575_v47 = vpop.f32.mrf.mxu2 }
 0x728   : > { %v2576_v24 = vadd.f32 %v2575_v47, %v2485_v55  ;;  %v2608_v55 = vld [vmem:[#allocation5 + $0x50] sm:$0x1]  ;;  %v6121_v44 = vpop.f32.mrf.mxu1  ;;  %v6123_v43 = vpop.f32.mrf.mxu3 }
 0x729   : > { %3763 = vmatmul.msk.bf16.gmra.mxu1 %vm2353_vm5, %v3866_v30  ;;  %v2650_v31 = vunpack.c.l.b16 %v2608_v55 }
 0x72a   : > { %4339 = vtanh.f32 %v2576_v24 }
 0x72b   : > { %4341 = vtanh.f32 %v2573_v42  ;;  %v2654_v50 = vpack.c.b16 %v2650_v31, %v2650_v31 }
 0x72c   : > { %4343 = vtanh.f32 %v2571_v29 }
 0x72d   : > { %4345 = vtanh.f32 %v2568_v45 }
 0x72e   : > { %4347 = vtanh.f32 %v2566_v19 }
 0x72f   : > { %v2577_v57 = vpop.f32.mrf.mxu2  ;;  %4349 = vtanh.f32 %v2563_v21  ;;  %v2615_v21 = vpop.permute.xlu0 %2614 }
 0x730   : > { %v4340_v36 = vpop.eup %4339  ;;  %4351 = vtanh.f32 %v2561_v9  ;;  %v6126_v52 = vpop.f32.mrf.mxu1 }
 0x731   : > { %v2600_v62 = vpack.c.bf16 %v4340_v36, %v4340_v36  ;;  %v4342_v60 = vpop.eup %4341  ;;  %v6128_v32 = vpop.f32.mrf.mxu3 }
 0x732   : > { %v4344_v23 = vpop.eup %4343  ;;  %v2611_v36 = vpop.permute.xlu2 %2610 }
 0x733   : > { %v2671_v8 = vsel %vm2366_vm4, %v2600_v62, 0  ;;  %v2598_v33 = vpack.c.bf16 %v4342_v60, %v4344_v23  ;;  %v4346_v7 = vpop.eup %4345 }
 0x734   : > { %2705 = vmatpush.bf16.msra.mxu3 %v2671_v8  ;;  %v4348_v4 = vpop.eup %4347 }
 0x735   : > { %v2596_v54 = vpack.c.bf16 %v4346_v7, %v4348_v4  ;;  %v4350_v20 = vpop.eup %4349 }
 0x736   : > { %v4352_v48 = vpop.eup %4351 }
 0x737   : > { %v2594_v16 = vpack.c.bf16 %v4350_v20, %v4352_v48 }
 0x738   : > { %2706 = vmatpush.bf16.msra.mxu3 %v2598_v33  ;;  %v2058_v17 = vpop.f32.mrf.mxu1 }
 0x739   : > { %3764 = vmatmul.msk.bf16.gmra.mxu1 %vm2353_vm5, %v3867_v49  ;;  %v6130_v56 = vpop.f32.mrf.mxu3 }
 0x73c   : > { %2707 = vmatpush.bf16.msra.mxu3 %v2596_v54 }
 0x740   : > { %2708 = vmatpush.bf16.msra.mxu3 %v2594_v16 }
 0x741   : > { %v6133_v14 = vpop.f32.mrf.mxu3 }
 0x743   : > { %3766 = vmatmul.msk.bf16.vlgmr.msra.gmra.mxu3 %vm2353_vm5, %v3865_v1  ;;  %v2631_v1 = vpop.permute.xlu1 %2630 }
 0x749   : > { %3765 = vmatmul.msk.bf16.gmra.mxu1 %vm2353_vm5, %v2654_v50  ;;  %v6135_v41 = vpop.f32.mrf.mxu3 }
 0x74b   : > { %v2623_v45 = vpop.permute.xlu1 %2622 }
 0x751   : > { %v6137_v3 = vpop.f32.mrf.mxu3 }
 0x753   : > { %3767 = vmatmul.msk.bf16.gmra.mxu3 %vm2353_vm5, %v3866_v30 }
 0x759   : > { %v6139_v11 = vpop.f32.mrf.mxu3 }
 0x761   : > { %v2101_v53 = vpop.f32.mrf.mxu3 }
 0x762   : > { %v3868_v53 = vld [vmem:[#allocation5 + $0x54] sm:$0xff] }
 0x763   : > { %3768 = vmatmul.msk.bf16.gmra.mxu3 %vm2353_vm5, %v3867_v49 }
 0x773   : > { %3769 = vmatmul.msk.bf16.gmra.mxu3 %vm2353_vm5, %v2654_v50 }
 0x796   : > { %v2682_v12 = vpop.f32.mrf.mxu1 }
 0x797   : > { %v2683_v62 = vadd.f32 %v2682_v12, %v2611_v36 }
 0x79e   : > { %v2684_v40 = vpop.f32.mrf.mxu1 }
 0x79f   : > { %v2685_v9 = vadd.f32 %v2684_v40, %v2615_v21 }
 0x7a6   : > { %v2687_v15 = vpop.f32.mrf.mxu1 }
 0x7a7   : > { %v2688_v19 = vadd.f32 %v2687_v15, %v2619_v13 }
 0x7ae   : > { %v2689_v10 = vpop.f32.mrf.mxu1 }
 0x7af   : > { %v2690_v57 = vadd.f32 %v2689_v10, %v2623_v45  ;;  %v3869_v10 = vld [vmem:[#allocation5 + $0x5c] sm:$0xff] }
 0x7b6   : > { %v2692_v26 = vpop.f32.mrf.mxu1 }
 0x7b7   : > { %v2693_v30 = vadd.f32 %v2692_v26, %v2627_v46 }
 0x7b9   : > { %4353 = vtanh.f32 %v2693_v30 }
 0x7be   : > { %v2694_v18 = vpop.f32.mrf.mxu1 }
 0x7bf   : > { %v2695_v47 = vadd.f32 %v2694_v18, %v2631_v1  ;;  %v4354_v60 = vpop.eup %4353 }
 0x7c6   : > { %v2697_v24 = vpop.f32.mrf.mxu1  ;;  %v2710_v42 = vpop.f32.mrf.mxu3 }
 0x7c7   : > { %v2698_v29 = vadd.f32 %v2697_v24, %v2635_v35 }
 0x7c9   : > { %4355 = vtanh.f32 %v2698_v29 }
 0x7ca   : > { %4357 = vtanh.f32 %v2695_v47 }
 0x7cb   : > { %4359 = vtanh.f32 %v2688_v19  ;;  %v3870_v19 = vld [vmem:[#allocation5 + $0x64] sm:$0xff] }
 0x7cc   : > { %4361 = vtanh.f32 %v2690_v57 }
 0x7cd   : > { %4363 = vtanh.f32 %v2683_v62 }
 0x7ce   : > { %v2712_v8 = vpop.f32.mrf.mxu3  ;;  %v2699_v23 = vpop.f32.mrf.mxu1  ;;  %4365 = vtanh.f32 %v2685_v9 }
 0x7cf   : > { %v4356_v49 = vpop.eup %4355 }
 0x7d0   : > { %v4358_v33 = vpop.eup %4357  ;;  %v2749_v7 = vpack.c.bf16 %v4356_v49, %v4356_v49  ;;  %v2711_v49 = vadd.f32 %v2710_v42, %v2611_v36 }
 0x7d1   : > { %v4360_v54 = vpop.eup %4359  ;;  %v2747_v20 = vpack.c.bf16 %v4358_v33, %v4354_v60  ;;  %v2713_v60 = vadd.f32 %v2712_v8, %v2615_v21 }
 0x7d2   : > { %v2818_v4 = vsel %vm2366_vm4, %v2749_v7, 0  ;;  %v4362_v48 = vpop.eup %4361 }
 0x7d3   : > { %2827 = vmatpush.bf16.msra.mxu0 %v2818_v4  ;;  %v4364_v55 = vpop.eup %4363  ;;  %v2745_v31 = vpack.c.bf16 %v4362_v48, %v4360_v54 }
 0x7d4   : > { %v4366_v50 = vpop.eup %4365 }
 0x7d5   : > { %v2743_v17 = vpack.c.bf16 %v4366_v50, %v4364_v55  ;;  %v2777_v50 = vpop.permute.xlu2 %2776 }
 0x7d6   : > { %v2715_v16 = vpop.f32.mrf.mxu3 }
 0x7d7   : > { %2828 = vmatpush.bf16.msra.mxu0 %v2747_v20  ;;  %v2716_v29 = vadd.f32 %v2715_v16, %v2619_v13  ;;  %v2758_v13 = vld [vmem:[#allocation5 + $0x6c] sm:$0x1] }
 0x7d8   : > { %v2800_v8 = vunpack.c.l.b16 %v2758_v13 }
 0x7da   : > { %v2804_v36 = vpack.c.b16 %v2800_v8, %v2800_v8 }
 0x7db   : > { %2829 = vmatpush.bf16.msra.mxu0 %v2745_v31  ;;  %v2785_v31 = vpop.permute.xlu1 %2784 }
 0x7de   : > { %v2717_v12 = vpop.f32.mrf.mxu3 }
 0x7df   : > { %2830 = vmatpush.bf16.msra.mxu0 %v2743_v17  ;;  %v2718_v24 = vadd.f32 %v2717_v12, %v2623_v45 }
 0x7e2   : > { %3782 = vmatmul.msk.bf16.vlgmr.msra.gmra.mxu0 %vm2353_vm5, %v3868_v53 }
 0x7e3   : > { %v2769_v12 = vpop.permute.xlu1 %2768 }
 0x7e6   : > { %v2720_v40 = vpop.f32.mrf.mxu3 }
 0x7e7   : > { %v2721_v47 = vadd.f32 %v2720_v40, %v2627_v46  ;;  %v2773_v40 = vpop.permute.xlu2 %2772 }
 0x7ee   : > { %v2722_v15 = vpop.f32.mrf.mxu3 }
 0x7ef   : > { %v2723_v30 = vadd.f32 %v2722_v15, %v2631_v1 }
 0x7f2   : > { %3783 = vmatmul.msk.bf16.gmra.mxu0 %vm2353_vm5, %v3869_v10 }
 0x7f6   : > { %v2725_v26 = vpop.f32.mrf.mxu3 }
 0x7f7   : > { %v2726_v18 = vadd.f32 %v2725_v26, %v2635_v35  ;;  %v2781_v26 = vpop.permute.xlu0 %2780 }
 0x7f9   : > { %4367 = vtanh.f32 %v2726_v18 }
 0x7fa   : > { %4369 = vtanh.f32 %v2723_v30 }
 0x7fb   : > { %4371 = vtanh.f32 %v2721_v47 }
 0x7fc   : > { %4373 = vtanh.f32 %v2718_v24  ;;  %v2761_v24 = vpop.permute.xlu1 %2760 }
 0x7fd   : > { %4375 = vtanh.f32 %v2716_v29 }
 0x7fe   : > { %v2727_v57 = vpop.f32.mrf.mxu3  ;;  %4377 = vtanh.f32 %v2713_v60 }
 0x7ff   : > { %v4368_v62 = vpop.eup %4367  ;;  %4379 = vtanh.f32 %v2711_v49 }
 0x800   : > { %v2750_v9 = vpack.c.bf16 %v4368_v62, %v4368_v62  ;;  %v4370_v23 = vpop.eup %4369 }
 0x801   : > { %v4372_v1 = vpop.eup %4371 }
 0x802   : > { %3784 = vmatmul.msk.bf16.gmra.mxu0 %vm2353_vm5, %v3870_v19  ;;  %v2821_v35 = vsel %vm2366_vm4, %v2750_v9, 0  ;;  %v2748_v46 = vpack.c.bf16 %v4370_v23, %v4372_v1  ;;  %v4374_v45 = vpop.eup %4373 }
 0x803   : > { %2855 = vmatpush.bf16.msra.mxu2 %v2821_v35  ;;  %v4376_v33 = vpop.eup %4375 }
 0x804   : > { %v2746_v7 = vpack.c.bf16 %v4374_v45, %v4376_v33  ;;  %v4378_v21 = vpop.eup %4377 }
 0x805   : > { %v4380_v4 = vpop.eup %4379 }
 0x806   : > { %v2744_v42 = vpack.c.bf16 %v4378_v21, %v4380_v4 }
 0x807   : > { %2856 = vmatpush.bf16.msra.mxu2 %v2748_v46 }
 0x80b   : > { %2857 = vmatpush.bf16.msra.mxu2 %v2746_v7 }
 0x80f   : > { %2858 = vmatpush.bf16.msra.mxu2 %v2744_v42 }
 0x812   : > { %3785 = vmatmul.msk.bf16.gmra.mxu0 %vm2353_vm5, %v2804_v36  ;;  %3786 = vmatmul.msk.bf16.vlgmr.msra.gmra.mxu2 %vm2353_vm5, %v3868_v53 }
 0x822   : > { %3787 = vmatmul.msk.bf16.gmra.mxu2 %vm2353_vm5, %v3869_v10 }
 0x832   : > { %3788 = vmatmul.msk.bf16.gmra.mxu2 %vm2353_vm5, %v3870_v19  ;;  %v2765_v19 = vpop.permute.xlu2 %2764 }
 0x842   : > { %3789 = vmatmul.msk.bf16.gmra.mxu2 %vm2353_vm5, %v2804_v36  ;;  %v3871_v36 = vld [vmem:[#allocation5 + $0x70] sm:$0xff] }
 0x85f   : > { %v2832_v54 = vpop.f32.mrf.mxu0 }
 0x860   : > { %v2833_v57 = vadd.f32 %v2832_v54, %v2761_v24 }
 0x867   : > { %v2834_v20 = vpop.f32.mrf.mxu0 }
 0x868   : > { %v2835_v60 = vadd.f32 %v2834_v20, %v2765_v19 }
 0x86f   : > { %v2837_v48 = vpop.f32.mrf.mxu0 }
 0x870   : > { %v2838_v10 = vadd.f32 %v2837_v48, %v2769_v12  ;;  %v3872_v48 = vld [vmem:[#allocation5 + $0x78] sm:$0xff] }
 0x877   : > { %v2839_v16 = vpop.f32.mrf.mxu0 }
 0x878   : > { %v2840_v47 = vadd.f32 %v2839_v16, %v2773_v40 }
 0x87f   : > { %v2842_v55 = vpop.f32.mrf.mxu0 }
 0x880   : > { %v2843_v15 = vadd.f32 %v2842_v55, %v2777_v50 }
 0x882   : > { %4381 = vtanh.f32 %v2843_v15 }
 0x887   : > { %v2844_v17 = vpop.f32.mrf.mxu0 }
 0x888   : > { %v2845_v18 = vadd.f32 %v2844_v17, %v2781_v26  ;;  %v4382_v62 = vpop.eup %4381 }
 0x88f   : > { %v2847_v53 = vpop.f32.mrf.mxu0 }
 0x890   : > { %v2848_v30 = vadd.f32 %v2847_v53, %v2785_v31 }
 0x892   : > { %4383 = vtanh.f32 %v2848_v30 }
 0x893   : > { %4385 = vtanh.f32 %v2845_v18  ;;  %v3873_v18 = vld [vmem:[#allocation5 + $0x80] sm:$0xff] }
 0x894   : > { %4387 = vtanh.f32 %v2838_v10 }
 0x895   : > { %v2860_v29 = vpop.f32.mrf.mxu2  ;;  %4389 = vtanh.f32 %v2840_v47 }
 0x896   : > { %4391 = vtanh.f32 %v2833_v57 }
 0x897   : > { %v2849_v9 = vpop.f32.mrf.mxu0  ;;  %4393 = vtanh.f32 %v2835_v60 }
 0x898   : > { %v4384_v23 = vpop.eup %4383  ;;  %v2908_v9 = vld [vmem:[#allocation5 + $0x88] sm:$0x1] }
 0x899   : > { %v4386_v49 = vpop.eup %4385  ;;  %v2899_v35 = vpack.c.bf16 %v4384_v23, %v4384_v23 }
 0x89a   : > { %v4388_v46 = vpop.eup %4387  ;;  %v2897_v45 = vpack.c.bf16 %v4386_v49, %v4382_v62  ;;  %v2861_v49 = vadd.f32 %v2860_v29, %v2761_v24  ;;  %v6161_v29 = vpop.permute.xlu1 %1910 }
 0x89b   : > { %v2968_v1 = vsel %vm2366_vm4, %v2899_v35, 0  ;;  %v4390_v13 = vpop.eup %4389 }
 0x89c   : > { %2977 = vmatpush.bf16.msrb.mxu1 %v2968_v1  ;;  %v4392_v7 = vpop.eup %4391  ;;  %v2895_v21 = vpack.c.bf16 %v4390_v13, %v4388_v46  ;;  %v6163_v13 = vpop.permute.xlu0 %1906 }
 0x89d   : > { %v2862_v33 = vpop.f32.mrf.mxu2  ;;  %v4394_v8 = vpop.eup %4393 }
 0x89e   : > { %v2893_v4 = vpack.c.bf16 %v4394_v8, %v4392_v7  ;;  %v2863_v62 = vadd.f32 %v2862_v33, %v2765_v19  ;;  %v6167_v7 = vpop.permute.xlu2 %1914 }
 0x8a0   : > { %2978 = vmatpush.bf16.msrb.mxu1 %v2897_v45 }
 0x8a2   : > { %v6165_v33 = vpop.permute.xlu1 %1918 }
 0x8a4   : > { %2979 = vmatpush.bf16.msrb.mxu1 %v2895_v21  ;;  %v6169_v21 = vpop.permute.xlu0 %1926 }
 0x8a5   : > { %v2865_v42 = vpop.f32.mrf.mxu2 }
 0x8a6   : > { %v2866_v10 = vadd.f32 %v2865_v42, %v2769_v12 }
 0x8a8   : > { %2980 = vmatpush.bf16.msrb.mxu1 %v2893_v4  ;;  %v6173_v4 = vpop.permute.xlu2 %1922 }
 0x8aa   : > { %v6171_v8 = vpop.permute.xlu1 %1930 }
 0x8ab   : > { %3802 = vmatmul.msk.bf16.vlgmr.msrb.gmra.mxu1 %vm2353_vm5, %v3871_v36 }
 0x8ac   : > { %v6175_v42 = vpop.permute.xlu0 %2910 }
 0x8ad   : > { %v2867_v54 = vpop.f32.mrf.mxu2 }
 0x8ae   : > { %v2868_v30 = vadd.f32 %v2867_v54, %v2773_v40  ;;  %v2027_v54 = vadd.f32 %v6033_v6, %v6163_v13 }
 0x8b5   : > { %v2870_v20 = vpop.f32.mrf.mxu2 }
 0x8b6   : > { %v2871_v53 = vadd.f32 %v2870_v20, %v2777_v50  ;;  %v2950_v50 = vunpack.c.l.b16 %v2908_v9 }
 0x8b8   : > { %v2954_v1 = vpack.c.b16 %v2950_v50, %v2950_v50 }
 0x8bb   : > { %3803 = vmatmul.msk.bf16.gmra.mxu1 %vm2353_vm5, %v3872_v48 }
 0x8bd   : > { %v2872_v16 = vpop.f32.mrf.mxu2 }
 0x8be   : > { %v2873_v15 = vadd.f32 %v2872_v16, %v2781_v26 }
 0x8c5   : > { %v2875_v55 = vpop.f32.mrf.mxu2 }
 0x8c6   : > { %v2876_v17 = vadd.f32 %v2875_v55, %v2785_v31 }
 0x8c8   : > { %4395 = vtanh.f32 %v2876_v17 }
 0x8c9   : > { %4397 = vtanh.f32 %v2873_v15  ;;  %v6185_v15 = vpop.permute.xlu2 %1934 }
 0x8ca   : > { %4399 = vtanh.f32 %v2871_v53 }
 0x8cb   : > { %3804 = vmatmul.msk.bf16.gmra.mxu1 %vm2353_vm5, %v3873_v18  ;;  %4401 = vtanh.f32 %v2868_v30  ;;  %v2029_v30 = vadd.f32 %v6035_v63, %v6161_v29  ;;  %v2032_v63 = vadd.f32 %v6087_v37, %v6167_v7  ;;  %v2034_v37 = vadd.f32 %v6090_v5, %v6165_v33 }
 0x8cc   : > { %4403 = vtanh.f32 %v2866_v10 }
 0x8cd   : > { %v2877_v47 = vpop.f32.mrf.mxu2  ;;  %4405 = vtanh.f32 %v2863_v62 }
 0x8ce   : > { %v4396_v57 = vpop.eup %4395  ;;  %4407 = vtanh.f32 %v2861_v49 }
 0x8cf   : > { %v2900_v60 = vpack.c.bf16 %v4396_v57, %v4396_v57  ;;  %v4398_v23 = vpop.eup %4397 }
 0x8d0   : > { %v4400_v26 = vpop.eup %4399 }
 0x8d1   : > { %v2971_v31 = vsel %vm2366_vm4, %v2900_v60, 0  ;;  %v2898_v40 = vpack.c.bf16 %v4398_v23, %v4400_v26  ;;  %v4402_v35 = vpop.eup %4401  ;;  %v6195_v9 = vpop.permute.xlu2 %2918 }
 0x8d2   : > { %3005 = vmatpush.bf16.msrb.mxu3 %v2971_v31  ;;  %v4404_v12 = vpop.eup %4403  ;;  %v6199_v26 = vpop.permute.xlu0 %2922 }
 0x8d3   : > { %v2896_v46 = vpack.c.bf16 %v4402_v35, %v4404_v12  ;;  %v4406_v19 = vpop.eup %4405 }
 0x8d4   : > { %v4408_v45 = vpop.eup %4407 }
 0x8d5   : > { %v2894_v24 = vpack.c.bf16 %v4406_v19, %v4408_v45 }
 0x8d6   : > { %3006 = vmatpush.bf16.msrb.mxu3 %v2898_v40 }
 0x8da   : > { %3007 = vmatpush.bf16.msrb.mxu3 %v2896_v46 }
 0x8db   : > { %3805 = vmatmul.msk.bf16.gmra.mxu1 %vm2353_vm5, %v2954_v1 }
 0x8de   : > { %3008 = vmatpush.bf16.msrb.mxu3 %v2894_v24 }
 0x8e1   : > { %3806 = vmatmul.msk.bf16.vlgmr.msrb.gmra.mxu3 %vm2353_vm5, %v3871_v36 }
 0x8f1   : > { %3807 = vmatmul.msk.bf16.gmra.mxu3 %vm2353_vm5, %v3872_v48  ;;  %v6182_v48 = vadd.f32 %v6099_v28, %v6171_v8  ;;  %v2044_v28 = vadd.f32 %v6102_v38, %v6185_v15 }
 0x901   : > { %3808 = vmatmul.msk.bf16.gmra.mxu3 %vm2353_vm5, %v3873_v18  ;;  %v6187_v18 = vpop.permute.xlu1 %2914 }
 0x909   : > { %v6203_v38 = vpop.permute.xlu1 %1938 }
 0x911   : > { %3809 = vmatmul.msk.bf16.gmra.mxu3 %vm2353_vm5, %v2954_v1  ;;  %v2047_v1 = vadd.f32 %v6107_v25, %v6203_v38 }
 0x928   : > { %v2982_v36 = vpop.f32.mrf.mxu1 }
 0x929   : > { %v2983_v20 = vadd.f32 %v2982_v36, %v6175_v42 }
 0x92b   : > { %v3029_v16 = vmul.f32 %v2983_v20, %v2027_v54  ;;  %v3093_v55 = vrot.slane %v2983_v20, 6  ;;  %v6210_v54 = vpop.permute.xlu2 %2926 }
 0x92d   : > { %v3133_v17 = vmul.f32 %v3093_v55, %v6182_v48 }
 0x92f   : > { %v3162_v23 = vrot.slane %v3133_v17, 2 }
 0x930   : > { %v2984_v53 = vpop.f32.mrf.mxu1 }
 0x931   : > { %v2985_v6 = vadd.f32 %v2984_v53, %v6187_v18 }
 0x933   : > { %v3031_v10 = vmul.f32 %v2985_v6, %v2029_v30  ;;  %v3095_v47 = vrot.slane %v2985_v6, 6 }
 0x935   : > { %v3043_v57 = vadd.f32 %v3031_v10, %v3029_v16  ;;  %v3096_v62 = vsel %vm1002_vm2, %v3093_v55, %v3095_v47  ;;  %v6214_v55 = vpop.permute.xlu0 %1942 }
 0x936   : > { %v3135_v60 = vmul.f32 %v3096_v62, %v2044_v28  ;;  %v2049_v30 = vadd.f32 %v6112_v39, %v6214_v55  ;;  %v6221_v62 = vpop.permute.xlu1 %2930 }
 0x938   : > { %v3163_v49 = vrot.slane %v3135_v60, 2  ;;  %v2987_v31 = vpop.f32.mrf.mxu1 }
 0x939   : > { %v2988_v50 = vadd.f32 %v2987_v31, %v6195_v9 }
 0x93a   : > { %v3164_v40 = vsel %vm3161_vm6, %v3162_v23, %v3163_v49 }
 0x93b   : > { %v3033_v35 = vmul.f32 %v2988_v50, %v2032_v63  ;;  %v3099_v12 = vrot.slane %v2988_v50, 6 }
 0x93d   : > { %v3044_v46 = vadd.f32 %v3043_v57, %v3033_v35  ;;  %v3100_v19 = vsel %vm1002_vm2, %v3095_v47, %v3099_v12  ;;  %v2037_v57 = vadd.f32 %v6092_v58, %v6173_v4 }
 0x93e   : > { %v3137_v45 = vmul.f32 %v3100_v19, %v2047_v1 }
 0x940   : > { %v3168_v24 = vrot.slane %v3137_v45, 2  ;;  %v2989_v36 = vpop.f32.mrf.mxu1 }
 0x941   : > { %v2990_v20 = vadd.f32 %v2989_v36, %v6199_v26 }
 0x942   : > { %v3169_v16 = vsel %vm3161_vm6, %v3163_v49, %v3168_v24  ;;  %v6225_v49 = vpop.permute.xlu2 %1946 }
 0x943   : > { %v3202_v17 = vadd.f32 %v3169_v16, %v3164_v40  ;;  %v3035_v53 = vmul.f32 %v2990_v20, %v2034_v37  ;;  %v3103_v25 = vrot.slane %v2990_v20, 6  ;;  %v2052_v50 = vadd.f32 %v6117_v27, %v6225_v49 }
 0x945   : > { %v3045_v6 = vadd.f32 %v3044_v46, %v3035_v53  ;;  %v3104_v10 = vsel %vm1002_vm2, %v3099_v12, %v3103_v25  ;;  %v2039_v46 = vadd.f32 %v6095_v61, %v6169_v21 }
 0x946   : > { %v3139_v47 = vmul.f32 %v3104_v10, %v2049_v30 }
 0x948   : > { %v3172_v28 = vrot.slane %v3139_v47, 2  ;;  %v2992_v5 = vpop.f32.mrf.mxu1 }
 0x949   : > { %v2993_v60 = vadd.f32 %v2992_v5, %v6210_v54 }
 0x94a   : > { %v3173_v23 = vsel %vm3161_vm6, %v3168_v24, %v3172_v28  ;;  %v6234_v24 = vpop.permute.xlu1 %1950  ;;  %v6243_v47 = vpop.permute.xlu2 %1954 }
 0x94b   : > { %v3203_v31 = vadd.f32 %v3202_v17, %v3173_v23  ;;  %v3037_v63 = vmul.f32 %v2993_v60, %v2037_v57  ;;  %v3107_v39 = vrot.slane %v2993_v60, 6  ;;  %v2054_v27 = vadd.f32 %v6121_v44, %v6234_v24 }
 0x94c   : > { %v2057_v44 = vadd.f32 %v6126_v52, %v6243_v47 }
 0x94d   : > { %v3046_v40 = vadd.f32 %v3045_v6, %v3037_v63  ;;  %v3108_v35 = vsel %vm1002_vm2, %v3103_v25, %v3107_v39  ;;  %v6239_v25 = vpop.permute.xlu0 %2934 }
 0x94e   : > { %v3141_v12 = vmul.f32 %v3108_v35, %v2052_v50 }
 0x950   : > { %v3176_v1 = vrot.slane %v3141_v12, 2  ;;  %v2994_v58 = vpop.f32.mrf.mxu1 }
 0x951   : > { %v2995_v19 = vadd.f32 %v2994_v58, %v6221_v62 }
 0x952   : > { %v3177_v45 = vsel %vm3161_vm6, %v3172_v28, %v3176_v1 }
 0x953   : > { %v3204_v36 = vadd.f32 %v3203_v31, %v3177_v45  ;;  %v3039_v37 = vmul.f32 %v2995_v19, %v2039_v46  ;;  %v3111_v20 = vrot.slane %v2995_v19, 6  ;;  %v6260_v45 = vadd.f32 %v6123_v43, %v6171_v8 }
 0x954   : > { %v2075_v8 = vadd.f32 %v6104_v22, %v6167_v7 }
 0x955   : > { %v3047_v16 = vadd.f32 %v3046_v40, %v3039_v37  ;;  %v3112_v17 = vsel %vm1002_vm2, %v3107_v39, %v3111_v20  ;;  %v2087_v37 = vadd.f32 %v6128_v32, %v6185_v15 }
 0x956   : > { %v3143_v53 = vmul.f32 %v3112_v17, %v2054_v27  ;;  %v2072_v27 = vadd.f32 %v6039_v51, %v6161_v29  ;;  %v2070_v17 = vadd.f32 %v6037_v2, %v6163_v13 }
 0x958   : > { %v3180_v30 = vrot.slane %v3143_v53, 2  ;;  %v2997_v61 = vpop.f32.mrf.mxu1 }
 0x959   : > { %v2998_v6 = vadd.f32 %v2997_v61, %v6239_v25 }
 0x95a   : > { %v3181_v10 = vsel %vm3161_vm6, %v3176_v1, %v3180_v30 }
 0x95b   : > { %v3205_v28 = vadd.f32 %v3204_v36, %v3181_v10  ;;  %v3041_v5 = vmul.f32 %v2998_v6, %v6182_v48  ;;  %v3115_v57 = vrot.slane %v2998_v6, 6  ;;  %v2090_v10 = vadd.f32 %v6130_v56, %v6203_v38 }
 0x95d   : > { %v3048_v60 = vsel %vm1002_vm2, %v3041_v5, 0.0  ;;  %v3116_v23 = vsel %vm1002_vm2, %v3111_v20, %v3115_v57 }
 0x95e   : > { %v6250_v31 = vadd.f32 %v3048_v60, %v3047_v16  ;;  %v3145_v63 = vmul.f32 %v3116_v23, %v2057_v44  ;;  %v2092_v60 = vadd.f32 %v6133_v14, %v6214_v55  ;;  %v2077_v23 = vadd.f32 %v6110_v34, %v6165_v33 }
 0x95f   : > { %v2095_v34 = vadd.f32 %v6135_v41, %v6225_v49  ;;  %v2082_v41 = vadd.f32 %v6119_v0, %v6169_v21 }
 0x960   : > { %v3184_v39 = vrot.slane %v3145_v63, 2  ;;  %v2999_v50 = vpop.f32.mrf.mxu1 }
 0x962   : > { %v3185_v40 = vsel %vm3161_vm6, %v3180_v30, %v3184_v39  ;;  %v3207_v12 = vsel %vm1002_vm2, %v3184_v39, 0.0 }
 0x963   : > { %v3206_v35 = vadd.f32 %v3205_v28, %v3185_v40  ;;  %v2080_v40 = vadd.f32 %v6114_v59, %v6173_v4 }
 0x964   : > { %v3010_v1 = vpop.f32.mrf.mxu3 }
 0x965   : > { %v6254_v48 = vadd.f32 %v3207_v12, %v3206_v35  ;;  %v3011_v58 = vadd.f32 %v3010_v1, %v6175_v42 }
 0x967   : > { %v3094_v52 = vrot.slane %v3011_v58, 6  ;;  %v3030_v61 = vmul.f32 %v3011_v58, %v2070_v17 }
 0x969   : > { %v3134_v20 = vmul.f32 %v3094_v52, %v6260_v45 }
 0x96b   : > { %v3165_v53 = vrot.slane %v3134_v20, 2 }
 0x96c   : > { %v3012_v46 = vpop.f32.mrf.mxu3 }
 0x96d   : > { %v3013_v19 = vadd.f32 %v3012_v46, %v6187_v18 }
 0x96f   : > { %v3097_v36 = vrot.slane %v3013_v19, 6  ;;  %v3032_v18 = vmul.f32 %v3013_v19, %v2072_v27  ;;  %v3050_v27 = vrot.slane %v6250_v31, 4 }
 0x971   : > { %v3098_v16 = vsel %vm1002_vm2, %v3094_v52, %v3097_v36  ;;  %v3056_v6 = vadd.f32 %v3032_v18, %v3030_v61 }
 0x972   : > { %v3136_v42 = vmul.f32 %v3098_v16, %v2087_v37  ;;  %v2097_v37 = vadd.f32 %v6137_v3, %v6234_v24  ;;  %v2100_v3 = vadd.f32 %v6139_v11, %v6243_v47  ;;  %v3051_v24 = vadd.f32 %v3050_v27, %v6250_v31 }
 0x974   : > { %v3166_v30 = vrot.slane %v3136_v42, 2  ;;  %v3015_v43 = vpop.f32.mrf.mxu3 }
 0x975   : > { %v3016_v32 = vadd.f32 %v3015_v43, %v6195_v9 }
 0x976   : > { %v3167_v15 = vsel %vm3161_vm6, %v3165_v53, %v3166_v30 }
 0x977   : > { %v3034_v51 = vmul.f32 %v3016_v32, %v2075_v8  ;;  %v3101_v29 = vrot.slane %v3016_v32, 6 }
 0x979   : > { %v3057_v28 = vadd.f32 %v3056_v6, %v3034_v51  ;;  %v3102_v2 = vsel %vm1002_vm2, %v3097_v36, %v3101_v29 }
 0x97a   : > { %v3138_v13 = vmul.f32 %v3102_v2, %v2090_v10 }
 0x97c   : > { %v3170_v5 = vrot.slane %v3138_v13, 2  ;;  %v3017_v57 = vpop.f32.mrf.mxu3 }
 0x97d   : > { %v3018_v44 = vadd.f32 %v3017_v57, %v6199_v26 }
 0x97e   : > { %v3171_v22 = vsel %vm3161_vm6, %v3166_v30, %v3170_v5 }
 0x97f   : > { %v3215_v7 = vadd.f32 %v3171_v22, %v3167_v15  ;;  %v3105_v9 = vrot.slane %v3018_v44, 6  ;;  %v3036_v63 = vmul.f32 %v3018_v44, %v2077_v23  ;;  %v3052_v15 = vrot.slane %v3051_v24, 2 }
 0x981   : > { %v3106_v56 = vsel %vm1002_vm2, %v3101_v29, %v3105_v9  ;;  %v3058_v12 = vadd.f32 %v3057_v28, %v3036_v63  ;;  %v3053_v10 = vadd.f32 %v3052_v15, %v3051_v24 }
 0x982   : > { %v3140_v38 = vmul.f32 %v3106_v56, %v2092_v60 }
 0x983   : > { %v3054_v22 = vrot.slane %v3053_v10, 1 }
 0x984   : > { %v3174_v39 = vrot.slane %v3140_v38, 2  ;;  %v3020_v50 = vpop.f32.mrf.mxu3 }
 0x985   : > { %v3021_v26 = vadd.f32 %v3020_v50, %v6210_v54  ;;  %v3055_v38 = vadd.f32 %v3054_v22, %v3053_v10 }
 0x986   : > { %v3175_v35 = vsel %vm3161_vm6, %v3170_v5, %v3174_v39 }
 0x987   : > { %v3216_v1 = vadd.f32 %v3215_v7, %v3175_v35  ;;  %v3038_v58 = vmul.f32 %v3021_v26, %v2080_v40  ;;  %v3109_v14 = vrot.slane %v3021_v26, 6 }
 0x989   : > { %v3059_v33 = vadd.f32 %v3058_v12, %v3038_v58  ;;  %v3110_v55 = vsel %vm1002_vm2, %v3105_v9, %v3109_v14  ;;  %v3074_v9 = vlaneseq }
 0x98a   : > { %v3142_v52 = vmul.f32 %v3110_v55, %v2095_v34 }
 0x98b   : > { %vm6320_vm7 = vcmp.lt.s32.totalorder %v3074_v9, 256 }
 0x98c   : > { %v3178_v46 = vrot.slane %v3142_v52, 2  ;;  %v3022_v19 = vpop.f32.mrf.mxu3 }
 0x98d   : > { %v3023_v36 = vadd.f32 %v3022_v19, %v6221_v62 }
 0x98e   : > { %v3179_v59 = vsel %vm3161_vm6, %v3174_v39, %v3178_v46 }
 0x98f   : > { %v3217_v4 = vadd.f32 %v3216_v1, %v3179_v59  ;;  %v3113_v54 = vrot.slane %v3023_v36, 6  ;;  %v3040_v16 = vmul.f32 %v3023_v36, %v2082_v41 }
 0x991   : > { %v3114_v20 = vsel %vm1002_vm2, %v3109_v14, %v3113_v54  ;;  %v3060_v0 = vadd.f32 %v3059_v33, %v3040_v16 }
 0x992   : > { %v3144_v49 = vmul.f32 %v3114_v20, %v2097_v37 }
 0x994   : > { %v3182_v42 = vrot.slane %v3144_v49, 2  ;;  %v3025_v17 = vpop.f32.mrf.mxu3 }
 0x995   : > { %v3026_v62 = vadd.f32 %v3025_v17, %v6239_v25  ;;  %v3209_v25 = vrot.slane %v6254_v48, 4 }
 0x996   : > { %v3183_v18 = vsel %vm3161_vm6, %v3178_v46, %v3182_v42 }
 0x997   : > { %v3218_v53 = vadd.f32 %v3217_v4, %v3183_v18  ;;  %v3042_v30 = vmul.f32 %v3026_v62, %v6260_v45  ;;  %v3117_v43 = vrot.slane %v3026_v62, 6  ;;  %v3210_v47 = vadd.f32 %v3209_v25, %v6254_v48 }
 0x999   : > { %v3061_v21 = vsel %vm1002_vm2, %v3042_v30, 0.0  ;;  %v3118_v8 = vsel %vm1002_vm2, %v3113_v54, %v3117_v43  ;;  %v3211_v57 = vrot.slane %v3210_v47, 2 }
 0x99a   : > { %v3062_v61 = vadd.f32 %v3061_v21, %v3060_v0  ;;  %v3146_v32 = vmul.f32 %v3118_v8, %v2100_v3 }
 0x99b   : > { %v3212_v23 = vadd.f32 %v3211_v57, %v3210_v47 }
 0x99c   : > { %v3063_v6 = vrot.slane %v3062_v61, 4  ;;  %v3186_v45 = vrot.slane %v3146_v32, 2  ;;  %v3027_v51 = vpop.f32.mrf.mxu3 }
 0x99d   : > { %v3213_v26 = vrot.slane %v3212_v23, 1 }
 0x99e   : > { %v3064_v29 = vadd.f32 %v3063_v6, %v3062_v61  ;;  %v3187_v11 = vsel %vm3161_vm6, %v3182_v42, %v3186_v45  ;;  %v3220_v2 = vsel %vm1002_vm2, %v3186_v45, 0.0 }
 0x99f   : > { %v3219_v31 = vadd.f32 %v3218_v53, %v3187_v11 }
 0x9a0   : > { %v3065_v28 = vrot.slane %v3064_v29, 2 }
 0x9a1   : > { %v3221_v13 = vadd.f32 %v3220_v2, %v3219_v31 }
 0x9a2   : > { %v3066_v5 = vadd.f32 %v3065_v28, %v3064_v29 }
 0x9a3   : > { %v3222_v44 = vrot.slane %v3221_v13, 4 }
 0x9a4   : > { %v3067_v7 = vrot.slane %v3066_v5, 1 }
 0x9a5   : > { %v3223_v48 = vadd.f32 %v3222_v44, %v3221_v13 }
 0x9a6   : > { %v3068_v60 = vadd.f32 %v3067_v7, %v3066_v5 }
 0x9a7   : > { %v3224_v56 = vrot.slane %v3223_v48, 2 }
 0x9a8   : > { %v3071_v63 = vrot.slane %v3068_v60, 7 }
 0x9a9   : > { %v3225_v50 = vadd.f32 %v3224_v56, %v3223_v48 }
 0x9aa   : > { %v3072_v40 = vsel %vm2366_vm4, %v3055_v38, %v3071_v63 }
 0x9ab   : > { %3078 = vst.msk [vmem:[%s389_s13] sm:$0x3] %vm6320_vm7, %v3072_v40  ;;  %v3226_v35 = vrot.slane %v3225_v50, 1 }
 0x9ac   : > { %4522 = shalt.err (!%p4519_p11)
}
 0x9ad   : > { %3896 = dma.vmem_to_hbm [thread:$0]  (%p4727_p5), %s3253_s19, 32, %s3255_s16, %s3235_s28   ;;  %v3227_v12 = vadd.f32 %v3226_v35, %v3225_v50  ;;  %v3214_v1 = vadd.f32 %v3213_v26, %v3212_v23 }
 0x9ae   : > { %s396_s14 = scalar_lea.vmem [#allocation8], %s3402_s6  ;;  %s3268_s13 = sshll.u32 %s3264_s20, 4  ;;  %s3269_s13 = int_to_ptr.hbm [resolvable:$true] %s3268_s13 }
 0x9af   : > { %s3266_s18 = sshll.u32 %s396_s14, 4  ;;  %v3230_v58 = vrot.slane %v3227_v12, 7  ;;  %s3240_s11 = scalar_lea.sflag [#allocation9], %s4753_s25  ;;  %s3267_s18 = int_to_ptr.vmem [resolvable:$true] %s3266_s18 }
 0x9b0   : > { %s4537_s15 = sshra.s32 %s3269_s13, 4  ;;  %s4543_s16 = scalar_lea.hbm %s6385_s9, 8  ;;  %s4538_s15 = int_to_ptr.hbm [resolvable:$true] %s4537_s15 }
 0x9b1   : > { %v3231_v14 = vsel %vm2366_vm4, %v3214_v1, %v3230_v58  ;;  %s4539_s22 = scalar_lea.hbm %s4538_s15, 2  ;;  %p4544_p3 = scmp.lt.s32.totalorder %s4538_s15, %s6385_s9 }
 0x9b2   : > { %3233 = vst.msk [vmem:[%s396_s14] sm:$0x3] %vm6320_vm7, %v3231_v14  ;;  %p4540_p12 = scmp.ne.s32.totalorder %s4538_s15, %s4539_s22  ;;  %p4545_p1 = scmp.lt.s32.totalorder %s4543_s16, %s4539_s22 }
 0x9b4   : > { %p4541_p13 = pnand %p4540_p12, %p4727_p5  ;;  %p4546_p4 = por %p4545_p1, %p4544_p3 }
 0x9b6   : > { %p4542_p0 = pneg %p4541_p13 }
 0x9b8   : > { %p4547_p8 = pnand %p4546_p4, %p4542_p0 }
 0x9ba   : > { %4550 = shalt.err (!%p4547_p8)
}
 0x9bb   : > { %3897 = dma.vmem_to_hbm [thread:$0]  (%p4727_p5), %s3267_s18, 32, %s3269_s13, %s3240_s11  }
 0x9bc PF: > { %p3918_p7 = scmp.ge.s32.totalorder %s4597_s12, 2  ;;  %s3280_s24 = sand.u32 1, %s4585_s30  }
 0x9bd   : > { %s3281_s23 = scalar_lea.sflag [#allocation4], %s3280_s24 }
 0x9be   : > { %p3909_p2 = pnand %p3918_p7, %p4696_p6 }
 0x9c0   : > { %p3910_p9 = pneg %p3909_p2 }
 0x9c2   : > { %4576 = dma.done.wait (%p3910_p9), %s3281_s23, 32  }
 0x9c3   : > { %4578 = vsyncadd (%p3910_p9), %s3281_s23, 4294967264  ;;  %s3291_s26 = scalar_lea.sflag [#allocation9], %s3280_s24 }
 0x9c4   : > { %4580 = dma.done.wait (%p3910_p9), %s3291_s26, 32  }
 0x9c5   : > { %4582 = vsyncadd (%p3910_p9), %s3291_s26, 4294967264  ;;  %s6463_s12 = sld [smem:[#allocation16_spill]]  ;;  %s6466_s30 = smov %s4589_s10 }
 0x9c6   : > { %s6464_s27 = sld [smem:[#allocation14_spill]] }
 0x9c7   : > { %s6465_s11 = sld [smem:[#allocation17_spill]] }
 0x9cb   : > { %p27_p5 = scmp.ge.s32.totalorder %s6463_s12, 6  }
 0x9cc   : > { %s6467_s10 = smov %s6464_s27 }
 0x9cd   :  { %29 = sbr.rel (!%p27_p5) target bundleno = 10 (0xa), region = 129 }
 0x9d2   :  { %3297 = vsyncpa [#allocation3], 1 }
 0x9d3   :  { %3299 = vsyncpa [#allocation3 + $0x1], 1 }
 0x9d4   :  { %3300 = vsyncpa [#allocation6], 1 }
 0x9d5   :  { %3301 = vsyncpa [#allocation4], 1 }
 0x9d6   :  { %3303 = vsyncpa [#allocation4 + $0x1], 1 }
 0x9d7   :  { %3304 = vsyncpa [#allocation9], 1 }
 0x9d8   :  { %3306 = vsyncpa [#allocation9 + $0x1], 1 }

</bundles_post_ra>
